<compile_context>
chip_gen: v7x
topology: tpu7x:2x2x1
jax: 0.10.0
libtpu: 0.0.40
codegen_flags: <defaults>
</compile_context>

<pallas_src>
import jax
import jax.numpy as jnp
from jax import lax
from jax.experimental import pallas as pl
from jax.experimental.pallas import tpu as pltpu

# Small, module-consistent dims.
VOCAB = 16   # vocab_size
EMB   = 32   # embedding_dim
HID   = 32   # hidden_dim
BATCH = 2
SEQ   = 8

H  = HID
H2 = 2 * H             # 64  = fused [fwd|bwd] state width (real part)
SW = 128               # lane-dense padded state / head width
GW = 3 * SW            # 384 = 3 gate blocks x 128 lanes: [r_f|r_b|pad | z.. | n..]

# Row offsets inside the packed weight slab (all multiples of 8 -> tile aligned).
OFF_W0   = 0                    # (2E, GW) layer-0 input projection
OFF_WQ1  = OFF_W0 + 2 * EMB     # (SW, GW) layer-1 input proj, same-step slab
OFF_WQ2  = OFF_WQ1 + SW         # (SW, GW) layer-1 input proj, reversed slab
OFF_WHH0 = OFF_WQ2 + SW         # (SW, GW) layer-0 recurrent (block diagonal)
OFF_WHH1 = OFF_WHH0 + SW        # (SW, GW) layer-1 recurrent
OFF_W1A  = OFF_WHH1 + SW        # (SW, SW) gru2hidden, [h0f|h0b] half
OFF_W1B  = OFF_W1A + SW         # (SW, SW) gru2hidden, [h1f|h1b] half
OFF_W2   = OFF_W1B + SW         # (SW, SW) hidden2out
OFF_BGX0 = OFF_W2 + SW          # fused gate bias, layer 0 (b_ih + b_hr/b_hz folded)
OFF_BGX1 = OFF_BGX0 + 8
OFF_BHN0 = OFF_BGX1 + 8         # b_hn kept separate (it is scaled by r)
OFF_BHN1 = OFF_BHN0 + 8
OFF_B1   = OFF_BHN1 + 8
OFF_B2   = OFF_B1 + 8
WPACK_ROWS = OFF_B2 + 8         # 1008 rows x 384 cols (~1.5 MB f32)


# ---------------------------------------------------------------------------
# Pallas kernel
# ---------------------------------------------------------------------------
def discriminator_kernel(embcat_ref, lenb_ref, wpack_ref, out_ref, hs_ref):
    TB = embcat_ref.shape[0]            # T * BCH (step-major rows within this chunk)
    BCH = out_ref.shape[0]              # batch rows in this chunk (multiple of 8)
    T = TB // BCH

    # ---- unpack the packed weight slab (static, tile-aligned slices; one-time) ----
    w0   = wpack_ref[OFF_W0:OFF_W0 + 2 * EMB, :]
    wq1  = wpack_ref[OFF_WQ1:OFF_WQ1 + SW, :]
    wq2  = wpack_ref[OFF_WQ2:OFF_WQ2 + SW, :]
    whh0 = wpack_ref[OFF_WHH0:OFF_WHH0 + SW, :]
    whh1 = wpack_ref[OFF_WHH1:OFF_WHH1 + SW, :]
    w1a  = wpack_ref[OFF_W1A:OFF_W1A + SW, 0:SW]
    w1b  = wpack_ref[OFF_W1B:OFF_W1B + SW, 0:SW]
    w2   = wpack_ref[OFF_W2:OFF_W2 + SW, 0:SW]
    bgx0 = wpack_ref[OFF_BGX0:OFF_BGX0 + 1, :]
    bgx1 = wpack_ref[OFF_BGX1:OFF_BGX1 + 1, :]
    b1   = wpack_ref[OFF_B1:OFF_B1 + 1, 0:SW]
    b2   = wpack_ref[OFF_B2:OFF_B2 + 1, 0:SW]

    # Hoisted per-step broadcasts (JAX does not CSE broadcast_in_dim inside the loop).
    bhn0 = jnp.broadcast_to(wpack_ref[OFF_BHN0:OFF_BHN0 + 1, 0:SW], (BCH, SW))
    bhn1 = jnp.broadcast_to(wpack_ref[OFF_BHN1:OFF_BHN1 + 1, 0:SW], (BCH, SW))

    # ---- packed-sequence validity masks rebuilt in-kernel (no big mask operand) ----
    # State/gate columns: [h_f : 0..H) | h_b : H..2H) | pad].  fwd half valid iff
    # s < len; bwd half (processing time T-1-s) valid iff T-1-s < len.
    lens2 = lenb_ref[...]                                           # (BCH, SW) int32
    is_fwd = lax.broadcasted_iota(jnp.int32, (BCH, SW), 1) < H      # hoisted
    masks = [jnp.where(is_fwd, s, T - 1 - s) < lens2 for s in range(T)]

    # ---- layer-0 input projection: ONE batched MXU matmul (b_ih/b_hr/b_hz folded) ----
    gx0 = jnp.dot(embcat_ref[...], w0, preferred_element_type=jnp.float32) + bgx0

    def fused_step(h, gx, gh, bhn, mrow):
        # 128-lane aligned gate blocks -> whole-vreg slices only.
        r = jax.nn.sigmoid(gx[:, 0:SW] + gh[:, 0:SW])
        z = jax.nn.sigmoid(gx[:, SW:2 * SW] + gh[:, SW:2 * SW])
        n = jnp.tanh(gx[:, 2 * SW:3 * SW] + r * (gh[:, 2 * SW:3 * SW] + bhn))
        h_new = (1.0 - z) * n + z * h
        return jnp.where(mrow, h_new, h)                   # single vsel for masking

    # ---- layer 0: fused fwd+bwd recurrence (one MXU matmul per step) ----
    # TODO(synk): hold whh0/whh1 resident in the MXU across the T steps via
    # pltpu.matmul_push_rhs / matmul_acc_lhs / matmul_pop to skip the per-step RHS
    # reload; not used here because the accumulate/pop semantics were not validated.
    h = jnp.zeros((BCH, SW), jnp.float32)
    for s in range(T):                                     # static T -> unrolled
        gh = jnp.dot(h, whh0, preferred_element_type=jnp.float32)   # (BCH, 384)
        h = fused_step(h, gx0[s * BCH:(s + 1) * BCH, :], gh, bhn0, masks[s])
        hs_ref[s * BCH:(s + 1) * BCH, :] = h               # state slab for layer 1
    h0 = h                                                 # [l0_fwd_final | l0_bwd_final | 0]

    # ---- layer-1 input projection: two batched matmuls on the stored state slab ----
    # hs row (s, b) = [o0_fwd(s) | o0_bwd(T-1-s) | 0]; no concat / reversal copies —
    # the time reversal is a static reversed row slice of gxb below.
    hs_all = hs_ref[...]
    gxa = jnp.dot(hs_all, wq1, preferred_element_type=jnp.float32) + bgx1
    gxb = jnp.dot(hs_all, wq2, preferred_element_type=jnp.float32)

    # ---- layer 1: fused fwd+bwd recurrence ----
    h = jnp.zeros((BCH, SW), jnp.float32)
    for s in range(T):
        gh = jnp.dot(h, whh1, preferred_element_type=jnp.float32)
        gx = gxa[s * BCH:(s + 1) * BCH, :] + gxb[(T - 1 - s) * BCH:(T - s) * BCH, :]
        h = fused_step(h, gx, gh, bhn1, masks[s])
    h1 = h                                                 # [l1_fwd_final | l1_bwd_final | 0]

    # ---- heads: sigmoid(hidden2out(tanh(gru2hidden([h0f,h0b,h1f,h1b])))) ----
    hid = jnp.tanh(jnp.dot(h0, w1a, preferred_element_type=jnp.float32)
                   + jnp.dot(h1, w1b, preferred_element_type=jnp.float32) + b1)
    # dropout_linear has p=0.0 -> identity (inference semantics)
    logit = jnp.dot(hid, w2, preferred_element_type=jnp.float32) + b2
    out_ref[...] = jax.nn.sigmoid(logit)                   # (BCH, 128); col 0 is real


# ---------------------------------------------------------------------------
# Parameter packing (wrapper-side, one-time layout plumbing)
# ---------------------------------------------------------------------------
def _pack_weights(params):
    Hh, E = HID, EMB
    w = jnp.zeros((WPACK_ROWS, GW), jnp.float32)

    def gT(m, g, c0, c1):
        # m: (3H, in) PyTorch layout [W_r; W_z; W_n]; transposed block (c1-c0, H).
        return m[g * Hh:(g + 1) * Hh, c0:c1].T

    # Layer-0 input projection; per-step fused input row is [x_s | x_{T-1-s}].
    for g in range(3):
        w = w.at[OFF_W0:OFF_W0 + E, g * SW:g * SW + Hh].set(gT(params["wih0f"], g, 0, E))
        w = w.at[OFF_W0 + E:OFF_W0 + 2 * E,
                 g * SW + Hh:g * SW + 2 * Hh].set(gT(params["wih0b"], g, 0, E))

    # Layer-1 input projection split over the two state slabs:
    #   slab hs[s]     = [o0f(s)     | o0b(T-1-s)]  -> wq1
    #   slab hs[T-1-s] = [o0f(T-1-s) | o0b(s)]      -> wq2
    for g in range(3):
        w = w.at[OFF_WQ1:OFF_WQ1 + Hh, g * SW:g * SW + Hh].set(gT(params["wih1f"], g, 0, Hh))
        w = w.at[OFF_WQ1 + Hh:OFF_WQ1 + 2 * Hh,
                 g * SW + Hh:g * SW + 2 * Hh].set(gT(params["wih1b"], g, Hh, 2 * Hh))
        w = w.at[OFF_WQ2:OFF_WQ2 + Hh,
                 g * SW + Hh:g * SW + 2 * Hh].set(gT(params["wih1b"], g, 0, Hh))
        w = w.at[OFF_WQ2 + Hh:OFF_WQ2 + 2 * Hh,
                 g * SW:g * SW + Hh].set(gT(params["wih1f"], g, Hh, 2 * Hh))

    # Recurrent weights: block-diagonal over directions.
    for g in range(3):
        w = w.at[OFF_WHH0:OFF_WHH0 + Hh, g * SW:g * SW + Hh].set(gT(params["whh0f"], g, 0, Hh))
        w = w.at[OFF_WHH0 + Hh:OFF_WHH0 + 2 * Hh,
                 g * SW + Hh:g * SW + 2 * Hh].set(gT(params["whh0b"], g, 0, Hh))
        w = w.at[OFF_WHH1:OFF_WHH1 + Hh, g * SW:g * SW + Hh].set(gT(params["whh1f"], g, 0, Hh))
        w = w.at[OFF_WHH1 + Hh:OFF_WHH1 + 2 * Hh,
                 g * SW + Hh:g * SW + 2 * Hh].set(gT(params["whh1b"], g, 0, Hh))

    # Heads: hid = tanh([h0f,h0b] @ W1A + [h1f,h1b] @ W1B + b1); logit = hid @ W2 + b2.
    w1t = params["w1"].T                                   # (4H, H)
    w = w.at[OFF_W1A:OFF_W1A + 2 * Hh, 0:Hh].set(w1t[0:2 * Hh, :])
    w = w.at[OFF_W1B:OFF_W1B + 2 * Hh, 0:Hh].set(w1t[2 * Hh:4 * Hh, :])
    w = w.at[OFF_W2:OFF_W2 + Hh, 0:1].set(params["w2"].T)

    # Fused gate biases: b_ih (+ b_hr, b_hz) folded into gx; b_hn kept separate.
    def set_bgx(w, off, bif, bib, bhf, bhb):
        for g, fold_hh in ((0, True), (1, True), (2, False)):
            bf = bif[g * Hh:(g + 1) * Hh]
            bb = bib[g * Hh:(g + 1) * Hh]
            if fold_hh:
                bf = bf + bhf[g * Hh:(g + 1) * Hh]
                bb = bb + bhb[g * Hh:(g + 1) * Hh]
            w = w.at[off, g * SW:g * SW + Hh].set(bf)
            w = w.at[off, g * SW + Hh:g * SW + 2 * Hh].set(bb)
        return w

    w = set_bgx(w, OFF_BGX0, params["bih0f"], params["bih0b"], params["bhh0f"], params["bhh0b"])
    w = set_bgx(w, OFF_BGX1, params["bih1f"], params["bih1b"], params["bhh1f"], params["bhh1b"])

    w = w.at[OFF_BHN0, 0:Hh].set(params["bhh0f"][2 * Hh:])
    w = w.at[OFF_BHN0, Hh:2 * Hh].set(params["bhh0b"][2 * Hh:])
    w = w.at[OFF_BHN1, 0:Hh].set(params["bhh1f"][2 * Hh:])
    w = w.at[OFF_BHN1, Hh:2 * Hh].set(params["bhh1b"][2 * Hh:])
    w = w.at[OFF_B1, 0:Hh].set(params["b1"])
    w = w.at[OFF_B2, 0].set(params["b2"][0])
    return w


# ---------------------------------------------------------------------------
# Wrapper (glue: embedding gather, batch padding/chunking, packing, pallas_call)
# ---------------------------------------------------------------------------
def discriminator_forward(params, token_ids, lengths, *, max_chunk=128):
    """Equivalent of Discriminator.forward(input, lengths, zeros_hidden) -> (B, 1)."""
    B, T = token_ids.shape
    B_pad = max(8, ((B + 7) // 8) * 8)      # full sublane group minimum
    BCH = min(B_pad, max_chunk)             # fill MXU rows; chunk very large batches
    B_pad = ((B_pad + BCH - 1) // BCH) * BCH
    nchunks = B_pad // BCH

    tok = jnp.zeros((B_pad, T), jnp.int32).at[:B, :].set(token_ids)
    lens = jnp.full((B_pad,), T, jnp.int32).at[:B].set(lengths)

    # Embedding gather (glue) + per-step fused input [x_s | x_{T-1-s}].
    emb = params["We"][tok].astype(jnp.float32)                                # (Bp, T, E)
    x = jnp.concatenate([emb, emb[:, ::-1, :]], axis=-1)                       # (Bp, T, 2E)
    # Chunk-major, step-major-within-chunk rows: row = (chunk*T + s)*BCH + b.
    embcat = (x.reshape(nchunks, BCH, T, 2 * EMB)
               .transpose(0, 2, 1, 3)
               .reshape(nchunks * T * BCH, 2 * EMB))

    lenb = jnp.broadcast_to(lens[:, None], (B_pad, SW)).astype(jnp.int32)      # (Bp, 128)
    wpack = _pack_weights(params)                                              # (1008, 384)

    out = pl.pallas_call(
        discriminator_kernel,
        out_shape=jax.ShapeDtypeStruct((B_pad, SW), jnp.float32),
        grid_spec=pltpu.PrefetchScalarGridSpec(
            num_scalar_prefetch=0,
            grid=(nchunks,),
            in_specs=[
                pl.BlockSpec((T * BCH, 2 * EMB), lambda j: (j, 0)),
                pl.BlockSpec((BCH, SW), lambda j: (j, 0)),
                pl.BlockSpec((WPACK_ROWS, GW), lambda j: (0, 0)),
            ],
            out_specs=pl.BlockSpec((BCH, SW), lambda j: (j, 0)),
            scratch_shapes=[pltpu.VMEM((T * BCH, SW), jnp.float32)],
        ),
        compiler_params=pltpu.CompilerParams(
            dimension_semantics=("parallel",)),
    )(embcat, lenb, wpack)
    return out[:B, 0:1]


def batch_classify(params, token_ids, lengths):
    """Equivalent of Discriminator.batch_Classify -> (B,)."""
    return discriminator_forward(params, token_ids, lengths).reshape(-1)


# ---------------------------------------------------------------------------
# Deterministic synthetic parameters (PyTorch-convention shapes)
# ---------------------------------------------------------------------------
def init_params(key):
    def u(k, shape, scale=0.1):
        return jax.random.uniform(k, shape, jnp.float32, -scale, scale)

    keys = jax.random.split(key, 24)
    p = {}
    p["We"] = u(keys[0], (VOCAB, EMB), 0.5)          # embedding table (pretrained stand-in)
    i = 1
    for layer in (0, 1):
        in_dim = EMB if layer == 0 else 2 * HID
        for d in ("f", "b"):
            p[f"wih{layer}{d}"] = u(keys[i], (3 * HID, in_dim)); i += 1
            p[f"whh{layer}{d}"] = u(keys[i], (3 * HID, HID));    i += 1
            p[f"bih{layer}{d}"] = u(keys[i], (3 * HID,));        i += 1
            p[f"bhh{layer}{d}"] = u(keys[i], (3 * HID,));        i += 1
    p["w1"] = u(keys[i], (HID, 4 * HID)); i += 1     # gru2hidden
    p["b1"] = u(keys[i], (HID,));         i += 1
    p["w2"] = u(keys[i], (1, HID));       i += 1     # hidden2out
    p["b2"] = u(keys[i], (1,));           i += 1
    return p


# ---------------------------------------------------------------------------
# Pure-JAX reference (direct transcription of the PyTorch module, for checking)
# ---------------------------------------------------------------------------
def _reference_forward(params, token_ids, lengths):
    emb = params["We"][token_ids].astype(jnp.float32)          # (B, T, E)
    B, T, _ = emb.shape
    Hh = HID
    mask = (jnp.arange(T)[None, :] < lengths[:, None]).astype(jnp.float32)

    def cell(x, h, wih, whh, bih, bhh):
        gx = x @ wih.T + bih
        gh = h @ whh.T + bhh
        r = jax.nn.sigmoid(gx[:, :Hh] + gh[:, :Hh])
        z = jax.nn.sigmoid(gx[:, Hh:2 * Hh] + gh[:, Hh:2 * Hh])
        n = jnp.tanh(gx[:, 2 * Hh:] + r * gh[:, 2 * Hh:])
        return (1.0 - z) * n + z * h

    def run(x_fn, wih, whh, bih, bhh, reverse):
        h = jnp.zeros((B, Hh), jnp.float32)
        outs = [None] * T
        order = range(T - 1, -1, -1) if reverse else range(T)
        for t in order:
            hn = cell(x_fn(t), h, wih, whh, bih, bhh)
            m = mask[:, t:t + 1]
            h = m * hn + (1.0 - m) * h
            outs[t] = h
        return h, outs

    x0 = lambda t: emb[:, t, :]
    h0f, o0f = run(x0, params["wih0f"], params["whh0f"], params["bih0f"], params["bhh0f"], False)
    h0b, o0b = run(x0, params["wih0b"], params["whh0b"], params["bih0b"], params["bhh0b"], True)
    x1 = lambda t: jnp.concatenate([o0f[t], o0b[t]], axis=-1)
    h1f, _ = run(x1, params["wih1f"], params["whh1f"], params["bih1f"], params["bhh1f"], False)
    h1b, _ = run(x1, params["wih1b"], params["whh1b"], params["bih1b"], params["bhh1b"], True)
    hcat = jnp.concatenate([h0f, h0b, h1f, h1b], axis=-1)
    hid = jnp.tanh(hcat @ params["w1"].T + params["b1"])
    logit = hid @ params["w2"].T + params["b2"]
    return jax.nn.sigmoid(logit)


if __name__ == "__main__":
    key = jax.random.PRNGKey(0)
    pkey, dkey = jax.random.split(key)
    params = init_params(pkey)

    token_ids = jax.random.randint(dkey, (BATCH, SEQ), 0, VOCAB, dtype=jnp.int32)
    lengths = jnp.array([SEQ, SEQ - 3], dtype=jnp.int32)   # variable-length sequences

    out = batch_classify(params, token_ids, lengths)
    out = jax.block_until_ready(out)
    ref = _reference_forward(params, token_ids, lengths).reshape(-1)

    assert out.shape == (BATCH,)
    assert bool(jnp.all(jnp.isfinite(out)))
    assert bool(jnp.all((out > 0.0) & (out < 1.0)))        # sigmoid range
    assert bool(jnp.allclose(out, ref, atol=3e-5, rtol=3e-5)), (out, ref)
    print("KERNEL_OK")
</pallas_src>

<mosaic_0001>
module attributes {stable_mosaic.version = 11 : i64} {
  func.func @discriminator_kernel(%arg0: i32, %arg1: memref<64x64xf32, #tpu.memory_space<vmem>>, %arg2: memref<8x128xi32, #tpu.memory_space<vmem>>, %arg3: memref<1008x384xf32, #tpu.memory_space<vmem>>, %arg4: memref<8x128xf32, #tpu.memory_space<vmem>>, %arg5: memref<64x128xf32, #tpu.memory_space<vmem>>) attributes {dimension_semantics = [#tpu.dimension_semantics<parallel>], iteration_bounds = array<i64: 1>, scalar_prefetch = 0 : i64, scratch_operands = 1 : i64, tpu.core_type = #tpu.core_type<tc>, window_params = [{transform_indices = @transform_0, window_bounds = array<i64: 64, 64>}, {transform_indices = @transform_1, window_bounds = array<i64: 8, 128>}, {pipeline_mode = #tpu.pipeline_mode<synchronous>, transform_indices = @transform_2, window_bounds = array<i64: 1008, 384>}, {transform_indices = @transform_3, window_bounds = array<i64: 8, 128>}]} {
    %c0 = arith.constant 0 : index
    %c0_0 = arith.constant 0 : index
    %0 = vector.load %arg3[%c0, %c0_0] : memref<1008x384xf32, #tpu.memory_space<vmem>>, vector<64x384xf32>
    %c64 = arith.constant 64 : index
    %c0_1 = arith.constant 0 : index
    %1 = vector.load %arg3[%c64, %c0_1] : memref<1008x384xf32, #tpu.memory_space<vmem>>, vector<128x384xf32>
    %c192 = arith.constant 192 : index
    %c0_2 = arith.constant 0 : index
    %2 = vector.load %arg3[%c192, %c0_2] : memref<1008x384xf32, #tpu.memory_space<vmem>>, vector<128x384xf32>
    %c320 = arith.constant 320 : index
    %c0_3 = arith.constant 0 : index
    %3 = vector.load %arg3[%c320, %c0_3] : memref<1008x384xf32, #tpu.memory_space<vmem>>, vector<128x384xf32>
    %c448 = arith.constant 448 : index
    %c0_4 = arith.constant 0 : index
    %4 = vector.load %arg3[%c448, %c0_4] : memref<1008x384xf32, #tpu.memory_space<vmem>>, vector<128x384xf32>
    %c576 = arith.constant 576 : index
    %c0_5 = arith.constant 0 : index
    %5 = vector.load %arg3[%c576, %c0_5] : memref<1008x384xf32, #tpu.memory_space<vmem>>, vector<128x128xf32>
    %c704 = arith.constant 704 : index
    %c0_6 = arith.constant 0 : index
    %6 = vector.load %arg3[%c704, %c0_6] : memref<1008x384xf32, #tpu.memory_space<vmem>>, vector<128x128xf32>
    %c832 = arith.constant 832 : index
    %c0_7 = arith.constant 0 : index
    %7 = vector.load %arg3[%c832, %c0_7] : memref<1008x384xf32, #tpu.memory_space<vmem>>, vector<128x128xf32>
    %c960 = arith.constant 960 : index
    %c0_8 = arith.constant 0 : index
    %8 = vector.load %arg3[%c960, %c0_8] : memref<1008x384xf32, #tpu.memory_space<vmem>>, vector<1x384xf32>
    %c968 = arith.constant 968 : index
    %c0_9 = arith.constant 0 : index
    %9 = vector.load %arg3[%c968, %c0_9] : memref<1008x384xf32, #tpu.memory_space<vmem>>, vector<1x384xf32>
    %c992 = arith.constant 992 : index
    %c0_10 = arith.constant 0 : index
    %10 = vector.load %arg3[%c992, %c0_10] : memref<1008x384xf32, #tpu.memory_space<vmem>>, vector<1x128xf32>
    %c1000 = arith.constant 1000 : index
    %c0_11 = arith.constant 0 : index
    %11 = vector.load %arg3[%c1000, %c0_11] : memref<1008x384xf32, #tpu.memory_space<vmem>>, vector<1x128xf32>
    %c976 = arith.constant 976 : index
    %c0_12 = arith.constant 0 : index
    %12 = vector.load %arg3[%c976, %c0_12] : memref<1008x384xf32, #tpu.memory_space<vmem>>, vector<1x128xf32>
    %13 = vector.shape_cast %12 : vector<1x128xf32> to vector<1x128xf32>
    %14 = vector.broadcast %13 : vector<1x128xf32> to vector<8x128xf32>
    %c984 = arith.constant 984 : index
    %c0_13 = arith.constant 0 : index
    %15 = vector.load %arg3[%c984, %c0_13] : memref<1008x384xf32, #tpu.memory_space<vmem>>, vector<1x128xf32>
    %16 = vector.shape_cast %15 : vector<1x128xf32> to vector<1x128xf32>
    %17 = vector.broadcast %16 : vector<1x128xf32> to vector<8x128xf32>
    %c0_14 = arith.constant 0 : index
    %c0_15 = arith.constant 0 : index
    %18 = vector.load %arg2[%c0_14, %c0_15] : memref<8x128xi32, #tpu.memory_space<vmem>>, vector<8x128xi32>
    %19 = tpu.iota {dimensions = array<i32: 1>} : vector<8x128xi32>
    %c32_i32 = arith.constant 32 : i32
    %20 = vector.broadcast %c32_i32 : i32 to vector<8x128xi32>
    %21 = arith.cmpi slt, %19, %20 : vector<8x128xi32>
    %c0_i32 = arith.constant 0 : i32
    %c7_i32 = arith.constant 7 : i32
    %22 = vector.broadcast %c0_i32 : i32 to vector<8x128xi32>
    %23 = vector.broadcast %c7_i32 : i32 to vector<8x128xi32>
    %24 = arith.select %21, %22, %23 : vector<8x128xi1>, vector<8x128xi32>
    %25 = arith.cmpi slt, %24, %18 : vector<8x128xi32>
    %c1_i32 = arith.constant 1 : i32
    %c6_i32 = arith.constant 6 : i32
    %26 = vector.broadcast %c1_i32 : i32 to vector<8x128xi32>
    %27 = vector.broadcast %c6_i32 : i32 to vector<8x128xi32>
    %28 = arith.select %21, %26, %27 : vector<8x128xi1>, vector<8x128xi32>
    %29 = arith.cmpi slt, %28, %18 : vector<8x128xi32>
    %c2_i32 = arith.constant 2 : i32
    %c5_i32 = arith.constant 5 : i32
    %30 = vector.broadcast %c2_i32 : i32 to vector<8x128xi32>
    %31 = vector.broadcast %c5_i32 : i32 to vector<8x128xi32>
    %32 = arith.select %21, %30, %31 : vector<8x128xi1>, vector<8x128xi32>
    %33 = arith.cmpi slt, %32, %18 : vector<8x128xi32>
    %c3_i32 = arith.constant 3 : i32
    %c4_i32 = arith.constant 4 : i32
    %34 = vector.broadcast %c3_i32 : i32 to vector<8x128xi32>
    %35 = vector.broadcast %c4_i32 : i32 to vector<8x128xi32>
    %36 = arith.select %21, %34, %35 : vector<8x128xi1>, vector<8x128xi32>
    %37 = arith.cmpi slt, %36, %18 : vector<8x128xi32>
    %c4_i32_16 = arith.constant 4 : i32
    %c3_i32_17 = arith.constant 3 : i32
    %38 = vector.broadcast %c4_i32_16 : i32 to vector<8x128xi32>
    %39 = vector.broadcast %c3_i32_17 : i32 to vector<8x128xi32>
    %40 = arith.select %21, %38, %39 : vector<8x128xi1>, vector<8x128xi32>
    %41 = arith.cmpi slt, %40, %18 : vector<8x128xi32>
    %c5_i32_18 = arith.constant 5 : i32
    %c2_i32_19 = arith.constant 2 : i32
    %42 = vector.broadcast %c5_i32_18 : i32 to vector<8x128xi32>
    %43 = vector.broadcast %c2_i32_19 : i32 to vector<8x128xi32>
    %44 = arith.select %21, %42, %43 : vector<8x128xi1>, vector<8x128xi32>
    %45 = arith.cmpi slt, %44, %18 : vector<8x128xi32>
    %c6_i32_20 = arith.constant 6 : i32
    %c1_i32_21 = arith.constant 1 : i32
    %46 = vector.broadcast %c6_i32_20 : i32 to vector<8x128xi32>
    %47 = vector.broadcast %c1_i32_21 : i32 to vector<8x128xi32>
    %48 = arith.select %21, %46, %47 : vector<8x128xi1>, vector<8x128xi32>
    %49 = arith.cmpi slt, %48, %18 : vector<8x128xi32>
    %c7_i32_22 = arith.constant 7 : i32
    %c0_i32_23 = arith.constant 0 : i32
    %50 = vector.broadcast %c7_i32_22 : i32 to vector<8x128xi32>
    %51 = vector.broadcast %c0_i32_23 : i32 to vector<8x128xi32>
    %52 = arith.select %21, %50, %51 : vector<8x128xi1>, vector<8x128xi32>
    %53 = arith.cmpi slt, %52, %18 : vector<8x128xi32>
    %c0_24 = arith.constant 0 : index
    %c0_25 = arith.constant 0 : index
    %54 = vector.load %arg1[%c0_24, %c0_25] : memref<64x64xf32, #tpu.memory_space<vmem>>, vector<64x64xf32>
    %cst = arith.constant dense<0.000000e+00> : vector<64x384xf32>
    %55 = tpu.matmul %54, %0, %cst {dimension_numbers = #tpu.dot_dimension_numbers<[1], [0], [0], [1], [0, 0, 1, 1], [], []>} : vector<64x64xf32>, vector<64x384xf32>, vector<64x384xf32> -> vector<64x384xf32>
    %56 = vector.broadcast %8 : vector<1x384xf32> to vector<64x384xf32>
    %57 = arith.addf %55, %56 : vector<64x384xf32>
    %cst_26 = arith.constant 0.000000e+00 : f32
    %58 = vector.broadcast %cst_26 : f32 to vector<8x128xf32>
    %cst_27 = arith.constant dense<0.000000e+00> : vector<8x384xf32>
    %59 = tpu.matmul %58, %3, %cst_27 {dimension_numbers = #tpu.dot_dimension_numbers<[1], [0], [0], [1], [0, 0, 1, 1], [], []>} : vector<8x128xf32>, vector<128x384xf32>, vector<8x384xf32> -> vector<8x384xf32>
    %60 = vector.extract_strided_slice %57 {offsets = [0, 0], sizes = [8, 384], strides = [1, 1]} : vector<64x384xf32> to vector<8x384xf32>
    %61 = vector.extract_strided_slice %60 {offsets = [0, 0], sizes = [8, 128], strides = [1, 1]} : vector<8x384xf32> to vector<8x128xf32>
    %62 = vector.extract_strided_slice %59 {offsets = [0, 0], sizes = [8, 128], strides = [1, 1]} : vector<8x384xf32> to vector<8x128xf32>
    %63 = arith.addf %61, %62 : vector<8x128xf32>
    %64 = arith.negf %63 : vector<8x128xf32>
    %65 = math.exp %64 : vector<8x128xf32>
    %cst_28 = arith.constant 1.000000e+00 : f32
    %66 = vector.broadcast %cst_28 : f32 to vector<8x128xf32>
    %67 = arith.addf %66, %65 : vector<8x128xf32>
    %68 = arith.divf %66, %67 : vector<8x128xf32>
    %69 = vector.extract_strided_slice %60 {offsets = [0, 128], sizes = [8, 128], strides = [1, 1]} : vector<8x384xf32> to vector<8x128xf32>
    %70 = vector.extract_strided_slice %59 {offsets = [0, 128], sizes = [8, 128], strides = [1, 1]} : vector<8x384xf32> to vector<8x128xf32>
    %71 = arith.addf %69, %70 : vector<8x128xf32>
    %72 = arith.negf %71 : vector<8x128xf32>
    %73 = math.exp %72 : vector<8x128xf32>
    %cst_29 = arith.constant 1.000000e+00 : f32
    %74 = vector.broadcast %cst_29 : f32 to vector<8x128xf32>
    %75 = arith.addf %74, %73 : vector<8x128xf32>
    %76 = arith.divf %74, %75 : vector<8x128xf32>
    %77 = vector.extract_strided_slice %60 {offsets = [0, 256], sizes = [8, 128], strides = [1, 1]} : vector<8x384xf32> to vector<8x128xf32>
    %78 = vector.extract_strided_slice %59 {offsets = [0, 256], sizes = [8, 128], strides = [1, 1]} : vector<8x384xf32> to vector<8x128xf32>
    %79 = arith.addf %78, %14 : vector<8x128xf32>
    %80 = arith.mulf %68, %79 : vector<8x128xf32>
    %81 = arith.addf %77, %80 : vector<8x128xf32>
    %82 = math.tanh %81 : vector<8x128xf32>
    %cst_30 = arith.constant 1.000000e+00 : f32
    %83 = vector.broadcast %cst_30 : f32 to vector<8x128xf32>
    %84 = arith.subf %83, %76 : vector<8x128xf32>
    %85 = arith.mulf %84, %82 : vector<8x128xf32>
    %86 = arith.mulf %76, %58 : vector<8x128xf32>
    %87 = arith.addf %85, %86 : vector<8x128xf32>
    %88 = arith.select %25, %87, %58 : vector<8x128xi1>, vector<8x128xf32>
    %c0_31 = arith.constant 0 : index
    %c0_32 = arith.constant 0 : index
    %89 = vector.load %arg5[%c0_31, %c0_32] : memref<64x128xf32, #tpu.memory_space<vmem>>, vector<8x128xf32>
    tpu.vector_store %arg5[%c0_31, %c0_32], %88 {strides = array<i32>} : memref<64x128xf32, #tpu.memory_space<vmem>>, vector<8x128xf32>,
    %cst_33 = arith.constant dense<0.000000e+00> : vector<8x384xf32>
    %90 = tpu.matmul %88, %3, %cst_33 {dimension_numbers = #tpu.dot_dimension_numbers<[1], [0], [0], [1], [0, 0, 1, 1], [], []>} : vector<8x128xf32>, vector<128x384xf32>, vector<8x384xf32> -> vector<8x384xf32>
    %91 = vector.extract_strided_slice %57 {offsets = [8, 0], sizes = [8, 384], strides = [1, 1]} : vector<64x384xf32> to vector<8x384xf32>
    %92 = vector.extract_strided_slice %91 {offsets = [0, 0], sizes = [8, 128], strides = [1, 1]} : vector<8x384xf32> to vector<8x128xf32>
    %93 = vector.extract_strided_slice %90 {offsets = [0, 0], sizes = [8, 128], strides = [1, 1]} : vector<8x384xf32> to vector<8x128xf32>
    %94 = arith.addf %92, %93 : vector<8x128xf32>
    %95 = arith.negf %94 : vector<8x128xf32>
    %96 = math.exp %95 : vector<8x128xf32>
    %cst_34 = arith.constant 1.000000e+00 : f32
    %97 = vector.broadcast %cst_34 : f32 to vector<8x128xf32>
    %98 = arith.addf %97, %96 : vector<8x128xf32>
    %99 = arith.divf %97, %98 : vector<8x128xf32>
    %100 = vector.extract_strided_slice %91 {offsets = [0, 128], sizes = [8, 128], strides = [1, 1]} : vector<8x384xf32> to vector<8x128xf32>
    %101 = vector.extract_strided_slice %90 {offsets = [0, 128], sizes = [8, 128], strides = [1, 1]} : vector<8x384xf32> to vector<8x128xf32>
    %102 = arith.addf %100, %101 : vector<8x128xf32>
    %103 = arith.negf %102 : vector<8x128xf32>
    %104 = math.exp %103 : vector<8x128xf32>
    %cst_35 = arith.constant 1.000000e+00 : f32
    %105 = vector.broadcast %cst_35 : f32 to vector<8x128xf32>
    %106 = arith.addf %105, %104 : vector<8x128xf32>
    %107 = arith.divf %105, %106 : vector<8x128xf32>
    %108 = vector.extract_strided_slice %91 {offsets = [0, 256], sizes = [8, 128], strides = [1, 1]} : vector<8x384xf32> to vector<8x128xf32>
    %109 = vector.extract_strided_slice %90 {offsets = [0, 256], sizes = [8, 128], strides = [1, 1]} : vector<8x384xf32> to vector<8x128xf32>
    %110 = arith.addf %109, %14 : vector<8x128xf32>
    %111 = arith.mulf %99, %110 : vector<8x128xf32>
    %112 = arith.addf %108, %111 : vector<8x128xf32>
    %113 = math.tanh %112 : vector<8x128xf32>
    %cst_36 = arith.constant 1.000000e+00 : f32
    %114 = vector.broadcast %cst_36 : f32 to vector<8x128xf32>
    %115 = arith.subf %114, %107 : vector<8x128xf32>
    %116 = arith.mulf %115, %113 : vector<8x128xf32>
    %117 = arith.mulf %107, %88 : vector<8x128xf32>
    %118 = arith.addf %116, %117 : vector<8x128xf32>
    %119 = arith.select %29, %118, %88 : vector<8x128xi1>, vector<8x128xf32>
    %c8 = arith.constant 8 : index
    %c0_37 = arith.constant 0 : index
    %120 = vector.load %arg5[%c8, %c0_37] : memref<64x128xf32, #tpu.memory_space<vmem>>, vector<8x128xf32>
    tpu.vector_store %arg5[%c8, %c0_37], %119 {strides = array<i32>} : memref<64x128xf32, #tpu.memory_space<vmem>>, vector<8x128xf32>,
    %cst_38 = arith.constant dense<0.000000e+00> : vector<8x384xf32>
    %121 = tpu.matmul %119, %3, %cst_38 {dimension_numbers = #tpu.dot_dimension_numbers<[1], [0], [0], [1], [0, 0, 1, 1], [], []>} : vector<8x128xf32>, vector<128x384xf32>, vector<8x384xf32> -> vector<8x384xf32>
    %122 = vector.extract_strided_slice %57 {offsets = [16, 0], sizes = [8, 384], strides = [1, 1]} : vector<64x384xf32> to vector<8x384xf32>
    %123 = vector.extract_strided_slice %122 {offsets = [0, 0], sizes = [8, 128], strides = [1, 1]} : vector<8x384xf32> to vector<8x128xf32>
    %124 = vector.extract_strided_slice %121 {offsets = [0, 0], sizes = [8, 128], strides = [1, 1]} : vector<8x384xf32> to vector<8x128xf32>
    %125 = arith.addf %123, %124 : vector<8x128xf32>
    %126 = arith.negf %125 : vector<8x128xf32>
    %127 = math.exp %126 : vector<8x128xf32>
    %cst_39 = arith.constant 1.000000e+00 : f32
    %128 = vector.broadcast %cst_39 : f32 to vector<8x128xf32>
    %129 = arith.addf %128, %127 : vector<8x128xf32>
    %130 = arith.divf %128, %129 : vector<8x128xf32>
    %131 = vector.extract_strided_slice %122 {offsets = [0, 128], sizes = [8, 128], strides = [1, 1]} : vector<8x384xf32> to vector<8x128xf32>
    %132 = vector.extract_strided_slice %121 {offsets = [0, 128], sizes = [8, 128], strides = [1, 1]} : vector<8x384xf32> to vector<8x128xf32>
    %133 = arith.addf %131, %132 : vector<8x128xf32>
    %134 = arith.negf %133 : vector<8x128xf32>
    %135 = math.exp %134 : vector<8x128xf32>
    %cst_40 = arith.constant 1.000000e+00 : f32
    %136 = vector.broadcast %cst_40 : f32 to vector<8x128xf32>
    %137 = arith.addf %136, %135 : vector<8x128xf32>
    %138 = arith.divf %136, %137 : vector<8x128xf32>
    %139 = vector.extract_strided_slice %122 {offsets = [0, 256], sizes = [8, 128], strides = [1, 1]} : vector<8x384xf32> to vector<8x128xf32>
    %140 = vector.extract_strided_slice %121 {offsets = [0, 256], sizes = [8, 128], strides = [1, 1]} : vector<8x384xf32> to vector<8x128xf32>
    %141 = arith.addf %140, %14 : vector<8x128xf32>
    %142 = arith.mulf %130, %141 : vector<8x128xf32>
    %143 = arith.addf %139, %142 : vector<8x128xf32>
    %144 = math.tanh %143 : vector<8x128xf32>
    %cst_41 = arith.constant 1.000000e+00 : f32
    %145 = vector.broadcast %cst_41 : f32 to vector<8x128xf32>
    %146 = arith.subf %145, %138 : vector<8x128xf32>
    %147 = arith.mulf %146, %144 : vector<8x128xf32>
    %148 = arith.mulf %138, %119 : vector<8x128xf32>
    %149 = arith.addf %147, %148 : vector<8x128xf32>
    %150 = arith.select %33, %149, %119 : vector<8x128xi1>, vector<8x128xf32>
    %c16 = arith.constant 16 : index
    %c0_42 = arith.constant 0 : index
    %151 = vector.load %arg5[%c16, %c0_42] : memref<64x128xf32, #tpu.memory_space<vmem>>, vector<8x128xf32>
    tpu.vector_store %arg5[%c16, %c0_42], %150 {strides = array<i32>} : memref<64x128xf32, #tpu.memory_space<vmem>>, vector<8x128xf32>,
    %cst_43 = arith.constant dense<0.000000e+00> : vector<8x384xf32>
    %152 = tpu.matmul %150, %3, %cst_43 {dimension_numbers = #tpu.dot_dimension_numbers<[1], [0], [0], [1], [0, 0, 1, 1], [], []>} : vector<8x128xf32>, vector<128x384xf32>, vector<8x384xf32> -> vector<8x384xf32>
    %153 = vector.extract_strided_slice %57 {offsets = [24, 0], sizes = [8, 384], strides = [1, 1]} : vector<64x384xf32> to vector<8x384xf32>
    %154 = vector.extract_strided_slice %153 {offsets = [0, 0], sizes = [8, 128], strides = [1, 1]} : vector<8x384xf32> to vector<8x128xf32>
    %155 = vector.extract_strided_slice %152 {offsets = [0, 0], sizes = [8, 128], strides = [1, 1]} : vector<8x384xf32> to vector<8x128xf32>
    %156 = arith.addf %154, %155 : vector<8x128xf32>
    %157 = arith.negf %156 : vector<8x128xf32>
    %158 = math.exp %157 : vector<8x128xf32>
    %cst_44 = arith.constant 1.000000e+00 : f32
    %159 = vector.broadcast %cst_44 : f32 to vector<8x128xf32>
    %160 = arith.addf %159, %158 : vector<8x128xf32>
    %161 = arith.divf %159, %160 : vector<8x128xf32>
    %162 = vector.extract_strided_slice %153 {offsets = [0, 128], sizes = [8, 128], strides = [1, 1]} : vector<8x384xf32> to vector<8x128xf32>
    %163 = vector.extract_strided_slice %152 {offsets = [0, 128], sizes = [8, 128], strides = [1, 1]} : vector<8x384xf32> to vector<8x128xf32>
    %164 = arith.addf %162, %163 : vector<8x128xf32>
    %165 = arith.negf %164 : vector<8x128xf32>
    %166 = math.exp %165 : vector<8x128xf32>
    %cst_45 = arith.constant 1.000000e+00 : f32
    %167 = vector.broadcast %cst_45 : f32 to vector<8x128xf32>
    %168 = arith.addf %167, %166 : vector<8x128xf32>
    %169 = arith.divf %167, %168 : vector<8x128xf32>
    %170 = vector.extract_strided_slice %153 {offsets = [0, 256], sizes = [8, 128], strides = [1, 1]} : vector<8x384xf32> to vector<8x128xf32>
    %171 = vector.extract_strided_slice %152 {offsets = [0, 256], sizes = [8, 128], strides = [1, 1]} : vector<8x384xf32> to vector<8x128xf32>
    %172 = arith.addf %171, %14 : vector<8x128xf32>
    %173 = arith.mulf %161, %172 : vector<8x128xf32>
    %174 = arith.addf %170, %173 : vector<8x128xf32>
    %175 = math.tanh %174 : vector<8x128xf32>
    %cst_46 = arith.constant 1.000000e+00 : f32
    %176 = vector.broadcast %cst_46 : f32 to vector<8x128xf32>
    %177 = arith.subf %176, %169 : vector<8x128xf32>
    %178 = arith.mulf %177, %175 : vector<8x128xf32>
    %179 = arith.mulf %169, %150 : vector<8x128xf32>
    %180 = arith.addf %178, %179 : vector<8x128xf32>
    %181 = arith.select %37, %180, %150 : vector<8x128xi1>, vector<8x128xf32>
    %c24 = arith.constant 24 : index
    %c0_47 = arith.constant 0 : index
    %182 = vector.load %arg5[%c24, %c0_47] : memref<64x128xf32, #tpu.memory_space<vmem>>, vector<8x128xf32>
    tpu.vector_store %arg5[%c24, %c0_47], %181 {strides = array<i32>} : memref<64x128xf32, #tpu.memory_space<vmem>>, vector<8x128xf32>,
    %cst_48 = arith.constant dense<0.000000e+00> : vector<8x384xf32>
    %183 = tpu.matmul %181, %3, %cst_48 {dimension_numbers = #tpu.dot_dimension_numbers<[1], [0], [0], [1], [0, 0, 1, 1], [], []>} : vector<8x128xf32>, vector<128x384xf32>, vector<8x384xf32> -> vector<8x384xf32>
    %184 = vector.extract_strided_slice %57 {offsets = [32, 0], sizes = [8, 384], strides = [1, 1]} : vector<64x384xf32> to vector<8x384xf32>
    %185 = vector.extract_strided_slice %184 {offsets = [0, 0], sizes = [8, 128], strides = [1, 1]} : vector<8x384xf32> to vector<8x128xf32>
    %186 = vector.extract_strided_slice %183 {offsets = [0, 0], sizes = [8, 128], strides = [1, 1]} : vector<8x384xf32> to vector<8x128xf32>
    %187 = arith.addf %185, %186 : vector<8x128xf32>
    %188 = arith.negf %187 : vector<8x128xf32>
    %189 = math.exp %188 : vector<8x128xf32>
    %cst_49 = arith.constant 1.000000e+00 : f32
    %190 = vector.broadcast %cst_49 : f32 to vector<8x128xf32>
    %191 = arith.addf %190, %189 : vector<8x128xf32>
    %192 = arith.divf %190, %191 : vector<8x128xf32>
    %193 = vector.extract_strided_slice %184 {offsets = [0, 128], sizes = [8, 128], strides = [1, 1]} : vector<8x384xf32> to vector<8x128xf32>
    %194 = vector.extract_strided_slice %183 {offsets = [0, 128], sizes = [8, 128], strides = [1, 1]} : vector<8x384xf32> to vector<8x128xf32>
    %195 = arith.addf %193, %194 : vector<8x128xf32>
    %196 = arith.negf %195 : vector<8x128xf32>
    %197 = math.exp %196 : vector<8x128xf32>
    %cst_50 = arith.constant 1.000000e+00 : f32
    %198 = vector.broadcast %cst_50 : f32 to vector<8x128xf32>
    %199 = arith.addf %198, %197 : vector<8x128xf32>
    %200 = arith.divf %198, %199 : vector<8x128xf32>
    %201 = vector.extract_strided_slice %184 {offsets = [0, 256], sizes = [8, 128], strides = [1, 1]} : vector<8x384xf32> to vector<8x128xf32>
    %202 = vector.extract_strided_slice %183 {offsets = [0, 256], sizes = [8, 128], strides = [1, 1]} : vector<8x384xf32> to vector<8x128xf32>
    %203 = arith.addf %202, %14 : vector<8x128xf32>
    %204 = arith.mulf %192, %203 : vector<8x128xf32>
    %205 = arith.addf %201, %204 : vector<8x128xf32>
    %206 = math.tanh %205 : vector<8x128xf32>
    %cst_51 = arith.constant 1.000000e+00 : f32
    %207 = vector.broadcast %cst_51 : f32 to vector<8x128xf32>
    %208 = arith.subf %207, %200 : vector<8x128xf32>
    %209 = arith.mulf %208, %206 : vector<8x128xf32>
    %210 = arith.mulf %200, %181 : vector<8x128xf32>
    %211 = arith.addf %209, %210 : vector<8x128xf32>
    %212 = arith.select %41, %211, %181 : vector<8x128xi1>, vector<8x128xf32>
    %c32 = arith.constant 32 : index
    %c0_52 = arith.constant 0 : index
    %213 = vector.load %arg5[%c32, %c0_52] : memref<64x128xf32, #tpu.memory_space<vmem>>, vector<8x128xf32>
    tpu.vector_store %arg5[%c32, %c0_52], %212 {strides = array<i32>} : memref<64x128xf32, #tpu.memory_space<vmem>>, vector<8x128xf32>,
    %cst_53 = arith.constant dense<0.000000e+00> : vector<8x384xf32>
    %214 = tpu.matmul %212, %3, %cst_53 {dimension_numbers = #tpu.dot_dimension_numbers<[1], [0], [0], [1], [0, 0, 1, 1], [], []>} : vector<8x128xf32>, vector<128x384xf32>, vector<8x384xf32> -> vector<8x384xf32>
    %215 = vector.extract_strided_slice %57 {offsets = [40, 0], sizes = [8, 384], strides = [1, 1]} : vector<64x384xf32> to vector<8x384xf32>
    %216 = vector.extract_strided_slice %215 {offsets = [0, 0], sizes = [8, 128], strides = [1, 1]} : vector<8x384xf32> to vector<8x128xf32>
    %217 = vector.extract_strided_slice %214 {offsets = [0, 0], sizes = [8, 128], strides = [1, 1]} : vector<8x384xf32> to vector<8x128xf32>
    %218 = arith.addf %216, %217 : vector<8x128xf32>
    %219 = arith.negf %218 : vector<8x128xf32>
    %220 = math.exp %219 : vector<8x128xf32>
    %cst_54 = arith.constant 1.000000e+00 : f32
    %221 = vector.broadcast %cst_54 : f32 to vector<8x128xf32>
    %222 = arith.addf %221, %220 : vector<8x128xf32>
    %223 = arith.divf %221, %222 : vector<8x128xf32>
    %224 = vector.extract_strided_slice %215 {offsets = [0, 128], sizes = [8, 128], strides = [1, 1]} : vector<8x384xf32> to vector<8x128xf32>
    %225 = vector.extract_strided_slice %214 {offsets = [0, 128], sizes = [8, 128], strides = [1, 1]} : vector<8x384xf32> to vector<8x128xf32>
    %226 = arith.addf %224, %225 : vector<8x128xf32>
    %227 = arith.negf %226 : vector<8x128xf32>
    %228 = math.exp %227 : vector<8x128xf32>
    %cst_55 = arith.constant 1.000000e+00 : f32
    %229 = vector.broadcast %cst_55 : f32 to vector<8x128xf32>
    %230 = arith.addf %229, %228 : vector<8x128xf32>
    %231 = arith.divf %229, %230 : vector<8x128xf32>
    %232 = vector.extract_strided_slice %215 {offsets = [0, 256], sizes = [8, 128], strides = [1, 1]} : vector<8x384xf32> to vector<8x128xf32>
    %233 = vector.extract_strided_slice %214 {offsets = [0, 256], sizes = [8, 128], strides = [1, 1]} : vector<8x384xf32> to vector<8x128xf32>
    %234 = arith.addf %233, %14 : vector<8x128xf32>
    %235 = arith.mulf %223, %234 : vector<8x128xf32>
    %236 = arith.addf %232, %235 : vector<8x128xf32>
    %237 = math.tanh %236 : vector<8x128xf32>
    %cst_56 = arith.constant 1.000000e+00 : f32
    %238 = vector.broadcast %cst_56 : f32 to vector<8x128xf32>
    %239 = arith.subf %238, %231 : vector<8x128xf32>
    %240 = arith.mulf %239, %237 : vector<8x128xf32>
    %241 = arith.mulf %231, %212 : vector<8x128xf32>
    %242 = arith.addf %240, %241 : vector<8x128xf32>
    %243 = arith.select %45, %242, %212 : vector<8x128xi1>, vector<8x128xf32>
    %c40 = arith.constant 40 : index
    %c0_57 = arith.constant 0 : index
    %244 = vector.load %arg5[%c40, %c0_57] : memref<64x128xf32, #tpu.memory_space<vmem>>, vector<8x128xf32>
    tpu.vector_store %arg5[%c40, %c0_57], %243 {strides = array<i32>} : memref<64x128xf32, #tpu.memory_space<vmem>>, vector<8x128xf32>,
    %cst_58 = arith.constant dense<0.000000e+00> : vector<8x384xf32>
    %245 = tpu.matmul %243, %3, %cst_58 {dimension_numbers = #tpu.dot_dimension_numbers<[1], [0], [0], [1], [0, 0, 1, 1], [], []>} : vector<8x128xf32>, vector<128x384xf32>, vector<8x384xf32> -> vector<8x384xf32>
    %246 = vector.extract_strided_slice %57 {offsets = [48, 0], sizes = [8, 384], strides = [1, 1]} : vector<64x384xf32> to vector<8x384xf32>
    %247 = vector.extract_strided_slice %246 {offsets = [0, 0], sizes = [8, 128], strides = [1, 1]} : vector<8x384xf32> to vector<8x128xf32>
    %248 = vector.extract_strided_slice %245 {offsets = [0, 0], sizes = [8, 128], strides = [1, 1]} : vector<8x384xf32> to vector<8x128xf32>
    %249 = arith.addf %247, %248 : vector<8x128xf32>
    %250 = arith.negf %249 : vector<8x128xf32>
    %251 = math.exp %250 : vector<8x128xf32>
    %cst_59 = arith.constant 1.000000e+00 : f32
    %252 = vector.broadcast %cst_59 : f32 to vector<8x128xf32>
    %253 = arith.addf %252, %251 : vector<8x128xf32>
    %254 = arith.divf %252, %253 : vector<8x128xf32>
    %255 = vector.extract_strided_slice %246 {offsets = [0, 128], sizes = [8, 128], strides = [1, 1]} : vector<8x384xf32> to vector<8x128xf32>
    %256 = vector.extract_strided_slice %245 {offsets = [0, 128], sizes = [8, 128], strides = [1, 1]} : vector<8x384xf32> to vector<8x128xf32>
    %257 = arith.addf %255, %256 : vector<8x128xf32>
    %258 = arith.negf %257 : vector<8x128xf32>
    %259 = math.exp %258 : vector<8x128xf32>
    %cst_60 = arith.constant 1.000000e+00 : f32
    %260 = vector.broadcast %cst_60 : f32 to vector<8x128xf32>
    %261 = arith.addf %260, %259 : vector<8x128xf32>
    %262 = arith.divf %260, %261 : vector<8x128xf32>
    %263 = vector.extract_strided_slice %246 {offsets = [0, 256], sizes = [8, 128], strides = [1, 1]} : vector<8x384xf32> to vector<8x128xf32>
    %264 = vector.extract_strided_slice %245 {offsets = [0, 256], sizes = [8, 128], strides = [1, 1]} : vector<8x384xf32> to vector<8x128xf32>
    %265 = arith.addf %264, %14 : vector<8x128xf32>
    %266 = arith.mulf %254, %265 : vector<8x128xf32>
    %267 = arith.addf %263, %266 : vector<8x128xf32>
    %268 = math.tanh %267 : vector<8x128xf32>
    %cst_61 = arith.constant 1.000000e+00 : f32
    %269 = vector.broadcast %cst_61 : f32 to vector<8x128xf32>
    %270 = arith.subf %269, %262 : vector<8x128xf32>
    %271 = arith.mulf %270, %268 : vector<8x128xf32>
    %272 = arith.mulf %262, %243 : vector<8x128xf32>
    %273 = arith.addf %271, %272 : vector<8x128xf32>
    %274 = arith.select %49, %273, %243 : vector<8x128xi1>, vector<8x128xf32>
    %c48 = arith.constant 48 : index
    %c0_62 = arith.constant 0 : index
    %275 = vector.load %arg5[%c48, %c0_62] : memref<64x128xf32, #tpu.memory_space<vmem>>, vector<8x128xf32>
    tpu.vector_store %arg5[%c48, %c0_62], %274 {strides = array<i32>} : memref<64x128xf32, #tpu.memory_space<vmem>>, vector<8x128xf32>,
    %cst_63 = arith.constant dense<0.000000e+00> : vector<8x384xf32>
    %276 = tpu.matmul %274, %3, %cst_63 {dimension_numbers = #tpu.dot_dimension_numbers<[1], [0], [0], [1], [0, 0, 1, 1], [], []>} : vector<8x128xf32>, vector<128x384xf32>, vector<8x384xf32> -> vector<8x384xf32>
    %277 = vector.extract_strided_slice %57 {offsets = [56, 0], sizes = [8, 384], strides = [1, 1]} : vector<64x384xf32> to vector<8x384xf32>
    %278 = vector.extract_strided_slice %277 {offsets = [0, 0], sizes = [8, 128], strides = [1, 1]} : vector<8x384xf32> to vector<8x128xf32>
    %279 = vector.extract_strided_slice %276 {offsets = [0, 0], sizes = [8, 128], strides = [1, 1]} : vector<8x384xf32> to vector<8x128xf32>
    %280 = arith.addf %278, %279 : vector<8x128xf32>
    %281 = arith.negf %280 : vector<8x128xf32>
    %282 = math.exp %281 : vector<8x128xf32>
    %cst_64 = arith.constant 1.000000e+00 : f32
    %283 = vector.broadcast %cst_64 : f32 to vector<8x128xf32>
    %284 = arith.addf %283, %282 : vector<8x128xf32>
    %285 = arith.divf %283, %284 : vector<8x128xf32>
    %286 = vector.extract_strided_slice %277 {offsets = [0, 128], sizes = [8, 128], strides = [1, 1]} : vector<8x384xf32> to vector<8x128xf32>
    %287 = vector.extract_strided_slice %276 {offsets = [0, 128], sizes = [8, 128], strides = [1, 1]} : vector<8x384xf32> to vector<8x128xf32>
    %288 = arith.addf %286, %287 : vector<8x128xf32>
    %289 = arith.negf %288 : vector<8x128xf32>
    %290 = math.exp %289 : vector<8x128xf32>
    %cst_65 = arith.constant 1.000000e+00 : f32
    %291 = vector.broadcast %cst_65 : f32 to vector<8x128xf32>
    %292 = arith.addf %291, %290 : vector<8x128xf32>
    %293 = arith.divf %291, %292 : vector<8x128xf32>
    %294 = vector.extract_strided_slice %277 {offsets = [0, 256], sizes = [8, 128], strides = [1, 1]} : vector<8x384xf32> to vector<8x128xf32>
    %295 = vector.extract_strided_slice %276 {offsets = [0, 256], sizes = [8, 128], strides = [1, 1]} : vector<8x384xf32> to vector<8x128xf32>
    %296 = arith.addf %295, %14 : vector<8x128xf32>
    %297 = arith.mulf %285, %296 : vector<8x128xf32>
    %298 = arith.addf %294, %297 : vector<8x128xf32>
    %299 = math.tanh %298 : vector<8x128xf32>
    %cst_66 = arith.constant 1.000000e+00 : f32
    %300 = vector.broadcast %cst_66 : f32 to vector<8x128xf32>
    %301 = arith.subf %300, %293 : vector<8x128xf32>
    %302 = arith.mulf %301, %299 : vector<8x128xf32>
    %303 = arith.mulf %293, %274 : vector<8x128xf32>
    %304 = arith.addf %302, %303 : vector<8x128xf32>
    %305 = arith.select %53, %304, %274 : vector<8x128xi1>, vector<8x128xf32>
    %c56 = arith.constant 56 : index
    %c0_67 = arith.constant 0 : index
    %306 = vector.load %arg5[%c56, %c0_67] : memref<64x128xf32, #tpu.memory_space<vmem>>, vector<8x128xf32>
    tpu.vector_store %arg5[%c56, %c0_67], %305 {strides = array<i32>} : memref<64x128xf32, #tpu.memory_space<vmem>>, vector<8x128xf32>,
    %c0_68 = arith.constant 0 : index
    %c0_69 = arith.constant 0 : index
    %307 = vector.load %arg5[%c0_68, %c0_69] : memref<64x128xf32, #tpu.memory_space<vmem>>, vector<64x128xf32>
    %cst_70 = arith.constant dense<0.000000e+00> : vector<64x384xf32>
    %308 = tpu.matmul %307, %1, %cst_70 {dimension_numbers = #tpu.dot_dimension_numbers<[1], [0], [0], [1], [0, 0, 1, 1], [], []>} : vector<64x128xf32>, vector<128x384xf32>, vector<64x384xf32> -> vector<64x384xf32>
    %309 = vector.broadcast %9 : vector<1x384xf32> to vector<64x384xf32>
    %310 = arith.addf %308, %309 : vector<64x384xf32>
    %cst_71 = arith.constant dense<0.000000e+00> : vector<64x384xf32>
    %311 = tpu.matmul %307, %2, %cst_71 {dimension_numbers = #tpu.dot_dimension_numbers<[1], [0], [0], [1], [0, 0, 1, 1], [], []>} : vector<64x128xf32>, vector<128x384xf32>, vector<64x384xf32> -> vector<64x384xf32>
    %cst_72 = arith.constant 0.000000e+00 : f32
    %312 = vector.broadcast %cst_72 : f32 to vector<8x128xf32>
    %cst_73 = arith.constant dense<0.000000e+00> : vector<8x384xf32>
    %313 = tpu.matmul %312, %4, %cst_73 {dimension_numbers = #tpu.dot_dimension_numbers<[1], [0], [0], [1], [0, 0, 1, 1], [], []>} : vector<8x128xf32>, vector<128x384xf32>, vector<8x384xf32> -> vector<8x384xf32>
    %314 = vector.extract_strided_slice %310 {offsets = [0, 0], sizes = [8, 384], strides = [1, 1]} : vector<64x384xf32> to vector<8x384xf32>
    %315 = vector.extract_strided_slice %311 {offsets = [56, 0], sizes = [8, 384], strides = [1, 1]} : vector<64x384xf32> to vector<8x384xf32>
    %316 = arith.addf %314, %315 : vector<8x384xf32>
    %317 = vector.extract_strided_slice %316 {offsets = [0, 0], sizes = [8, 128], strides = [1, 1]} : vector<8x384xf32> to vector<8x128xf32>
    %318 = vector.extract_strided_slice %313 {offsets = [0, 0], sizes = [8, 128], strides = [1, 1]} : vector<8x384xf32> to vector<8x128xf32>
    %319 = arith.addf %317, %318 : vector<8x128xf32>
    %320 = arith.negf %319 : vector<8x128xf32>
    %321 = math.exp %320 : vector<8x128xf32>
    %cst_74 = arith.constant 1.000000e+00 : f32
    %322 = vector.broadcast %cst_74 : f32 to vector<8x128xf32>
    %323 = arith.addf %322, %321 : vector<8x128xf32>
    %324 = arith.divf %322, %323 : vector<8x128xf32>
    %325 = vector.extract_strided_slice %316 {offsets = [0, 128], sizes = [8, 128], strides = [1, 1]} : vector<8x384xf32> to vector<8x128xf32>
    %326 = vector.extract_strided_slice %313 {offsets = [0, 128], sizes = [8, 128], strides = [1, 1]} : vector<8x384xf32> to vector<8x128xf32>
    %327 = arith.addf %325, %326 : vector<8x128xf32>
    %328 = arith.negf %327 : vector<8x128xf32>
    %329 = math.exp %328 : vector<8x128xf32>
    %cst_75 = arith.constant 1.000000e+00 : f32
    %330 = vector.broadcast %cst_75 : f32 to vector<8x128xf32>
    %331 = arith.addf %330, %329 : vector<8x128xf32>
    %332 = arith.divf %330, %331 : vector<8x128xf32>
    %333 = vector.extract_strided_slice %316 {offsets = [0, 256], sizes = [8, 128], strides = [1, 1]} : vector<8x384xf32> to vector<8x128xf32>
    %334 = vector.extract_strided_slice %313 {offsets = [0, 256], sizes = [8, 128], strides = [1, 1]} : vector<8x384xf32> to vector<8x128xf32>
    %335 = arith.addf %334, %17 : vector<8x128xf32>
    %336 = arith.mulf %324, %335 : vector<8x128xf32>
    %337 = arith.addf %333, %336 : vector<8x128xf32>
    %338 = math.tanh %337 : vector<8x128xf32>
    %cst_76 = arith.constant 1.000000e+00 : f32
    %339 = vector.broadcast %cst_76 : f32 to vector<8x128xf32>
    %340 = arith.subf %339, %332 : vector<8x128xf32>
    %341 = arith.mulf %340, %338 : vector<8x128xf32>
    %342 = arith.mulf %332, %312 : vector<8x128xf32>
    %343 = arith.addf %341, %342 : vector<8x128xf32>
    %344 = arith.select %25, %343, %312 : vector<8x128xi1>, vector<8x128xf32>
    %cst_77 = arith.constant dense<0.000000e+00> : vector<8x384xf32>
    %345 = tpu.matmul %344, %4, %cst_77 {dimension_numbers = #tpu.dot_dimension_numbers<[1], [0], [0], [1], [0, 0, 1, 1], [], []>} : vector<8x128xf32>, vector<128x384xf32>, vector<8x384xf32> -> vector<8x384xf32>
    %346 = vector.extract_strided_slice %310 {offsets = [8, 0], sizes = [8, 384], strides = [1, 1]} : vector<64x384xf32> to vector<8x384xf32>
    %347 = vector.extract_strided_slice %311 {offsets = [48, 0], sizes = [8, 384], strides = [1, 1]} : vector<64x384xf32> to vector<8x384xf32>
    %348 = arith.addf %346, %347 : vector<8x384xf32>
    %349 = vector.extract_strided_slice %348 {offsets = [0, 0], sizes = [8, 128], strides = [1, 1]} : vector<8x384xf32> to vector<8x128xf32>
    %350 = vector.extract_strided_slice %345 {offsets = [0, 0], sizes = [8, 128], strides = [1, 1]} : vector<8x384xf32> to vector<8x128xf32>
    %351 = arith.addf %349, %350 : vector<8x128xf32>
    %352 = arith.negf %351 : vector<8x128xf32>
    %353 = math.exp %352 : vector<8x128xf32>
    %cst_78 = arith.constant 1.000000e+00 : f32
    %354 = vector.broadcast %cst_78 : f32 to vector<8x128xf32>
    %355 = arith.addf %354, %353 : vector<8x128xf32>
    %356 = arith.divf %354, %355 : vector<8x128xf32>
    %357 = vector.extract_strided_slice %348 {offsets = [0, 128], sizes = [8, 128], strides = [1, 1]} : vector<8x384xf32> to vector<8x128xf32>
    %358 = vector.extract_strided_slice %345 {offsets = [0, 128], sizes = [8, 128], strides = [1, 1]} : vector<8x384xf32> to vector<8x128xf32>
    %359 = arith.addf %357, %358 : vector<8x128xf32>
    %360 = arith.negf %359 : vector<8x128xf32>
    %361 = math.exp %360 : vector<8x128xf32>
    %cst_79 = arith.constant 1.000000e+00 : f32
    %362 = vector.broadcast %cst_79 : f32 to vector<8x128xf32>
    %363 = arith.addf %362, %361 : vector<8x128xf32>
    %364 = arith.divf %362, %363 : vector<8x128xf32>
    %365 = vector.extract_strided_slice %348 {offsets = [0, 256], sizes = [8, 128], strides = [1, 1]} : vector<8x384xf32> to vector<8x128xf32>
    %366 = vector.extract_strided_slice %345 {offsets = [0, 256], sizes = [8, 128], strides = [1, 1]} : vector<8x384xf32> to vector<8x128xf32>
    %367 = arith.addf %366, %17 : vector<8x128xf32>
    %368 = arith.mulf %356, %367 : vector<8x128xf32>
    %369 = arith.addf %365, %368 : vector<8x128xf32>
    %370 = math.tanh %369 : vector<8x128xf32>
    %cst_80 = arith.constant 1.000000e+00 : f32
    %371 = vector.broadcast %cst_80 : f32 to vector<8x128xf32>
    %372 = arith.subf %371, %364 : vector<8x128xf32>
    %373 = arith.mulf %372, %370 : vector<8x128xf32>
    %374 = arith.mulf %364, %344 : vector<8x128xf32>
    %375 = arith.addf %373, %374 : vector<8x128xf32>
    %376 = arith.select %29, %375, %344 : vector<8x128xi1>, vector<8x128xf32>
    %cst_81 = arith.constant dense<0.000000e+00> : vector<8x384xf32>
    %377 = tpu.matmul %376, %4, %cst_81 {dimension_numbers = #tpu.dot_dimension_numbers<[1], [0], [0], [1], [0, 0, 1, 1], [], []>} : vector<8x128xf32>, vector<128x384xf32>, vector<8x384xf32> -> vector<8x384xf32>
    %378 = vector.extract_strided_slice %310 {offsets = [16, 0], sizes = [8, 384], strides = [1, 1]} : vector<64x384xf32> to vector<8x384xf32>
    %379 = vector.extract_strided_slice %311 {offsets = [40, 0], sizes = [8, 384], strides = [1, 1]} : vector<64x384xf32> to vector<8x384xf32>
    %380 = arith.addf %378, %379 : vector<8x384xf32>
    %381 = vector.extract_strided_slice %380 {offsets = [0, 0], sizes = [8, 128], strides = [1, 1]} : vector<8x384xf32> to vector<8x128xf32>
    %382 = vector.extract_strided_slice %377 {offsets = [0, 0], sizes = [8, 128], strides = [1, 1]} : vector<8x384xf32> to vector<8x128xf32>
    %383 = arith.addf %381, %382 : vector<8x128xf32>
    %384 = arith.negf %383 : vector<8x128xf32>
    %385 = math.exp %384 : vector<8x128xf32>
    %cst_82 = arith.constant 1.000000e+00 : f32
    %386 = vector.broadcast %cst_82 : f32 to vector<8x128xf32>
    %387 = arith.addf %386, %385 : vector<8x128xf32>
    %388 = arith.divf %386, %387 : vector<8x128xf32>
    %389 = vector.extract_strided_slice %380 {offsets = [0, 128], sizes = [8, 128], strides = [1, 1]} : vector<8x384xf32> to vector<8x128xf32>
    %390 = vector.extract_strided_slice %377 {offsets = [0, 128], sizes = [8, 128], strides = [1, 1]} : vector<8x384xf32> to vector<8x128xf32>
    %391 = arith.addf %389, %390 : vector<8x128xf32>
    %392 = arith.negf %391 : vector<8x128xf32>
    %393 = math.exp %392 : vector<8x128xf32>
    %cst_83 = arith.constant 1.000000e+00 : f32
    %394 = vector.broadcast %cst_83 : f32 to vector<8x128xf32>
    %395 = arith.addf %394, %393 : vector<8x128xf32>
    %396 = arith.divf %394, %395 : vector<8x128xf32>
    %397 = vector.extract_strided_slice %380 {offsets = [0, 256], sizes = [8, 128], strides = [1, 1]} : vector<8x384xf32> to vector<8x128xf32>
    %398 = vector.extract_strided_slice %377 {offsets = [0, 256], sizes = [8, 128], strides = [1, 1]} : vector<8x384xf32> to vector<8x128xf32>
    %399 = arith.addf %398, %17 : vector<8x128xf32>
    %400 = arith.mulf %388, %399 : vector<8x128xf32>
    %401 = arith.addf %397, %400 : vector<8x128xf32>
    %402 = math.tanh %401 : vector<8x128xf32>
    %cst_84 = arith.constant 1.000000e+00 : f32
    %403 = vector.broadcast %cst_84 : f32 to vector<8x128xf32>
    %404 = arith.subf %403, %396 : vector<8x128xf32>
    %405 = arith.mulf %404, %402 : vector<8x128xf32>
    %406 = arith.mulf %396, %376 : vector<8x128xf32>
    %407 = arith.addf %405, %406 : vector<8x128xf32>
    %408 = arith.select %33, %407, %376 : vector<8x128xi1>, vector<8x128xf32>
    %cst_85 = arith.constant dense<0.000000e+00> : vector<8x384xf32>
    %409 = tpu.matmul %408, %4, %cst_85 {dimension_numbers = #tpu.dot_dimension_numbers<[1], [0], [0], [1], [0, 0, 1, 1], [], []>} : vector<8x128xf32>, vector<128x384xf32>, vector<8x384xf32> -> vector<8x384xf32>
    %410 = vector.extract_strided_slice %310 {offsets = [24, 0], sizes = [8, 384], strides = [1, 1]} : vector<64x384xf32> to vector<8x384xf32>
    %411 = vector.extract_strided_slice %311 {offsets = [32, 0], sizes = [8, 384], strides = [1, 1]} : vector<64x384xf32> to vector<8x384xf32>
    %412 = arith.addf %410, %411 : vector<8x384xf32>
    %413 = vector.extract_strided_slice %412 {offsets = [0, 0], sizes = [8, 128], strides = [1, 1]} : vector<8x384xf32> to vector<8x128xf32>
    %414 = vector.extract_strided_slice %409 {offsets = [0, 0], sizes = [8, 128], strides = [1, 1]} : vector<8x384xf32> to vector<8x128xf32>
    %415 = arith.addf %413, %414 : vector<8x128xf32>
    %416 = arith.negf %415 : vector<8x128xf32>
    %417 = math.exp %416 : vector<8x128xf32>
    %cst_86 = arith.constant 1.000000e+00 : f32
    %418 = vector.broadcast %cst_86 : f32 to vector<8x128xf32>
    %419 = arith.addf %418, %417 : vector<8x128xf32>
    %420 = arith.divf %418, %419 : vector<8x128xf32>
    %421 = vector.extract_strided_slice %412 {offsets = [0, 128], sizes = [8, 128], strides = [1, 1]} : vector<8x384xf32> to vector<8x128xf32>
    %422 = vector.extract_strided_slice %409 {offsets = [0, 128], sizes = [8, 128], strides = [1, 1]} : vector<8x384xf32> to vector<8x128xf32>
    %423 = arith.addf %421, %422 : vector<8x128xf32>
    %424 = arith.negf %423 : vector<8x128xf32>
    %425 = math.exp %424 : vector<8x128xf32>
    %cst_87 = arith.constant 1.000000e+00 : f32
    %426 = vector.broadcast %cst_87 : f32 to vector<8x128xf32>
    %427 = arith.addf %426, %425 : vector<8x128xf32>
    %428 = arith.divf %426, %427 : vector<8x128xf32>
    %429 = vector.extract_strided_slice %412 {offsets = [0, 256], sizes = [8, 128], strides = [1, 1]} : vector<8x384xf32> to vector<8x128xf32>
    %430 = vector.extract_strided_slice %409 {offsets = [0, 256], sizes = [8, 128], strides = [1, 1]} : vector<8x384xf32> to vector<8x128xf32>
    %431 = arith.addf %430, %17 : vector<8x128xf32>
    %432 = arith.mulf %420, %431 : vector<8x128xf32>
    %433 = arith.addf %429, %432 : vector<8x128xf32>
    %434 = math.tanh %433 : vector<8x128xf32>
    %cst_88 = arith.constant 1.000000e+00 : f32
    %435 = vector.broadcast %cst_88 : f32 to vector<8x128xf32>
    %436 = arith.subf %435, %428 : vector<8x128xf32>
    %437 = arith.mulf %436, %434 : vector<8x128xf32>
    %438 = arith.mulf %428, %408 : vector<8x128xf32>
    %439 = arith.addf %437, %438 : vector<8x128xf32>
    %440 = arith.select %37, %439, %408 : vector<8x128xi1>, vector<8x128xf32>
    %cst_89 = arith.constant dense<0.000000e+00> : vector<8x384xf32>
    %441 = tpu.matmul %440, %4, %cst_89 {dimension_numbers = #tpu.dot_dimension_numbers<[1], [0], [0], [1], [0, 0, 1, 1], [], []>} : vector<8x128xf32>, vector<128x384xf32>, vector<8x384xf32> -> vector<8x384xf32>
    %442 = vector.extract_strided_slice %310 {offsets = [32, 0], sizes = [8, 384], strides = [1, 1]} : vector<64x384xf32> to vector<8x384xf32>
    %443 = vector.extract_strided_slice %311 {offsets = [24, 0], sizes = [8, 384], strides = [1, 1]} : vector<64x384xf32> to vector<8x384xf32>
    %444 = arith.addf %442, %443 : vector<8x384xf32>
    %445 = vector.extract_strided_slice %444 {offsets = [0, 0], sizes = [8, 128], strides = [1, 1]} : vector<8x384xf32> to vector<8x128xf32>
    %446 = vector.extract_strided_slice %441 {offsets = [0, 0], sizes = [8, 128], strides = [1, 1]} : vector<8x384xf32> to vector<8x128xf32>
    %447 = arith.addf %445, %446 : vector<8x128xf32>
    %448 = arith.negf %447 : vector<8x128xf32>
    %449 = math.exp %448 : vector<8x128xf32>
    %cst_90 = arith.constant 1.000000e+00 : f32
    %450 = vector.broadcast %cst_90 : f32 to vector<8x128xf32>
    %451 = arith.addf %450, %449 : vector<8x128xf32>
    %452 = arith.divf %450, %451 : vector<8x128xf32>
    %453 = vector.extract_strided_slice %444 {offsets = [0, 128], sizes = [8, 128], strides = [1, 1]} : vector<8x384xf32> to vector<8x128xf32>
    %454 = vector.extract_strided_slice %441 {offsets = [0, 128], sizes = [8, 128], strides = [1, 1]} : vector<8x384xf32> to vector<8x128xf32>
    %455 = arith.addf %453, %454 : vector<8x128xf32>
    %456 = arith.negf %455 : vector<8x128xf32>
    %457 = math.exp %456 : vector<8x128xf32>
    %cst_91 = arith.constant 1.000000e+00 : f32
    %458 = vector.broadcast %cst_91 : f32 to vector<8x128xf32>
    %459 = arith.addf %458, %457 : vector<8x128xf32>
    %460 = arith.divf %458, %459 : vector<8x128xf32>
    %461 = vector.extract_strided_slice %444 {offsets = [0, 256], sizes = [8, 128], strides = [1, 1]} : vector<8x384xf32> to vector<8x128xf32>
    %462 = vector.extract_strided_slice %441 {offsets = [0, 256], sizes = [8, 128], strides = [1, 1]} : vector<8x384xf32> to vector<8x128xf32>
    %463 = arith.addf %462, %17 : vector<8x128xf32>
    %464 = arith.mulf %452, %463 : vector<8x128xf32>
    %465 = arith.addf %461, %464 : vector<8x128xf32>
    %466 = math.tanh %465 : vector<8x128xf32>
    %cst_92 = arith.constant 1.000000e+00 : f32
    %467 = vector.broadcast %cst_92 : f32 to vector<8x128xf32>
    %468 = arith.subf %467, %460 : vector<8x128xf32>
    %469 = arith.mulf %468, %466 : vector<8x128xf32>
    %470 = arith.mulf %460, %440 : vector<8x128xf32>
    %471 = arith.addf %469, %470 : vector<8x128xf32>
    %472 = arith.select %41, %471, %440 : vector<8x128xi1>, vector<8x128xf32>
    %cst_93 = arith.constant dense<0.000000e+00> : vector<8x384xf32>
    %473 = tpu.matmul %472, %4, %cst_93 {dimension_numbers = #tpu.dot_dimension_numbers<[1], [0], [0], [1], [0, 0, 1, 1], [], []>} : vector<8x128xf32>, vector<128x384xf32>, vector<8x384xf32> -> vector<8x384xf32>
    %474 = vector.extract_strided_slice %310 {offsets = [40, 0], sizes = [8, 384], strides = [1, 1]} : vector<64x384xf32> to vector<8x384xf32>
    %475 = vector.extract_strided_slice %311 {offsets = [16, 0], sizes = [8, 384], strides = [1, 1]} : vector<64x384xf32> to vector<8x384xf32>
    %476 = arith.addf %474, %475 : vector<8x384xf32>
    %477 = vector.extract_strided_slice %476 {offsets = [0, 0], sizes = [8, 128], strides = [1, 1]} : vector<8x384xf32> to vector<8x128xf32>
    %478 = vector.extract_strided_slice %473 {offsets = [0, 0], sizes = [8, 128], strides = [1, 1]} : vector<8x384xf32> to vector<8x128xf32>
    %479 = arith.addf %477, %478 : vector<8x128xf32>
    %480 = arith.negf %479 : vector<8x128xf32>
    %481 = math.exp %480 : vector<8x128xf32>
    %cst_94 = arith.constant 1.000000e+00 : f32
    %482 = vector.broadcast %cst_94 : f32 to vector<8x128xf32>
    %483 = arith.addf %482, %481 : vector<8x128xf32>
    %484 = arith.divf %482, %483 : vector<8x128xf32>
    %485 = vector.extract_strided_slice %476 {offsets = [0, 128], sizes = [8, 128], strides = [1, 1]} : vector<8x384xf32> to vector<8x128xf32>
    %486 = vector.extract_strided_slice %473 {offsets = [0, 128], sizes = [8, 128], strides = [1, 1]} : vector<8x384xf32> to vector<8x128xf32>
    %487 = arith.addf %485, %486 : vector<8x128xf32>
    %488 = arith.negf %487 : vector<8x128xf32>
    %489 = math.exp %488 : vector<8x128xf32>
    %cst_95 = arith.constant 1.000000e+00 : f32
    %490 = vector.broadcast %cst_95 : f32 to vector<8x128xf32>
    %491 = arith.addf %490, %489 : vector<8x128xf32>
    %492 = arith.divf %490, %491 : vector<8x128xf32>
    %493 = vector.extract_strided_slice %476 {offsets = [0, 256], sizes = [8, 128], strides = [1, 1]} : vector<8x384xf32> to vector<8x128xf32>
    %494 = vector.extract_strided_slice %473 {offsets = [0, 256], sizes = [8, 128], strides = [1, 1]} : vector<8x384xf32> to vector<8x128xf32>
    %495 = arith.addf %494, %17 : vector<8x128xf32>
    %496 = arith.mulf %484, %495 : vector<8x128xf32>
    %497 = arith.addf %493, %496 : vector<8x128xf32>
    %498 = math.tanh %497 : vector<8x128xf32>
    %cst_96 = arith.constant 1.000000e+00 : f32
    %499 = vector.broadcast %cst_96 : f32 to vector<8x128xf32>
    %500 = arith.subf %499, %492 : vector<8x128xf32>
    %501 = arith.mulf %500, %498 : vector<8x128xf32>
    %502 = arith.mulf %492, %472 : vector<8x128xf32>
    %503 = arith.addf %501, %502 : vector<8x128xf32>
    %504 = arith.select %45, %503, %472 : vector<8x128xi1>, vector<8x128xf32>
    %cst_97 = arith.constant dense<0.000000e+00> : vector<8x384xf32>
    %505 = tpu.matmul %504, %4, %cst_97 {dimension_numbers = #tpu.dot_dimension_numbers<[1], [0], [0], [1], [0, 0, 1, 1], [], []>} : vector<8x128xf32>, vector<128x384xf32>, vector<8x384xf32> -> vector<8x384xf32>
    %506 = vector.extract_strided_slice %310 {offsets = [48, 0], sizes = [8, 384], strides = [1, 1]} : vector<64x384xf32> to vector<8x384xf32>
    %507 = vector.extract_strided_slice %311 {offsets = [8, 0], sizes = [8, 384], strides = [1, 1]} : vector<64x384xf32> to vector<8x384xf32>
    %508 = arith.addf %506, %507 : vector<8x384xf32>
    %509 = vector.extract_strided_slice %508 {offsets = [0, 0], sizes = [8, 128], strides = [1, 1]} : vector<8x384xf32> to vector<8x128xf32>
    %510 = vector.extract_strided_slice %505 {offsets = [0, 0], sizes = [8, 128], strides = [1, 1]} : vector<8x384xf32> to vector<8x128xf32>
    %511 = arith.addf %509, %510 : vector<8x128xf32>
    %512 = arith.negf %511 : vector<8x128xf32>
    %513 = math.exp %512 : vector<8x128xf32>
    %cst_98 = arith.constant 1.000000e+00 : f32
    %514 = vector.broadcast %cst_98 : f32 to vector<8x128xf32>
    %515 = arith.addf %514, %513 : vector<8x128xf32>
    %516 = arith.divf %514, %515 : vector<8x128xf32>
    %517 = vector.extract_strided_slice %508 {offsets = [0, 128], sizes = [8, 128], strides = [1, 1]} : vector<8x384xf32> to vector<8x128xf32>
    %518 = vector.extract_strided_slice %505 {offsets = [0, 128], sizes = [8, 128], strides = [1, 1]} : vector<8x384xf32> to vector<8x128xf32>
    %519 = arith.addf %517, %518 : vector<8x128xf32>
    %520 = arith.negf %519 : vector<8x128xf32>
    %521 = math.exp %520 : vector<8x128xf32>
    %cst_99 = arith.constant 1.000000e+00 : f32
    %522 = vector.broadcast %cst_99 : f32 to vector<8x128xf32>
    %523 = arith.addf %522, %521 : vector<8x128xf32>
    %524 = arith.divf %522, %523 : vector<8x128xf32>
    %525 = vector.extract_strided_slice %508 {offsets = [0, 256], sizes = [8, 128], strides = [1, 1]} : vector<8x384xf32> to vector<8x128xf32>
    %526 = vector.extract_strided_slice %505 {offsets = [0, 256], sizes = [8, 128], strides = [1, 1]} : vector<8x384xf32> to vector<8x128xf32>
    %527 = arith.addf %526, %17 : vector<8x128xf32>
    %528 = arith.mulf %516, %527 : vector<8x128xf32>
    %529 = arith.addf %525, %528 : vector<8x128xf32>
    %530 = math.tanh %529 : vector<8x128xf32>
    %cst_100 = arith.constant 1.000000e+00 : f32
    %531 = vector.broadcast %cst_100 : f32 to vector<8x128xf32>
    %532 = arith.subf %531, %524 : vector<8x128xf32>
    %533 = arith.mulf %532, %530 : vector<8x128xf32>
    %534 = arith.mulf %524, %504 : vector<8x128xf32>
    %535 = arith.addf %533, %534 : vector<8x128xf32>
    %536 = arith.select %49, %535, %504 : vector<8x128xi1>, vector<8x128xf32>
    %cst_101 = arith.constant dense<0.000000e+00> : vector<8x384xf32>
    %537 = tpu.matmul %536, %4, %cst_101 {dimension_numbers = #tpu.dot_dimension_numbers<[1], [0], [0], [1], [0, 0, 1, 1], [], []>} : vector<8x128xf32>, vector<128x384xf32>, vector<8x384xf32> -> vector<8x384xf32>
    %538 = vector.extract_strided_slice %310 {offsets = [56, 0], sizes = [8, 384], strides = [1, 1]} : vector<64x384xf32> to vector<8x384xf32>
    %539 = vector.extract_strided_slice %311 {offsets = [0, 0], sizes = [8, 384], strides = [1, 1]} : vector<64x384xf32> to vector<8x384xf32>
    %540 = arith.addf %538, %539 : vector<8x384xf32>
    %541 = vector.extract_strided_slice %540 {offsets = [0, 0], sizes = [8, 128], strides = [1, 1]} : vector<8x384xf32> to vector<8x128xf32>
    %542 = vector.extract_strided_slice %537 {offsets = [0, 0], sizes = [8, 128], strides = [1, 1]} : vector<8x384xf32> to vector<8x128xf32>
    %543 = arith.addf %541, %542 : vector<8x128xf32>
    %544 = arith.negf %543 : vector<8x128xf32>
    %545 = math.exp %544 : vector<8x128xf32>
    %cst_102 = arith.constant 1.000000e+00 : f32
    %546 = vector.broadcast %cst_102 : f32 to vector<8x128xf32>
    %547 = arith.addf %546, %545 : vector<8x128xf32>
    %548 = arith.divf %546, %547 : vector<8x128xf32>
    %549 = vector.extract_strided_slice %540 {offsets = [0, 128], sizes = [8, 128], strides = [1, 1]} : vector<8x384xf32> to vector<8x128xf32>
    %550 = vector.extract_strided_slice %537 {offsets = [0, 128], sizes = [8, 128], strides = [1, 1]} : vector<8x384xf32> to vector<8x128xf32>
    %551 = arith.addf %549, %550 : vector<8x128xf32>
    %552 = arith.negf %551 : vector<8x128xf32>
    %553 = math.exp %552 : vector<8x128xf32>
    %cst_103 = arith.constant 1.000000e+00 : f32
    %554 = vector.broadcast %cst_103 : f32 to vector<8x128xf32>
    %555 = arith.addf %554, %553 : vector<8x128xf32>
    %556 = arith.divf %554, %555 : vector<8x128xf32>
    %557 = vector.extract_strided_slice %540 {offsets = [0, 256], sizes = [8, 128], strides = [1, 1]} : vector<8x384xf32> to vector<8x128xf32>
    %558 = vector.extract_strided_slice %537 {offsets = [0, 256], sizes = [8, 128], strides = [1, 1]} : vector<8x384xf32> to vector<8x128xf32>
    %559 = arith.addf %558, %17 : vector<8x128xf32>
    %560 = arith.mulf %548, %559 : vector<8x128xf32>
    %561 = arith.addf %557, %560 : vector<8x128xf32>
    %562 = math.tanh %561 : vector<8x128xf32>
    %cst_104 = arith.constant 1.000000e+00 : f32
    %563 = vector.broadcast %cst_104 : f32 to vector<8x128xf32>
    %564 = arith.subf %563, %556 : vector<8x128xf32>
    %565 = arith.mulf %564, %562 : vector<8x128xf32>
    %566 = arith.mulf %556, %536 : vector<8x128xf32>
    %567 = arith.addf %565, %566 : vector<8x128xf32>
    %568 = arith.select %53, %567, %536 : vector<8x128xi1>, vector<8x128xf32>
    %cst_105 = arith.constant dense<0.000000e+00> : vector<8x128xf32>
    %569 = tpu.matmul %305, %5, %cst_105 {dimension_numbers = #tpu.dot_dimension_numbers<[1], [0], [0], [1], [0, 0, 1, 1], [], []>} : vector<8x128xf32>, vector<128x128xf32>, vector<8x128xf32> -> vector<8x128xf32>
    %cst_106 = arith.constant dense<0.000000e+00> : vector<8x128xf32>
    %570 = tpu.matmul %568, %6, %cst_106 {dimension_numbers = #tpu.dot_dimension_numbers<[1], [0], [0], [1], [0, 0, 1, 1], [], []>} : vector<8x128xf32>, vector<128x128xf32>, vector<8x128xf32> -> vector<8x128xf32>
    %571 = arith.addf %569, %570 : vector<8x128xf32>
    %572 = vector.broadcast %10 : vector<1x128xf32> to vector<8x128xf32>
    %573 = arith.addf %571, %572 : vector<8x128xf32>
    %574 = math.tanh %573 : vector<8x128xf32>
    %cst_107 = arith.constant dense<0.000000e+00> : vector<8x128xf32>
    %575 = tpu.matmul %574, %7, %cst_107 {dimension_numbers = #tpu.dot_dimension_numbers<[1], [0], [0], [1], [0, 0, 1, 1], [], []>} : vector<8x128xf32>, vector<128x128xf32>, vector<8x128xf32> -> vector<8x128xf32>
    %576 = vector.broadcast %11 : vector<1x128xf32> to vector<8x128xf32>
    %577 = arith.addf %575, %576 : vector<8x128xf32>
    %578 = arith.negf %577 : vector<8x128xf32>
    %579 = math.exp %578 : vector<8x128xf32>
    %cst_108 = arith.constant 1.000000e+00 : f32
    %580 = vector.broadcast %cst_108 : f32 to vector<8x128xf32>
    %581 = arith.addf %580, %579 : vector<8x128xf32>
    %582 = arith.divf %580, %581 : vector<8x128xf32>
    %c0_109 = arith.constant 0 : index
    %c0_110 = arith.constant 0 : index
    %583 = vector.load %arg4[%c0_109, %c0_110] : memref<8x128xf32, #tpu.memory_space<vmem>>, vector<8x128xf32>
    tpu.vector_store %arg4[%c0_109, %c0_110], %582 {strides = array<i32>} : memref<8x128xf32, #tpu.memory_space<vmem>>, vector<8x128xf32>,
    return
  }
  func.func @transform_0(%arg0: i32) -> (i32, i32) {
    %c0_i32 = arith.constant 0 : i32
    %c0_i32_0 = arith.constant 0 : i32
    return %arg0, %c0_i32 : i32, i32
  }
  func.func @transform_1(%arg0: i32) -> (i32, i32) {
    %c0_i32 = arith.constant 0 : i32
    %c0_i32_0 = arith.constant 0 : i32
    return %arg0, %c0_i32 : i32, i32
  }
  func.func @transform_2(%arg0: i32) -> (i32, i32) {
    %c0_i32 = arith.constant 0 : i32
    %c0_i32_0 = arith.constant 0 : i32
    %c0_i32_1 = arith.constant 0 : i32
    return %c0_i32, %c0_i32_0 : i32, i32
  }
  func.func @transform_3(%arg0: i32) -> (i32, i32) {
    %c0_i32 = arith.constant 0 : i32
    %c0_i32_0 = arith.constant 0 : i32
    return %arg0, %c0_i32 : i32, i32
  }
}

</mosaic_0001>

<bundles_post_ra>
// kernel: tpu_custom_call.1
= control target key start
LH: loop header
LB: loop body
LE: loop exit
PB: predicated region body
PF: predicated region fallthrough
CT: control target
= control target key end

     0   :  { %8 = vsyncpa [#allocation4], 0  ;;  %s7868_s0 = inlined_call_operand.hbm [shape: f32[64,64], index: 0, kind: input, shape index: {}]   ;;  %s7869_s1 = inlined_call_operand.hbm [shape: s32[8,128], index: 1, kind: input, shape index: {}]   ;;  %s7870_s2 = inlined_call_operand.hbm [shape: f32[1008,384], index: 2, kind: input, shape index: {}]   ;;  %s7871_s3 = inlined_call_operand.hbm [shape: f32[8,128], index: 3, kind: output, shape index: {}]  }
   0x1   :  { %9 = vsyncpa [#allocation7], 0 }
   0x2   :  { %10 = vsyncpa [#allocation5], 0  ;;  %s6678_s12 = smov [#allocation6]   ;;  %s6679_s14 = smov [#allocation3]  }
   0x3   :  { %s29_s13 = sshll.u32 %s6678_s12, 4  ;;  %s16_s15 = sshll.u32 %s6679_s14, 4  ;;  %s30_s13 = int_to_ptr.vmem [resolvable:$true] %s29_s13  ;;  %s6717_s15 = int_to_ptr.vmem [resolvable:$true] %s16_s15 }
   0x4   :  { %s6584_s18 = scalar_lea.hbm %s7869_s1, 128 }
   0x5   :  { %p6585_p0 = scmp.ne.s32.totalorder %s7869_s1, %s6584_s18  ;;  %p6588_p1 = scmp.lt.u32.totalorder %s6584_s18, %s7869_s1 }
   0x7   :  { %p6590_p2 = pnand %p6588_p1, %p6585_p0 }
   0x9   :  { %6593 = shalt.err (!%p6590_p2)
}
   0xa   :  { %s6594_s23 = scalar_lea.vmem %s30_s13, 128  ;;  %p6599_p4 = scmp.lt.s32.totalorder %s30_s13, %s30_s13 }
   0xb   :  { %p6595_p3 = scmp.ne.s32.totalorder %s30_s13, %s6594_s23  ;;  %p6600_p5 = scmp.lt.s32.totalorder %s6594_s23, %s6594_s23 }
   0xd   :  { %p6601_p6 = por %p6600_p5, %p6599_p4 }
   0xf   :  { %p6602_p7 = pnand %p6601_p6, %p6595_p3 }
  0x11   :  { %6605 = shalt.err (!%p6602_p7)
}
  0x12   :  { %32 = dma.hbm_to_vmem [thread:$0]  %s7869_s1, 128, %s30_s13, [#allocation7]  }
  0x13   :  { %s6606_s28 = scalar_lea.hbm %s7868_s0, 1024 }
  0x14   :  { %p6607_p8 = scmp.ne.s32.totalorder %s7868_s0, %s6606_s28  ;;  %p6610_p9 = scmp.lt.u32.totalorder %s6606_s28, %s7868_s0 }
  0x16   :  { %p6612_p10 = pnand %p6610_p9, %p6607_p8 }
  0x18   :  { %6615 = shalt.err (!%p6612_p10)
}
  0x19   :  { %s6616_s6 = scalar_lea.vmem %s6717_s15, 1024  ;;  %p6621_p12 = scmp.lt.s32.totalorder %s6717_s15, %s6717_s15 }
  0x1a   :  { %p6617_p11 = scmp.ne.s32.totalorder %s6717_s15, %s6616_s6  ;;  %p6622_p13 = scmp.lt.s32.totalorder %s6616_s6, %s6616_s6 }
  0x1c   :  { %p6623_p0 = por %p6622_p13, %p6621_p12 }
  0x1e   :  { %p6624_p1 = pnand %p6623_p0, %p6617_p11 }
  0x20   :  { %6627 = shalt.err (!%p6624_p1)
}
  0x21   :  { %s6680_s1 = smov 128   ;;  %s6681_s7 = smov 8  }
  0x22   :  { %22 = dma.hbm_to_vmem [thread:$0]  %s7868_s0, 1024, %s6717_s15, [#allocation4], %s6680_s1, %s6680_s1, %s6681_s7  }
  0x23   :  { %s6682_s10 = smov [#allocation8]   ;;  %s6628_s14 = scalar_lea.hbm %s7870_s2, 48384 }
  0x24   :  { %s38_s11 = sshll.u32 %s6682_s10, 4  ;;  %p6629_p2 = scmp.ne.s32.totalorder %s7870_s2, %s6628_s14  ;;  %s39_s11 = int_to_ptr.vmem [resolvable:$true] %s38_s11 }
  0x25   :  { %p6632_p3 = scmp.lt.u32.totalorder %s6628_s14, %s7870_s2 }
  0x27   :  { %p6634_p4 = pnand %p6632_p3, %p6629_p2 }
  0x29   :  { %6637 = shalt.err (!%p6634_p4)
}
  0x2a   :  { %s6638_s20 = scalar_lea.vmem %s39_s11, 48384  ;;  %p6643_p6 = scmp.lt.s32.totalorder %s39_s11, %s39_s11 }
  0x2b   :  { %p6639_p5 = scmp.ne.s32.totalorder %s39_s11, %s6638_s20  ;;  %p6644_p7 = scmp.lt.s32.totalorder %s6638_s20, %s6638_s20 }
  0x2d   :  { %p6645_p8 = por %p6644_p7, %p6643_p6 }
  0x2f   :  { %p6646_p9 = pnand %p6645_p8, %p6639_p5 }
  0x31   :  { %6649 = shalt.err (!%p6646_p9)
}
  0x32   :  { %s6683_s0 = smov 384   ;;  %s6684_s15 = smov 24  }
  0x33   :  { %44 = dma.hbm_to_vmem [thread:$0]  %s7870_s2, 48384, %s39_s11, [#allocation7], %s6683_s0, %s6683_s0, %s6684_s15  }
  0x34   :  { %6672 = dma.done.wait [#allocation4], 1024  }
  0x35   :  { %6673 = vsyncadd [#allocation4], 4294966272 }
  0x36   :  { %6674 = dma.done.wait [#allocation7], 48512  }
  0x37   :  { %6675 = vsyncadd [#allocation7], 4294918784  ;;  %v6685_v0 = vmov 0.0   ;;  %v55_v1 = vld [vmem:[#allocation8 + $0x8] sm:$0xff]  ;;  %v58_v2 = vld [vmem:[#allocation8 + $0x20] sm:$0xff]  ;;  %vm370_vm0 = vcmask 523264  }
  0x38   :  { %459 = vmatprep.mubr.f32.mxu0 %v6685_v0  ;;  %v54_v3 = vld [vmem:[#allocation8] sm:$0xff]  ;;  %v5189_v4 = vpack.c.bf16 %v58_v2, %v55_v1  ;;  %v57_v5 = vld [vmem:[#allocation8 + $0x18] sm:$0xff]  ;;  %v64_v7 = vld [vmem:[#allocation8 + $0x50] sm:$0xff]  ;;  %vm6687_vm1 = vmmov 0   ;;  %s6696_s2 = smov [#allocation9]  }
  0x39   :  { %v61_v6 = vld [vmem:[#allocation8 + $0x38] sm:$0xff]  ;;  %v5191_v8 = vpack.c.bf16 %v57_v5, %v54_v3  ;;  %v60_v10 = vld [vmem:[#allocation8 + $0x30] sm:$0xff]  ;;  %v63_v11 = vld [vmem:[#allocation8 + $0x48] sm:$0xff]  ;;  %v6686_v5 = vmov 0.0|0.0   ;;  %s3954_s23 = sshll.u32 %s6696_s2, 4  ;;  %s3955_s23 = int_to_ptr.vmem [resolvable:$true] %s3954_s23 }
  0x3a   :  { %v5193_v9 = vpack.c.bf16 %v64_v7, %v61_v6  ;;  %v67_v12 = vld [vmem:[#allocation8 + $0x68] sm:$0xff]  ;;  %5190 = vmatprep.subr.bf16.mxu0 %v5189_v4  ;;  %v70_v13 = vld [vmem:[#allocation8 + $0x80] sm:$0xff]  ;;  %v5195_v14 = vpack.c.bf16 %v63_v11, %v60_v10  ;;  %v69_v17 = vld [vmem:[#allocation8 + $0x78] sm:$0xff]  ;;  %s6650_s24 = scalar_lea.vmem %s3955_s23, 128  ;;  %p6655_p11 = scmp.lt.s32.totalorder %s3955_s23, %s3955_s23 }
  0x3b   :  { %5192 = vmatpush1.bf16.msra.mxu0 %v5191_v8  ;;  %v5197_v15 = vpack.c.bf16 %v70_v13, %v67_v12  ;;  %v66_v16 = vld [vmem:[#allocation8 + $0x60] sm:$0xff]  ;;  %v346_v18 = vld [vmem:[#allocation3] sm:$0xff]  ;;  %v76_v20 = vld [vmem:[#allocation8 + $0xb0] sm:$0xff]  ;;  %p6651_p10 = scmp.ne.s32.totalorder %s3955_s23, %s6650_s24  ;;  %p6656_p12 = scmp.lt.s32.totalorder %s6650_s24, %s6650_s24 }
  0x3c   :  { %5194 = vmatprep.subr.bf16.mxu0 %v5193_v9  ;;  %v73_v19 = vld [vmem:[#allocation8 + $0x98] sm:$0xff]  ;;  %4424 = vmatprep.mubr.msk.f32.mxu1 %vm370_vm0, %v346_v18  ;;  %v5199_v21 = vpack.c.bf16 %v69_v17, %v66_v16  ;;  %v72_v23 = vld [vmem:[#allocation8 + $0x90] sm:$0xff]  ;;  %v75_v24 = vld [vmem:[#allocation8 + $0xa8] sm:$0xff] }
  0x3d   :  { %v5201_v22 = vpack.c.bf16 %v76_v20, %v73_v19  ;;  %v175_v25 = vld [vmem:[#allocation8 + $0x3c8] sm:$0xff]  ;;  %v178_v26 = vld [vmem:[#allocation8 + $0x3e0] sm:$0xff]  ;;  %v56_v27 = vld [vmem:[#allocation8 + $0x10] sm:$0xff]  ;;  %v5203_v30 = vpack.c.bf16 %v75_v24, %v72_v23  ;;  %p6657_p13 = por %p6656_p12, %p6655_p11 }
  0x3e   :  { %v59_v28 = vld [vmem:[#allocation8 + $0x28] sm:$0xff]  ;;  %v62_v31 = vld [vmem:[#allocation8 + $0x40] sm:$0xff]  ;;  %v6762_v32 = vpack.c.bf16 %v178_v26, %v175_v25  ;;  %v177_v34 = vld [vmem:[#allocation8 + $0x3d8] sm:$0xff] }
  0x3f   :  { %5196 = vmatpush1.bf16.msra.mxu0 %v5195_v14  ;;  %v5205_v29 = vpack.c.bf16 %v59_v28, %v56_v27  ;;  %v174_v33 = vld [vmem:[#allocation8 + $0x3c0] sm:$0xff]  ;;  %v65_v35 = vld [vmem:[#allocation8 + $0x58] sm:$0xff]  ;;  %v184_v37 = vld [vmem:[#allocation8 + $0x410] sm:$0xff]  ;;  %p6658_p0 = pnand %p6657_p13, %p6651_p10 }
  0x40   :  { %5198 = vmatprep.subr.bf16.mxu0 %v5197_v15  ;;  %v181_v36 = vld [vmem:[#allocation8 + $0x3f8] sm:$0xff]  ;;  %v5209_v38 = vpack.c.bf16 %v65_v35, %v62_v31  ;;  %v68_v39 = vld [vmem:[#allocation8 + $0x70] sm:$0xff]  ;;  %v71_v40 = vld [vmem:[#allocation8 + $0x88] sm:$0xff]  ;;  %v6764_v41 = vpack.c.bf16 %v177_v34, %v174_v33 }
  0x41   :  { %5206 = vmatprep.subr.bf16.mxu1 %v5205_v29  ;;  %v180_v42 = vld [vmem:[#allocation8 + $0x3f0] sm:$0xff]  ;;  %v5213_v43 = vpack.c.bf16 %v71_v40, %v68_v39  ;;  %v6767_v44 = vpack.c.bf16 %v184_v37, %v181_v36  ;;  %v183_v45 = vld [vmem:[#allocation8 + $0x408] sm:$0xff]  ;;  %v74_v46 = vld [vmem:[#allocation8 + $0xa0] sm:$0xff] }
  0x42   :  { %5208 = vmatpush3.bf16.msra.mxu1 %v5205_v29  ;;  %v77_v47 = vld [vmem:[#allocation8 + $0xb8] sm:$0xff]  ;;  %v187_v48 = vld [vmem:[#allocation8 + $0x428] sm:$0xff]  ;;  %v190_v49 = vld [vmem:[#allocation8 + $0x440] sm:$0xff]  ;;  %v6772_v52 = vpack.c.bf16 %v183_v45, %v180_v42 }
  0x43   :  { %5200 = vmatpush1.bf16.msra.mxu0 %v5199_v21  ;;  %5210 = vmatprep.subr.bf16.mxu1 %v5209_v38  ;;  %v5217_v50 = vpack.c.bf16 %v77_v47, %v74_v46  ;;  %v347_v51 = vld [vmem:[#allocation3 + $0x8] sm:$0xff]  ;;  %v6775_v53 = vpack.c.bf16 %v190_v49, %v187_v48  ;;  %v189_v55 = vld [vmem:[#allocation8 + $0x438] sm:$0xff]  ;;  %v196_v57 = vld [vmem:[#allocation8 + $0x470] sm:$0xff] }
  0x44   :  { %5202 = vmatprep.subr.bf16.mxu0 %v5201_v22  ;;  %v186_v54 = vld [vmem:[#allocation8 + $0x420] sm:$0xff]  ;;  %v193_v56 = vld [vmem:[#allocation8 + $0x458] sm:$0xff]  ;;  %v176_v58 = vld [vmem:[#allocation8 + $0x3d0] sm:$0xff] }
  0x45   :  { %v179_v59 = vld [vmem:[#allocation8 + $0x3e8] sm:$0xff]  ;;  %v6780_v61 = vpack.c.bf16 %v189_v55, %v186_v54  ;;  %v6783_v62 = vpack.c.bf16 %v196_v57, %v193_v56  ;;  %v192_v63 = vld [vmem:[#allocation8 + $0x450] sm:$0xff]  ;;  %v202_v3 = vld [vmem:[#allocation8 + $0x4a0] sm:$0xff] }
  0x46   :  { %5212 = vmatpush3.bf16.msra.mxu1 %v5209_v38  ;;  %v348_v60 = vld [vmem:[#allocation3 + $0x10] sm:$0xff]  ;;  %v6785_v4 = vpack.c.bf16 %v179_v59, %v176_v58  ;;  %v182_v6 = vld [vmem:[#allocation8 + $0x400] sm:$0xff]  ;;  %v185_v7 = vld [vmem:[#allocation8 + $0x418] sm:$0xff] }
  0x47   :  { %5204 = vmatpush1.bf16.msra.mxu0 %v5203_v30  ;;  %5214 = vmatprep.subr.bf16.mxu1 %v5213_v43  ;;  %v195_v1 = vld [vmem:[#allocation8 + $0x468] sm:$0xff]  ;;  %v349_v8 = vld [vmem:[#allocation3 + $0x18] sm:$0xff]  ;;  %v198_v11 = vld [vmem:[#allocation8 + $0x480] sm:$0xff]  ;;  %v6798_v15 = vpack.c.bf16 %v185_v7, %v182_v6 }
  0x48   :  { %5222 = vmatprep.subr.bf16.mxu0 %v6762_v32  ;;  %v199_v2 = vld [vmem:[#allocation8 + $0x488] sm:$0xff]  ;;  %v6791_v9 = vpack.c.bf16 %v195_v1, %v192_v63  ;;  %v201_v12 = vld [vmem:[#allocation8 + $0x498] sm:$0xff]  ;;  %v208_v14 = vld [vmem:[#allocation8 + $0x4d0] sm:$0xff] }
  0x49   :  { %v6794_v10 = vpack.c.bf16 %v202_v3, %v199_v2  ;;  %v205_v13 = vld [vmem:[#allocation8 + $0x4b8] sm:$0xff]  ;;  %v188_v16 = vld [vmem:[#allocation8 + $0x430] sm:$0xff]  ;;  %v191_v17 = vld [vmem:[#allocation8 + $0x448] sm:$0xff]  ;;  %v6805_v19 = vpack.c.bf16 %v201_v12, %v198_v11 }
  0x4a   :  { %3964 = vmatmul.mubr.msk.f32.vlgmr.msra.gmra.mrb[0].mxu0 %vm370_vm0, %v346_v18  ;;  %5216 = vmatpush3.bf16.msra.mxu1 %v5213_v43  ;;  %v350_v18 = vld [vmem:[#allocation3 + $0x20] sm:$0xff]  ;;  %v6808_v20 = vpack.c.bf16 %v208_v14, %v205_v13  ;;  %v204_v21 = vld [vmem:[#allocation8 + $0x4b0] sm:$0xff]  ;;  %v207_v22 = vld [vmem:[#allocation8 + $0x4c8] sm:$0xff]  ;;  %v6812_v25 = vpack.c.bf16 %v191_v17, %v188_v16 }
  0x4b   :  { %5224 = vmatpush1.bf16.msra.mxu0 %v6764_v41  ;;  %465 = vmatprep.mubr.f32.mxu0 %v6685_v0  ;;  %v211_v23 = vld [vmem:[#allocation8 + $0x4e8] sm:$0xff]  ;;  %v214_v24 = vld [vmem:[#allocation8 + $0x500] sm:$0xff]  ;;  %v197_v27 = vld [vmem:[#allocation8 + $0x478] sm:$0xff]  ;;  %v6819_v29 = vpack.c.bf16 %v207_v22, %v204_v21 }
  0x4c   :  { %5226 = vmatprep.subr.bf16.mxu0 %v6767_v44  ;;  %5218 = vmatprep.subr.bf16.mxu1 %v5217_v50  ;;  %v194_v26 = vld [vmem:[#allocation8 + $0x460] sm:$0xff]  ;;  %v352_v30 = vld [vmem:[#allocation3 + $0x30] sm:$0xff]  ;;  %v6822_v31 = vpack.c.bf16 %v214_v24, %v211_v23  ;;  %v213_v34 = vld [vmem:[#allocation8 + $0x4f8] sm:$0xff] }
  0x4d   :  { %v351_v28 = vld [vmem:[#allocation3 + $0x28] sm:$0xff]  ;;  %v217_v35 = vld [vmem:[#allocation8 + $0x518] sm:$0xff]  ;;  %v220_v36 = vld [vmem:[#allocation8 + $0x530] sm:$0xff]  ;;  %v6826_v37 = vpack.c.bf16 %v197_v27, %v194_v26 }
  0x4e   :  { %3965 = vmatmul.mubr.msk.f32.gmra.mrb[2].mxu0 %vm370_vm0, %v347_v51  ;;  %5220 = vmatpush3.bf16.msra.mxu1 %v5217_v50  ;;  %v210_v33 = vld [vmem:[#allocation8 + $0x4e0] sm:$0xff]  ;;  %v200_v38 = vld [vmem:[#allocation8 + $0x490] sm:$0xff]  ;;  %v203_v39 = vld [vmem:[#allocation8 + $0x4a8] sm:$0xff]  ;;  %v6836_v43 = vpack.c.bf16 %v220_v36, %v217_v35 }
  0x4f   :  { %5228 = vmatpush1.bf16.msra.mxu0 %v6772_v52  ;;  %471 = vmatprep.mubr.f32.mxu0 %v6685_v0  ;;  %v6833_v40 = vpack.c.bf16 %v213_v34, %v210_v33  ;;  %v353_v42 = vld [vmem:[#allocation3 + $0x38] sm:$0xff]  ;;  %v219_v46 = vld [vmem:[#allocation8 + $0x528] sm:$0xff]  ;;  %v6840_v47 = vpack.c.bf16 %v203_v39, %v200_v38  ;;  %v206_v48 = vld [vmem:[#allocation8 + $0x4c0] sm:$0xff] }
  0x50   :  { %5230 = vmatprep.subr.bf16.mxu0 %v6775_v53  ;;  %5253 = vmatprep.subr.bf16.mxu1 %v6686_v5  ;;  %v216_v45 = vld [vmem:[#allocation8 + $0x510] sm:$0xff]  ;;  %v209_v49 = vld [vmem:[#allocation8 + $0x4d8] sm:$0xff]  ;;  %v215_v55 = vld [vmem:[#allocation8 + $0x508] sm:$0xff] }
  0x51   :  { %4425 = vmatmul.mubr.msk.f32.vlgmr.msra.gmra.mrb[0].mxu1 %vm370_vm0, %v347_v51  ;;  %v6848_v50 = vpack.c.bf16 %v219_v46, %v216_v45  ;;  %v6852_v51 = vpack.c.bf16 %v209_v49, %v206_v48  ;;  %v212_v54 = vld [vmem:[#allocation8 + $0x4f0] sm:$0xff]  ;;  %v218_v57 = vld [vmem:[#allocation8 + $0x520] sm:$0xff]  ;;  %v221_v58 = vld [vmem:[#allocation8 + $0x538] sm:$0xff] }
  0x52   :  { %3966 = vmatmul.mubr.msk.f32.gmra.mrb[4].mxu0 %vm370_vm0, %v348_v60  ;;  %5255 = vmatpush3.bf16.msra.mxu1 %v6785_v4  ;;  %v6860_v56 = vpack.c.bf16 %v215_v55, %v212_v54  ;;  %v6868_v59 = vpack.c.bf16 %v221_v58, %v218_v57  ;;  %v319_v2 = vld [vmem:[#allocation8 + $0xb40] ss:$8 sm:$0x7] }
  0x53   :  { %5232 = vmatpush1.bf16.msra.mxu0 %v6780_v61  ;;  %477 = vmatprep.mubr.f32.mxu0 %v6685_v0  ;;  %v6937_v55 = vld [vmem:[#allocation8 + $0xb70] ss:$0 sm:$0xff] }
  0x54   :  { %5234 = vmatprep.subr.bf16.mxu0 %v6783_v62  ;;  %4427 = vmatprep.mubr.msk.f32.mxu1 %vm370_vm0, %v348_v60  ;;  %v327_v60 = vlaneseq }
  0x55   :  { %5256 = vmatprep.subr.bf16.mxu1 %v6686_v5  ;;  %4428 = vmatmul.mubr.msk.f32.gmra.mrb[2].mxu1 %vm370_vm0, %v349_v8 }
  0x56   :  { %3967 = vmatmul.mubr.msk.f32.gmra.mrb[6].mxu0 %vm370_vm0, %v349_v8  ;;  %5258 = vmatpush3.bf16.msra.mxu1 %v6798_v15  ;;  %v6906_v63 = vshrl.u32 %v327_v60, 7 }
  0x57   :  { %5236 = vmatpush1.bf16.msra.mxu0 %v6791_v9  ;;  %483 = vmatprep.mubr.f32.mxu0 %v6685_v0 }
  0x58   :  { %5238 = vmatprep.subr.bf16.mxu0 %v6794_v10  ;;  %4430 = vmatprep.mubr.msk.f32.mxu1 %vm370_vm0, %v350_v18  ;;  %v365_v1 = vsub.s32 2, %v6906_v63  ;;  %v357_v27 = vsub.s32 0, %v6906_v63 }
  0x59   :  { %5259 = vmatprep.subr.bf16.mxu1 %v6686_v5  ;;  %4431 = vmatmul.mubr.msk.f32.gmra.mrb[4].mxu1 %vm370_vm0, %v351_v28 }
  0x5a   :  { %3968 = vmatmul.mubr.msk.f32.gmra.mrb[8].mxu0 %vm370_vm0, %v350_v18  ;;  %5261 = vmatpush3.bf16.msra.mxu1 %v6812_v25  ;;  %v366_v3 = vrot.slane %v319_v2, %v365_v1 }
  0x5b   :  { %5240 = vmatpush1.bf16.msra.mxu0 %v6805_v19  ;;  %489 = vmatprep.mubr.f32.mxu0 %v6685_v0 }
  0x5c   :  { %5242 = vmatprep.subr.bf16.mxu0 %v6808_v20  ;;  %4433 = vmatprep.mubr.msk.f32.mxu1 %vm370_vm0, %v352_v30 }
  0x5d   :  { %5262 = vmatprep.subr.bf16.mxu1 %v6686_v5  ;;  %4434 = vmatmul.mubr.msk.f32.gmra.mrb[6].mxu1 %vm370_vm0, %v353_v42 }
  0x5e   :  { %3969 = vmatmul.mubr.msk.f32.gmra.mrb[10].mxu0 %vm370_vm0, %v351_v28  ;;  %5264 = vmatpush3.bf16.msra.mxu1 %v6826_v37  ;;  %v361_v28 = vsub.s32 1, %v6906_v63 }
  0x5f   :  { %5244 = vmatpush1.bf16.msra.mxu0 %v6819_v29  ;;  %495 = vmatprep.mubr.f32.mxu0 %v6685_v0 }
  0x60   :  { %5246 = vmatprep.subr.bf16.mxu0 %v6822_v31  ;;  %4468 = vmatprep.mubr.msk.f32.mxu1 %vm6687_vm1, %v6685_v0  ;;  %v6933_v34 = vrot.slane %v319_v2, %v361_v28 }
  0x61   :  { %5265 = vmatprep.subr.bf16.mxu1 %v6686_v5 }
  0x62   :  { %3970 = vmatmul.mubr.msk.f32.gmra.mrb[12].mxu0 %vm370_vm0, %v352_v30  ;;  %5267 = vmatpush3.bf16.msra.mxu1 %v6840_v47  ;;  %v6929_v30 = vrot.slane %v319_v2, %v357_v27 }
  0x63   :  { %5248 = vmatpush1.bf16.msra.mxu0 %v6833_v40  ;;  %501 = vmatprep.mubr.f32.mxu0 %v6685_v0 }
  0x64   :  { %5250 = vmatprep.subr.bf16.mxu0 %v6836_v43  ;;  %5268 = vmatprep.subr.bf16.mxu1 %v6686_v5 }
  0x66   :  { %3971 = vmatmul.mubr.msk.f32.gmra.mrb[14].mxu0 %vm370_vm0, %v353_v42  ;;  %5270 = vmatpush3.bf16.msra.mxu1 %v6852_v51 }
  0x67   :  { %5252 = vmatpush1.bf16.msra.mxu0 %v6848_v50  ;;  %677 = vmatprep.mubr.f32.mxu0 %v6685_v0 }
  0x68   :  { %5278 = vmatprep.subr.bf16.mxu0 %v6762_v32  ;;  %5271 = vmatprep.subr.bf16.mxu1 %v6686_v5 }
  0x6a   :  { %678 = vmatmul.mubr.f32.vlgmr.msra.gmra.mrb[0].mxu0 %v6685_v0  ;;  %5273 = vmatpush3.bf16.msra.mxu1 %v6860_v56 }
  0x6b   :  { %5280 = vmatpush1.bf16.msra.mxu0 %v6764_v41  ;;  %842 = vmatprep.mubr.f32.mxu0 %v6685_v0 }
  0x6c   :  { %5282 = vmatprep.subr.bf16.mxu0 %v6767_v44  ;;  %5274 = vmatprep.subr.bf16.mxu1 %v6686_v5 }
  0x6e   :  { %5276 = vmatpush3.bf16.msra.mxu1 %v6868_v59 }
  0x6f   :  { %5284 = vmatpush1.bf16.msra.mxu0 %v6772_v52  ;;  %5309 = vmatprep.subr.bf16.mxu1 %v6686_v5 }
  0x70   :  { %5286 = vmatprep.subr.bf16.mxu0 %v6775_v53 }
  0x71   :  { %4469 = vmatmul.mubr.f32.vlgmr.msra.gmra.mrb[8].mxu1 %v6685_v0 }
  0x72   :  { %5311 = vmatpush3.bf16.msra.mxu1 %v6785_v4  ;;  %4503 = vmatprep.mubr.msk.f32.mxu1 %vm6687_vm1, %v6685_v0 }
  0x73   :  { %5288 = vmatpush1.bf16.msra.mxu0 %v6780_v61  ;;  %5312 = vmatprep.subr.bf16.mxu1 %v6686_v5 }
  0x74   :  { %5290 = vmatprep.subr.bf16.mxu0 %v6783_v62 }
  0x76   :  { %5314 = vmatpush3.bf16.msra.mxu1 %v6798_v15 }
  0x77   :  { %5292 = vmatpush1.bf16.msra.mxu0 %v6791_v9  ;;  %5315 = vmatprep.subr.bf16.mxu1 %v6686_v5 }
  0x78   :  { %5294 = vmatprep.subr.bf16.mxu0 %v6794_v10 }
  0x7a   :  { %5317 = vmatpush3.bf16.msra.mxu1 %v6812_v25 }
  0x7b   :  { %5296 = vmatpush1.bf16.msra.mxu0 %v6805_v19  ;;  %5318 = vmatprep.subr.bf16.mxu1 %v6686_v5 }
  0x7c   :  { %5298 = vmatprep.subr.bf16.mxu0 %v6808_v20 }
  0x7e   :  { %5320 = vmatpush3.bf16.msra.mxu1 %v6826_v37 }
  0x7f   :  { %5300 = vmatpush1.bf16.msra.mxu0 %v6819_v29  ;;  %5321 = vmatprep.subr.bf16.mxu1 %v6686_v5 }
  0x80   :  { %5302 = vmatprep.subr.bf16.mxu0 %v6822_v31 }
  0x82   :  { %5323 = vmatpush3.bf16.msra.mxu1 %v6840_v47 }
  0x83   :  { %5304 = vmatpush1.bf16.msra.mxu0 %v6833_v40  ;;  %5324 = vmatprep.subr.bf16.mxu1 %v6686_v5 }
  0x84   :  { %5306 = vmatprep.subr.bf16.mxu0 %v6836_v43 }
  0x86   :  { %5326 = vmatpush3.bf16.msra.mxu1 %v6852_v51 }
  0x87   :  { %5308 = vmatpush1.bf16.msra.mxu0 %v6848_v50  ;;  %5327 = vmatprep.subr.bf16.mxu1 %v6686_v5 }
  0x88   :  { %5334 = vmatprep.subr.bf16.mxu0 %v6762_v32 }
  0x8a   :  { %5329 = vmatpush3.bf16.msra.mxu1 %v6860_v56 }
  0x8b   :  { %5330 = vmatprep.subr.bf16.mxu1 %v6686_v5 }
  0x8e   :  { %5332 = vmatpush3.bf16.msra.mxu1 %v6868_v59 }
  0x8f   :  { %5365 = vmatprep.subr.bf16.mxu1 %v6686_v5 }
 0x124   :  { %v4426_v6 = vpop.f32.mrb[0].mxu1 }
 0x125   :  { %v6911_v7 = vadd.f32 %v4426_v6, %v366_v3  ;;  %v574_v8 = vpop.f32.mrb[1].mxu1 }
 0x126   :  { %v575_v6 = vadd.f32 %v574_v8, %v366_v3 }
 0x128   :  { %v4429_v11 = vpop.f32.mrb[2].mxu1 }
 0x129   :  { %v6913_v12 = vadd.f32 %v4429_v11, %v366_v3  ;;  %v584_v13 = vpop.f32.mrb[3].mxu1 }
 0x12a   :  { %v6915_v14 = vadd.f32 %v584_v13, %v366_v3 }
 0x12c   :  { %v4432_v16 = vpop.f32.mrb[4].mxu1 }
 0x12d   :  { %v6917_v17 = vadd.f32 %v4432_v16, %v366_v3  ;;  %v594_v18 = vpop.f32.mrb[5].mxu1  ;;  %v6940_v16 = vand.u32 127, %v327_v60 }
 0x12e   :  { %v6919_v21 = vadd.f32 %v594_v18, %v366_v3 }
 0x12f   :  { %vm329_vm2 = vcmp.lt.s32.totalorder %v6940_v16, 32 }
 0x130   :  { %v4435_v22 = vpop.f32.mrb[6].mxu1 }
 0x131   :  { %v6921_v23 = vadd.f32 %v4435_v22, %v366_v3  ;;  %v604_v24 = vpop.f32.mrb[7].mxu1 }
 0x132   :  { %v6923_v26 = vadd.f32 %v604_v24, %v366_v3  ;;  %v6943_v24 = vld [vmem:[#allocation6] sm:$0xff] }
 0x13d   :  { %v679_v33 = vpop.f32.mrb[0].mxu0 }
 0x13e   :  { %v6317_v35 = vadd.f32 %v679_v33, %v6929_v30  ;;  %v681_v36 = vpop.f32.mrb[1].mxu0  ;;  %v6688_v33 = vmov 7  }
 0x13f   :  { %v6318_v39 = vadd.f32 %v681_v36, %v6933_v34 }
 0x140   :  { %v3980_v38 = vmul.f32 -1.442695, %v6317_v35  ;;  %v330_v35 = vsel %vm329_vm2, 0, %v6688_v33 }
 0x141   :  { %v3981_v42 = vmul.f32 -1.442695, %v6318_v39  ;;  %vm6948_vm3 = vcmp.lt.s32.totalorder %v330_v35, %v6943_v24 }
 0x142   :  { %6416 = vpow2.f32 %v3980_v38 }
 0x143   :  { %6418 = vpow2.f32 %v3981_v42 }
 0x144   :  { %v750_v45 = vpop.f32.mrb[8].mxu1 }
 0x145   :  { %v4470_v46 = vpop.f32.mrb[9].mxu1  ;;  %v768_v58 = vadd.f32 %v750_v45, %v6937_v55 }
 0x14c   :  { %v6417_v48 = vpop.eup %6416 }
 0x14d   :  { %v758_v49 = vadd.f32 1.0, %v6417_v48  ;;  %v6419_v54 = vpop.eup %6418 }
 0x14e   :  { %v765_v57 = vadd.f32 1.0, %v6419_v54 }
 0x14f   :  { %6420 = vrcp.f32 %v758_v49 }
 0x150   :  { %6422 = vrcp.f32 %v765_v57 }
 0x159   :  { %v6421_v2 = vpop.eup %6420 }
 0x15a   :  { %v769_v11 = vmul.f32 %v6421_v2, %v768_v58  ;;  %v6423_v18 = vpop.eup %6422 }
 0x15b   :  { %v772_v22 = vsub.f32 1.0, %v6423_v18  ;;  %v774_v38 = vmul.f32 0.0, %v6423_v18 }
 0x15c   :  { %v770_v13 = vadd.f32 %v769_v11, %v575_v6 }
 0x15e   :  { %6424 = vtanh.f32 %v770_v13 }
 0x168   :  { %v6425_v36 = vpop.eup %6424 }
 0x169   :  { %v773_v39 = vmul.f32 %v6425_v36, %v772_v22 }
 0x16b   :  { %v6952_v60 = vadd.f32 %v774_v38, %v773_v39  ;;  %v6689_v38 = vmov 6  }
 0x16c   :  { %v7001_v39 = vsel %vm329_vm2, 1, %v6689_v38 }
 0x16d   :  { %3982 = vmatmul.mubr.msk.f32.vlgmr.msra.gmra.mrb[2].mxu0 %vm6948_vm3, %v6952_v60  ;;  %4504 = vmatmul.mubr.msk.f32.vlgmr.msra.gmra.mrb[10].mxu1 %vm6948_vm3, %v6952_v60  ;;  %vm333_vm4 = vcmp.lt.s32.totalorder %v7001_v39, %v6943_v24 }
 0x16e   :  { %5336 = vmatpush1.bf16.msra.mxu0 %v6764_v41  ;;  %5367 = vmatpush3.bf16.msra.mxu1 %v6785_v4 }
 0x16f   :  { %5338 = vmatprep.subr.bf16.mxu0 %v6767_v44  ;;  %5368 = vmatprep.subr.bf16.mxu1 %v6686_v5 }
 0x170   :  { %1007 = vmatprep.mubr.f32.mxu0 %v6685_v0  ;;  %4538 = vmatprep.mubr.msk.f32.mxu1 %vm6687_vm1, %v6685_v0 }
 0x172   :  { %5340 = vmatpush1.bf16.msra.mxu0 %v6772_v52  ;;  %5370 = vmatpush3.bf16.msra.mxu1 %v6798_v15 }
 0x173   :  { %5342 = vmatprep.subr.bf16.mxu0 %v6775_v53  ;;  %5371 = vmatprep.subr.bf16.mxu1 %v6686_v5 }
 0x176   :  { %5344 = vmatpush1.bf16.msra.mxu0 %v6780_v61  ;;  %5373 = vmatpush3.bf16.msra.mxu1 %v6812_v25 }
 0x177   :  { %5346 = vmatprep.subr.bf16.mxu0 %v6783_v62  ;;  %5374 = vmatprep.subr.bf16.mxu1 %v6686_v5 }
 0x17a   :  { %5348 = vmatpush1.bf16.msra.mxu0 %v6791_v9  ;;  %5376 = vmatpush3.bf16.msra.mxu1 %v6826_v37 }
 0x17b   :  { %5350 = vmatprep.subr.bf16.mxu0 %v6794_v10  ;;  %5377 = vmatprep.subr.bf16.mxu1 %v6686_v5 }
 0x17e   :  { %5352 = vmatpush1.bf16.msra.mxu0 %v6805_v19  ;;  %5379 = vmatpush3.bf16.msra.mxu1 %v6840_v47 }
 0x17f   :  { %5354 = vmatprep.subr.bf16.mxu0 %v6808_v20  ;;  %5380 = vmatprep.subr.bf16.mxu1 %v6686_v5 }
 0x182   :  { %5356 = vmatpush1.bf16.msra.mxu0 %v6819_v29  ;;  %5382 = vmatpush3.bf16.msra.mxu1 %v6852_v51 }
 0x183   :  { %5358 = vmatprep.subr.bf16.mxu0 %v6822_v31  ;;  %5383 = vmatprep.subr.bf16.mxu1 %v6686_v5 }
 0x186   :  { %5360 = vmatpush1.bf16.msra.mxu0 %v6833_v40  ;;  %5385 = vmatpush3.bf16.msra.mxu1 %v6860_v56 }
 0x187   :  { %5362 = vmatprep.subr.bf16.mxu0 %v6836_v43  ;;  %5386 = vmatprep.subr.bf16.mxu1 %v6686_v5 }
 0x18a   :  { %5364 = vmatpush1.bf16.msra.mxu0 %v6848_v50  ;;  %5388 = vmatpush3.bf16.msra.mxu1 %v6868_v59 }
 0x18b   :  { %5390 = vmatprep.subr.bf16.mxu0 %v6762_v32  ;;  %5421 = vmatprep.subr.bf16.mxu1 %v6686_v5 }
 0x240   :  { %v844_v8 = vpop.f32.mrb[2].mxu0  ;;  %v915_v42 = vpop.f32.mrb[10].mxu1 }
 0x241   :  { %v6319_v45 = vadd.f32 %v844_v8, %v6929_v30  ;;  %v846_v46 = vpop.f32.mrb[3].mxu0  ;;  %v4505_v48 = vpop.f32.mrb[11].mxu1  ;;  %v933_v13 = vadd.f32 %v915_v42, %v6937_v55 }
 0x242   :  { %v6320_v54 = vadd.f32 %v846_v46, %v6933_v34 }
 0x243   :  { %v3984_v49 = vmul.f32 -1.442695, %v6319_v45  ;;  %v776_v45 = vsel %vm6948_vm3, %v6952_v60, 0.0 }
 0x244   :  { %v3985_v57 = vmul.f32 -1.442695, %v6320_v54 }
 0x245   :  { %6426 = vpow2.f32 %v3984_v49 }
 0x246   :  { %6428 = vpow2.f32 %v3985_v57 }
 0x24f   :  { %v6427_v58 = vpop.eup %6426 }
 0x250   :  { %v923_v2 = vadd.f32 1.0, %v6427_v58  ;;  %v6429_v6 = vpop.eup %6428 }
 0x251   :  { %v930_v11 = vadd.f32 1.0, %v6429_v6 }
 0x252   :  { %6430 = vrcp.f32 %v923_v2 }
 0x253   :  { %6432 = vrcp.f32 %v930_v11 }
 0x25c   :  { %v6431_v18 = vpop.eup %6430 }
 0x25d   :  { %v934_v22 = vmul.f32 %v6431_v18, %v933_v13  ;;  %v6433_v35 = vpop.eup %6432 }
 0x25e   :  { %v937_v36 = vsub.f32 1.0, %v6433_v35  ;;  %v939_v42 = vmul.f32 %v6433_v35, %v776_v45 }
 0x25f   :  { %v935_v33 = vadd.f32 %v934_v22, %v6911_v7 }
 0x261   :  { %6434 = vtanh.f32 %v935_v33 }
 0x26b   :  { %v6435_v8 = vpop.eup %6434 }
 0x26c   :  { %v938_v46 = vmul.f32 %v6435_v8, %v937_v36 }
 0x26e   :  { %v940_v48 = vadd.f32 %v939_v42, %v938_v46 }
 0x270   :  { %v7011_v7 = vsel %vm333_vm4, %v940_v48, %v776_v45  ;;  %v6690_v48 = vmov 5  }
 0x271   :  { %1008 = vmatmul.mubr.f32.vlgmr.msra.gmra.mrb[4].mxu0 %v7011_v7  ;;  %4539 = vmatmul.mubr.f32.vlgmr.msra.gmra.mrb[12].mxu1 %v7011_v7 }
 0x272   :  { %5392 = vmatpush1.bf16.msra.mxu0 %v6764_v41  ;;  %5423 = vmatpush3.bf16.msra.mxu1 %v6785_v4 }
 0x273   :  { %5394 = vmatprep.subr.bf16.mxu0 %v6767_v44  ;;  %5424 = vmatprep.subr.bf16.mxu1 %v6686_v5 }
 0x274   :  { %1172 = vmatprep.mubr.f32.mxu0 %v6685_v0  ;;  %4573 = vmatprep.mubr.msk.f32.mxu1 %vm6687_vm1, %v6685_v0 }
 0x276   :  { %5396 = vmatpush1.bf16.msra.mxu0 %v6772_v52  ;;  %5426 = vmatpush3.bf16.msra.mxu1 %v6798_v15 }
 0x277   :  { %5398 = vmatprep.subr.bf16.mxu0 %v6775_v53  ;;  %5427 = vmatprep.subr.bf16.mxu1 %v6686_v5 }
 0x27a   :  { %5400 = vmatpush1.bf16.msra.mxu0 %v6780_v61  ;;  %5429 = vmatpush3.bf16.msra.mxu1 %v6812_v25 }
 0x27b   :  { %5402 = vmatprep.subr.bf16.mxu0 %v6783_v62  ;;  %5430 = vmatprep.subr.bf16.mxu1 %v6686_v5 }
 0x27e   :  { %5404 = vmatpush1.bf16.msra.mxu0 %v6791_v9  ;;  %5432 = vmatpush3.bf16.msra.mxu1 %v6826_v37 }
 0x27f   :  { %5406 = vmatprep.subr.bf16.mxu0 %v6794_v10  ;;  %5433 = vmatprep.subr.bf16.mxu1 %v6686_v5 }
 0x282   :  { %5408 = vmatpush1.bf16.msra.mxu0 %v6805_v19  ;;  %5435 = vmatpush3.bf16.msra.mxu1 %v6840_v47 }
 0x283   :  { %5410 = vmatprep.subr.bf16.mxu0 %v6808_v20  ;;  %5436 = vmatprep.subr.bf16.mxu1 %v6686_v5 }
 0x286   :  { %5412 = vmatpush1.bf16.msra.mxu0 %v6819_v29  ;;  %5438 = vmatpush3.bf16.msra.mxu1 %v6852_v51 }
 0x287   :  { %5414 = vmatprep.subr.bf16.mxu0 %v6822_v31  ;;  %5439 = vmatprep.subr.bf16.mxu1 %v6686_v5 }
 0x28a   :  { %5416 = vmatpush1.bf16.msra.mxu0 %v6833_v40  ;;  %5441 = vmatpush3.bf16.msra.mxu1 %v6860_v56 }
 0x28b   :  { %5418 = vmatprep.subr.bf16.mxu0 %v6836_v43  ;;  %5442 = vmatprep.subr.bf16.mxu1 %v6686_v5 }
 0x28e   :  { %5420 = vmatpush1.bf16.msra.mxu0 %v6848_v50  ;;  %5444 = vmatpush3.bf16.msra.mxu1 %v6868_v59 }
 0x28f   :  { %5446 = vmatprep.subr.bf16.mxu0 %v6762_v32  ;;  %5477 = vmatprep.subr.bf16.mxu1 %v6686_v5 }
 0x344   :  { %v1009_v49 = vpop.f32.mrb[4].mxu0  ;;  %v1080_v54 = vpop.f32.mrb[12].mxu1 }
 0x345   :  { %v6321_v57 = vadd.f32 %v1009_v49, %v6929_v30  ;;  %v1011_v58 = vpop.f32.mrb[5].mxu0  ;;  %v4540_v2 = vpop.f32.mrb[13].mxu1  ;;  %v1098_v36 = vadd.f32 %v1080_v54, %v6937_v55  ;;  %v7056_v49 = vsel %vm329_vm2, 2, %v6690_v48 }
 0x346   :  { %v6322_v11 = vadd.f32 %v1011_v58, %v6933_v34  ;;  %vm335_vm5 = vcmp.lt.s32.totalorder %v7056_v49, %v6943_v24 }
 0x347   :  { %v3986_v6 = vmul.f32 -1.442695, %v6321_v57 }
 0x348   :  { %v3987_v13 = vmul.f32 -1.442695, %v6322_v11 }
 0x349   :  { %6436 = vpow2.f32 %v3986_v6 }
 0x34a   :  { %6438 = vpow2.f32 %v3987_v13 }
 0x353   :  { %v6437_v18 = vpop.eup %6436 }
 0x354   :  { %v1088_v22 = vadd.f32 1.0, %v6437_v18  ;;  %v6439_v33 = vpop.eup %6438 }
 0x355   :  { %v1095_v35 = vadd.f32 1.0, %v6439_v33 }
 0x356   :  { %6440 = vrcp.f32 %v1088_v22 }
 0x357   :  { %6442 = vrcp.f32 %v1095_v35 }
 0x360   :  { %v6441_v38 = vpop.eup %6440 }
 0x361   :  { %v1099_v8 = vmul.f32 %v6441_v38, %v1098_v36  ;;  %v6443_v46 = vpop.eup %6442 }
 0x362   :  { %v1102_v42 = vsub.f32 1.0, %v6443_v46  ;;  %v1104_v2 = vmul.f32 %v6443_v46, %v7011_v7 }
 0x363   :  { %v1100_v45 = vadd.f32 %v1099_v8, %v6915_v14 }
 0x365   :  { %6444 = vtanh.f32 %v1100_v45 }
 0x36f   :  { %v6445_v57 = vpop.eup %6444 }
 0x370   :  { %v1103_v58 = vmul.f32 %v6445_v57, %v1102_v42 }
 0x372   :  { %v1105_v54 = vadd.f32 %v1104_v2, %v1103_v58 }
 0x374   :  { %v7065_v14 = vsel %vm335_vm5, %v1105_v54, %v7011_v7 }
 0x375   :  { %1173 = vmatmul.mubr.f32.vlgmr.msra.gmra.mrb[6].mxu0 %v7065_v14  ;;  %4574 = vmatmul.mubr.f32.vlgmr.msra.gmra.mrb[14].mxu1 %v7065_v14 }
 0x376   :  { %5448 = vmatpush1.bf16.msra.mxu0 %v6764_v41  ;;  %5479 = vmatpush3.bf16.msra.mxu1 %v6785_v4 }
 0x377   :  { %5450 = vmatprep.subr.bf16.mxu0 %v6767_v44  ;;  %5480 = vmatprep.subr.bf16.mxu1 %v6686_v5 }
 0x378   :  { %1337 = vmatprep.mubr.f32.mxu0 %v6685_v0  ;;  %4608 = vmatprep.mubr.msk.f32.mxu1 %vm6687_vm1, %v6685_v0 }
 0x37a   :  { %5452 = vmatpush1.bf16.msra.mxu0 %v6772_v52  ;;  %5482 = vmatpush3.bf16.msra.mxu1 %v6798_v15 }
 0x37b   :  { %5454 = vmatprep.subr.bf16.mxu0 %v6775_v53  ;;  %5483 = vmatprep.subr.bf16.mxu1 %v6686_v5 }
 0x37e   :  { %5456 = vmatpush1.bf16.msra.mxu0 %v6780_v61  ;;  %5485 = vmatpush3.bf16.msra.mxu1 %v6812_v25 }
 0x37f   :  { %5458 = vmatprep.subr.bf16.mxu0 %v6783_v62  ;;  %5486 = vmatprep.subr.bf16.mxu1 %v6686_v5 }
 0x382   :  { %5460 = vmatpush1.bf16.msra.mxu0 %v6791_v9  ;;  %5488 = vmatpush3.bf16.msra.mxu1 %v6826_v37 }
 0x383   :  { %5462 = vmatprep.subr.bf16.mxu0 %v6794_v10  ;;  %5489 = vmatprep.subr.bf16.mxu1 %v6686_v5 }
 0x386   :  { %5464 = vmatpush1.bf16.msra.mxu0 %v6805_v19  ;;  %5491 = vmatpush3.bf16.msra.mxu1 %v6840_v47 }
 0x387   :  { %5466 = vmatprep.subr.bf16.mxu0 %v6808_v20  ;;  %5492 = vmatprep.subr.bf16.mxu1 %v6686_v5 }
 0x38a   :  { %5468 = vmatpush1.bf16.msra.mxu0 %v6819_v29  ;;  %5494 = vmatpush3.bf16.msra.mxu1 %v6852_v51 }
 0x38b   :  { %5470 = vmatprep.subr.bf16.mxu0 %v6822_v31  ;;  %5495 = vmatprep.subr.bf16.mxu1 %v6686_v5 }
 0x38e   :  { %5472 = vmatpush1.bf16.msra.mxu0 %v6833_v40  ;;  %5497 = vmatpush3.bf16.msra.mxu1 %v6860_v56 }
 0x38f   :  { %5474 = vmatprep.subr.bf16.mxu0 %v6836_v43  ;;  %5498 = vmatprep.subr.bf16.mxu1 %v6686_v5 }
 0x392   :  { %5476 = vmatpush1.bf16.msra.mxu0 %v6848_v50  ;;  %5500 = vmatpush3.bf16.msra.mxu1 %v6868_v59 }
 0x393   :  { %5502 = vmatprep.subr.bf16.mxu0 %v6762_v32  ;;  %5533 = vmatprep.subr.bf16.mxu1 %v6686_v5 }
 0x448   :  { %v1174_v6 = vpop.f32.mrb[6].mxu0  ;;  %v1245_v11 = vpop.f32.mrb[14].mxu1 }
 0x449   :  { %v6323_v13 = vadd.f32 %v1174_v6, %v6929_v30  ;;  %v1176_v18 = vpop.f32.mrb[7].mxu0  ;;  %v4575_v22 = vpop.f32.mrb[15].mxu1  ;;  %v1263_v42 = vadd.f32 %v1245_v11, %v6937_v55  ;;  %v6691_v6 = vmov 4  }
 0x44a   :  { %v6324_v35 = vadd.f32 %v1176_v18, %v6933_v34 }
 0x44b   :  { %v3988_v33 = vmul.f32 -1.442695, %v6323_v13  ;;  %v7110_v13 = vsel %vm329_vm2, 3, %v6691_v6 }
 0x44c   :  { %v3989_v36 = vmul.f32 -1.442695, %v6324_v35  ;;  %vm337_vm6 = vcmp.lt.s32.totalorder %v7110_v13, %v6943_v24 }
 0x44d   :  { %6446 = vpow2.f32 %v3988_v33 }
 0x44e   :  { %6448 = vpow2.f32 %v3989_v36 }
 0x457   :  { %v6447_v38 = vpop.eup %6446 }
 0x458   :  { %v1253_v8 = vadd.f32 1.0, %v6447_v38  ;;  %v6449_v45 = vpop.eup %6448 }
 0x459   :  { %v1260_v46 = vadd.f32 1.0, %v6449_v45 }
 0x45a   :  { %6450 = vrcp.f32 %v1253_v8 }
 0x45b   :  { %6452 = vrcp.f32 %v1260_v46 }
 0x464   :  { %v6451_v48 = vpop.eup %6450 }
 0x465   :  { %v1264_v57 = vmul.f32 %v6451_v48, %v1263_v42  ;;  %v6453_v2 = vpop.eup %6452 }
 0x466   :  { %v1267_v54 = vsub.f32 1.0, %v6453_v2  ;;  %v1269_v33 = vmul.f32 %v6453_v2, %v7065_v14 }
 0x467   :  { %v1265_v58 = vadd.f32 %v1264_v57, %v6913_v12 }
 0x469   :  { %6454 = vtanh.f32 %v1265_v58 }
 0x473   :  { %v6455_v18 = vpop.eup %6454 }
 0x474   :  { %v1268_v22 = vmul.f32 %v6455_v18, %v1267_v54 }
 0x476   :  { %v1270_v11 = vadd.f32 %v1269_v33, %v1268_v22 }
 0x478   :  { %v7119_v12 = vsel %vm337_vm6, %v1270_v11, %v7065_v14 }
 0x479   :  { %1338 = vmatmul.mubr.f32.vlgmr.msra.gmra.mrb[8].mxu0 %v7119_v12  ;;  %4609 = vmatmul.mubr.f32.vlgmr.msra.gmra.mrb[16].mxu1 %v7119_v12 }
 0x47a   :  { %5504 = vmatpush1.bf16.msra.mxu0 %v6764_v41  ;;  %5535 = vmatpush3.bf16.msra.mxu1 %v6785_v4 }
 0x47b   :  { %5506 = vmatprep.subr.bf16.mxu0 %v6767_v44  ;;  %5536 = vmatprep.subr.bf16.mxu1 %v6686_v5 }
 0x47c   :  { %1502 = vmatprep.mubr.f32.mxu0 %v6685_v0  ;;  %4643 = vmatprep.mubr.msk.f32.mxu1 %vm6687_vm1, %v6685_v0 }
 0x47e   :  { %5508 = vmatpush1.bf16.msra.mxu0 %v6772_v52  ;;  %5538 = vmatpush3.bf16.msra.mxu1 %v6798_v15 }
 0x47f   :  { %5510 = vmatprep.subr.bf16.mxu0 %v6775_v53  ;;  %5539 = vmatprep.subr.bf16.mxu1 %v6686_v5 }
 0x482   :  { %5512 = vmatpush1.bf16.msra.mxu0 %v6780_v61  ;;  %5541 = vmatpush3.bf16.msra.mxu1 %v6812_v25 }
 0x483   :  { %5514 = vmatprep.subr.bf16.mxu0 %v6783_v62  ;;  %5542 = vmatprep.subr.bf16.mxu1 %v6686_v5 }
 0x486   :  { %5516 = vmatpush1.bf16.msra.mxu0 %v6791_v9  ;;  %5544 = vmatpush3.bf16.msra.mxu1 %v6826_v37 }
 0x487   :  { %5518 = vmatprep.subr.bf16.mxu0 %v6794_v10  ;;  %5545 = vmatprep.subr.bf16.mxu1 %v6686_v5 }
 0x48a   :  { %5520 = vmatpush1.bf16.msra.mxu0 %v6805_v19  ;;  %5547 = vmatpush3.bf16.msra.mxu1 %v6840_v47 }
 0x48b   :  { %5522 = vmatprep.subr.bf16.mxu0 %v6808_v20  ;;  %5548 = vmatprep.subr.bf16.mxu1 %v6686_v5 }
 0x48e   :  { %5524 = vmatpush1.bf16.msra.mxu0 %v6819_v29  ;;  %5550 = vmatpush3.bf16.msra.mxu1 %v6852_v51 }
 0x48f   :  { %5526 = vmatprep.subr.bf16.mxu0 %v6822_v31  ;;  %5551 = vmatprep.subr.bf16.mxu1 %v6686_v5 }
 0x492   :  { %5528 = vmatpush1.bf16.msra.mxu0 %v6833_v40  ;;  %5553 = vmatpush3.bf16.msra.mxu1 %v6860_v56 }
 0x493   :  { %5530 = vmatprep.subr.bf16.mxu0 %v6836_v43  ;;  %5554 = vmatprep.subr.bf16.mxu1 %v6686_v5 }
 0x496   :  { %5532 = vmatpush1.bf16.msra.mxu0 %v6848_v50  ;;  %5556 = vmatpush3.bf16.msra.mxu1 %v6868_v59 }
 0x497   :  { %5558 = vmatprep.subr.bf16.mxu0 %v6762_v32  ;;  %5589 = vmatprep.subr.bf16.mxu1 %v6686_v5 }
 0x54c   :  { %v1339_v35 = vpop.f32.mrb[8].mxu0  ;;  %v1410_v36 = vpop.f32.mrb[16].mxu1 }
 0x54d   :  { %v6325_v38 = vadd.f32 %v1339_v35, %v6929_v30  ;;  %v1341_v8 = vpop.f32.mrb[9].mxu0  ;;  %v4610_v45 = vpop.f32.mrb[17].mxu1  ;;  %v1428_v6 = vadd.f32 %v1410_v36, %v6937_v55 }
 0x54e   :  { %v6326_v42 = vadd.f32 %v1341_v8, %v6933_v34 }
 0x54f   :  { %v3990_v46 = vmul.f32 -1.442695, %v6325_v38  ;;  %v6692_v38 = vmov 3  }
 0x550   :  { %v3991_v48 = vmul.f32 -1.442695, %v6326_v42  ;;  %v7164_v8 = vsel %vm329_vm2, 4, %v6692_v38 }
 0x551   :  { %6456 = vpow2.f32 %v3990_v46  ;;  %vm339_vm7 = vcmp.lt.s32.totalorder %v7164_v8, %v6943_v24 }
 0x552   :  { %6458 = vpow2.f32 %v3991_v48 }
 0x55b   :  { %v6457_v57 = vpop.eup %6456 }
 0x55c   :  { %v1418_v58 = vadd.f32 1.0, %v6457_v57  ;;  %v6459_v2 = vpop.eup %6458 }
 0x55d   :  { %v1425_v54 = vadd.f32 1.0, %v6459_v2 }
 0x55e   :  { %6460 = vrcp.f32 %v1418_v58 }
 0x55f   :  { %6462 = vrcp.f32 %v1425_v54 }
 0x568   :  { %v6461_v18 = vpop.eup %6460 }
 0x569   :  { %v1429_v22 = vmul.f32 %v6461_v18, %v1428_v6  ;;  %v6463_v11 = vpop.eup %6462 }
 0x56a   :  { %v1432_v35 = vsub.f32 1.0, %v6463_v11  ;;  %v1434_v42 = vmul.f32 %v6463_v11, %v7119_v12 }
 0x56b   :  { %v1430_v33 = vadd.f32 %v1429_v22, %v6919_v21 }
 0x56d   :  { %6464 = vtanh.f32 %v1430_v33 }
 0x577   :  { %v6465_v45 = vpop.eup %6464 }
 0x578   :  { %v1433_v46 = vmul.f32 %v6465_v45, %v1432_v35 }
 0x57a   :  { %v1435_v36 = vadd.f32 %v1434_v42, %v1433_v46 }
 0x57c   :  { %v7173_v21 = vsel %vm339_vm7, %v1435_v36, %v7119_v12 }
 0x57d   :  { %1503 = vmatmul.mubr.f32.vlgmr.msra.gmra.mrb[10].mxu0 %v7173_v21  ;;  %4644 = vmatmul.mubr.f32.vlgmr.msra.gmra.mrb[18].mxu1 %v7173_v21 }
 0x57e   :  { %5560 = vmatpush1.bf16.msra.mxu0 %v6764_v41  ;;  %5591 = vmatpush3.bf16.msra.mxu1 %v6785_v4 }
 0x57f   :  { %5562 = vmatprep.subr.bf16.mxu0 %v6767_v44  ;;  %5592 = vmatprep.subr.bf16.mxu1 %v6686_v5 }
 0x580   :  { %1667 = vmatprep.mubr.f32.mxu0 %v6685_v0  ;;  %4678 = vmatprep.mubr.msk.f32.mxu1 %vm6687_vm1, %v6685_v0 }
 0x582   :  { %5564 = vmatpush1.bf16.msra.mxu0 %v6772_v52  ;;  %5594 = vmatpush3.bf16.msra.mxu1 %v6798_v15 }
 0x583   :  { %5566 = vmatprep.subr.bf16.mxu0 %v6775_v53  ;;  %5595 = vmatprep.subr.bf16.mxu1 %v6686_v5 }
 0x586   :  { %5568 = vmatpush1.bf16.msra.mxu0 %v6780_v61  ;;  %5597 = vmatpush3.bf16.msra.mxu1 %v6812_v25 }
 0x587   :  { %5570 = vmatprep.subr.bf16.mxu0 %v6783_v62  ;;  %5598 = vmatprep.subr.bf16.mxu1 %v6686_v5 }
 0x58a   :  { %5572 = vmatpush1.bf16.msra.mxu0 %v6791_v9  ;;  %5600 = vmatpush3.bf16.msra.mxu1 %v6826_v37 }
 0x58b   :  { %5574 = vmatprep.subr.bf16.mxu0 %v6794_v10  ;;  %5601 = vmatprep.subr.bf16.mxu1 %v6686_v5 }
 0x58e   :  { %5576 = vmatpush1.bf16.msra.mxu0 %v6805_v19  ;;  %5603 = vmatpush3.bf16.msra.mxu1 %v6840_v47 }
 0x58f   :  { %5578 = vmatprep.subr.bf16.mxu0 %v6808_v20  ;;  %5604 = vmatprep.subr.bf16.mxu1 %v6686_v5 }
 0x592   :  { %5580 = vmatpush1.bf16.msra.mxu0 %v6819_v29  ;;  %5606 = vmatpush3.bf16.msra.mxu1 %v6852_v51 }
 0x593   :  { %5582 = vmatprep.subr.bf16.mxu0 %v6822_v31  ;;  %5607 = vmatprep.subr.bf16.mxu1 %v6686_v5 }
 0x596   :  { %5584 = vmatpush1.bf16.msra.mxu0 %v6833_v40  ;;  %5609 = vmatpush3.bf16.msra.mxu1 %v6860_v56 }
 0x597   :  { %5586 = vmatprep.subr.bf16.mxu0 %v6836_v43  ;;  %5610 = vmatprep.subr.bf16.mxu1 %v6686_v5 }
 0x59a   :  { %5588 = vmatpush1.bf16.msra.mxu0 %v6848_v50  ;;  %5612 = vmatpush3.bf16.msra.mxu1 %v6868_v59 }
 0x59b   :  { %5614 = vmatprep.subr.bf16.mxu0 %v6762_v32  ;;  %5645 = vmatprep.subr.bf16.mxu1 %v6686_v5 }
 0x650   :  { %v1504_v48 = vpop.f32.mrb[10].mxu0  ;;  %v1575_v57 = vpop.f32.mrb[18].mxu1 }
 0x651   :  { %v6327_v58 = vadd.f32 %v1504_v48, %v6929_v30  ;;  %v1506_v2 = vpop.f32.mrb[11].mxu0  ;;  %v4645_v54 = vpop.f32.mrb[19].mxu1  ;;  %v1593_v32 = vadd.f32 %v1575_v57, %v6937_v55 }
 0x652   :  { %v6328_v18 = vadd.f32 %v1506_v2, %v6933_v34 }
 0x653   :  { %v3992_v6 = vmul.f32 -1.442695, %v6327_v58  ;;  %v6693_v58 = vmov 2  }
 0x654   :  { %v3993_v22 = vmul.f32 -1.442695, %v6328_v18  ;;  %v7218_v2 = vsel %vm329_vm2, 5, %v6693_v58 }
 0x655   :  { %6466 = vpow2.f32 %v3992_v6  ;;  %vm341_vm8 = vcmp.lt.s32.totalorder %v7218_v2, %v6943_v24 }
 0x656   :  { %6468 = vpow2.f32 %v3993_v22 }
 0x65f   :  { %v6467_v33 = vpop.eup %6466 }
 0x660   :  { %v1583_v11 = vadd.f32 1.0, %v6467_v33  ;;  %v6469_v35 = vpop.eup %6468  ;;  %v6694_v33 = vmov 1  }
 0x661   :  { %v1590_v38 = vadd.f32 1.0, %v6469_v35 }
 0x662   :  { %6470 = vrcp.f32 %v1583_v11  ;;  %v7270_v11 = vsel %vm329_vm2, 6, %v6694_v33 }
 0x663   :  { %6472 = vrcp.f32 %v1590_v38  ;;  %v78_v38 = vld [vmem:[#allocation8 + $0xc0] sm:$0xff]  ;;  %vm343_vm9 = vcmp.lt.s32.totalorder %v7270_v11, %v6943_v24  ;;  %v276_v11 = vld [vmem:[#allocation8 + $0x750] sm:$0xff] }
 0x66c   :  { %v6471_v45 = vpop.eup %6470 }
 0x66d   :  { %v1594_v46 = vmul.f32 %v6471_v45, %v1593_v32  ;;  %v6473_v36 = vpop.eup %6472  ;;  %v81_v32 = vld [vmem:[#allocation8 + $0xd8] sm:$0xff] }
 0x66e   :  { %v1597_v48 = vsub.f32 1.0, %v6473_v36  ;;  %v1599_v18 = vmul.f32 %v6473_v36, %v7173_v21  ;;  %v89_v36 = vld [vmem:[#allocation8 + $0x118] sm:$0xff]  ;;  %v5671_v58 = vpack.c.bf16 %v81_v32, %v78_v38  ;;  %v102_v38 = vld [vmem:[#allocation8 + $0x180] sm:$0xff] }
 0x66f   :  { %v1595_v42 = vadd.f32 %v1594_v46, %v6917_v17  ;;  %v105_v32 = vld [vmem:[#allocation8 + $0x198] sm:$0xff] }
 0x671   :  { %6474 = vtanh.f32 %v1595_v42  ;;  %v88_v42 = vld [vmem:[#allocation8 + $0x110] sm:$0xff] }
 0x67b   :  { %v6475_v54 = vpop.eup %6474 }
 0x67c   :  { %v1598_v6 = vmul.f32 %v6475_v54, %v1597_v48 }
 0x67e   :  { %v1600_v57 = vadd.f32 %v1599_v18, %v1598_v6  ;;  %v84_v6 = vld [vmem:[#allocation8 + $0xf0] sm:$0xff]  ;;  %v87_v18 = vld [vmem:[#allocation8 + $0x108] sm:$0xff] }
 0x680   :  { %v7227_v17 = vsel %vm341_vm8, %v1600_v57, %v7173_v21  ;;  %v91_v57 = vld [vmem:[#allocation8 + $0x128] sm:$0xff] }
 0x681   :  { %1668 = vmatmul.mubr.f32.vlgmr.msra.gmra.mrb[12].mxu0 %v7227_v17  ;;  %4679 = vmatmul.mubr.f32.vlgmr.msra.gmra.mrb[20].mxu1 %v7227_v17 }
 0x682   :  { %5616 = vmatpush1.bf16.msra.mxu0 %v6764_v41  ;;  %5647 = vmatpush3.bf16.msra.mxu1 %v6785_v4  ;;  %v79_v41 = vld [vmem:[#allocation8 + $0xc8] sm:$0xff] }
 0x683   :  { %5618 = vmatprep.subr.bf16.mxu0 %v6767_v44  ;;  %5648 = vmatprep.subr.bf16.mxu1 %v6686_v5  ;;  %v82_v44 = vld [vmem:[#allocation8 + $0xe0] sm:$0xff] }
 0x684   :  { %1832 = vmatprep.mubr.f32.mxu0 %v6685_v0  ;;  %4713 = vmatprep.mubr.msk.f32.mxu1 %vm6687_vm1, %v6685_v0 }
 0x686   :  { %5620 = vmatpush1.bf16.msra.mxu0 %v6772_v52  ;;  %5650 = vmatpush3.bf16.msra.mxu1 %v6798_v15  ;;  %v80_v52 = vld [vmem:[#allocation8 + $0xd0] sm:$0xff] }
 0x687   :  { %5622 = vmatprep.subr.bf16.mxu0 %v6775_v53  ;;  %5651 = vmatprep.subr.bf16.mxu1 %v6686_v5  ;;  %v5669_v53 = vpack.c.bf16 %v82_v44, %v79_v41 }
 0x68a   :  { %5624 = vmatpush1.bf16.msra.mxu0 %v6780_v61  ;;  %5653 = vmatpush3.bf16.msra.mxu1 %v6812_v25  ;;  %v83_v61 = vld [vmem:[#allocation8 + $0xe8] sm:$0xff] }
 0x68b   :  { %5626 = vmatprep.subr.bf16.mxu0 %v6783_v62  ;;  %5654 = vmatprep.subr.bf16.mxu1 %v6686_v5  ;;  %v5701_v62 = vpack.c.bf16 %v83_v61, %v80_v52  ;;  %v94_v52 = vld [vmem:[#allocation8 + $0x140] sm:$0xff]  ;;  %v95_v61 = vld [vmem:[#allocation8 + $0x148] sm:$0xff] }
 0x68e   :  { %5628 = vmatpush1.bf16.msra.mxu0 %v6791_v9  ;;  %5656 = vmatpush3.bf16.msra.mxu1 %v6826_v37 }
 0x68f   :  { %5630 = vmatprep.subr.bf16.mxu0 %v6794_v10  ;;  %5657 = vmatprep.subr.bf16.mxu1 %v6686_v5 }
 0x692   :  { %5632 = vmatpush1.bf16.msra.mxu0 %v6805_v19  ;;  %5659 = vmatpush3.bf16.msra.mxu1 %v6840_v47 }
 0x693   :  { %5634 = vmatprep.subr.bf16.mxu0 %v6808_v20  ;;  %5660 = vmatprep.subr.bf16.mxu1 %v6686_v5 }
 0x696   :  { %5636 = vmatpush1.bf16.msra.mxu0 %v6819_v29  ;;  %5662 = vmatpush3.bf16.msra.mxu1 %v6852_v51 }
 0x697   :  { %5638 = vmatprep.subr.bf16.mxu0 %v6822_v31  ;;  %5663 = vmatprep.subr.bf16.mxu1 %v6686_v5 }
 0x69a   :  { %5640 = vmatpush1.bf16.msra.mxu0 %v6833_v40  ;;  %5665 = vmatpush3.bf16.msra.mxu1 %v6860_v56 }
 0x69b   :  { %5642 = vmatprep.subr.bf16.mxu0 %v6836_v43  ;;  %5666 = vmatprep.subr.bf16.mxu1 %v6686_v5 }
 0x69e   :  { %5644 = vmatpush1.bf16.msra.mxu0 %v6848_v50  ;;  %5668 = vmatpush3.bf16.msra.mxu1 %v6868_v59 }
 0x69f   :  { %5670 = vmatprep.subr.bf16.mxu0 %v5669_v53  ;;  %5702 = vmatprep.subr.bf16.mxu1 %v5701_v62  ;;  %v92_v53 = vld [vmem:[#allocation8 + $0x130] sm:$0xff] }
 0x754   :  { %v1669_v4 = vpop.f32.mrb[12].mxu0  ;;  %v1740_v9 = vpop.f32.mrb[20].mxu1 }
 0x755   :  { %v6329_v10 = vadd.f32 %v1669_v4, %v6929_v30  ;;  %v1671_v15 = vpop.f32.mrb[13].mxu0  ;;  %v4680_v19 = vpop.f32.mrb[21].mxu1  ;;  %v1758_v47 = vadd.f32 %v1740_v9, %v6937_v55  ;;  %v85_v55 = vld [vmem:[#allocation8 + $0xf8] sm:$0xff]  ;;  %v5675_v4 = vpack.c.bf16 %v87_v18, %v84_v6  ;;  %v5677_v9 = vpack.c.bf16 %v94_v52, %v91_v57  ;;  %v115_v6 = vld [vmem:[#allocation8 + $0x1e8] sm:$0xff]  ;;  %v118_v18 = vld [vmem:[#allocation8 + $0x200] sm:$0xff] }
 0x756   :  { %v6330_v25 = vadd.f32 %v1671_v15, %v6933_v34  ;;  %v5673_v54 = vpack.c.bf16 %v88_v42, %v85_v55  ;;  %v90_v15 = vld [vmem:[#allocation8 + $0x120] sm:$0xff]  ;;  %v93_v19 = vld [vmem:[#allocation8 + $0x138] sm:$0xff]  ;;  %v116_v57 = vld [vmem:[#allocation8 + $0x1f0] sm:$0xff] }
 0x757   :  { %v3994_v20 = vmul.f32 -1.442695, %v6329_v10  ;;  %v5709_v10 = vpack.c.bf16 %v95_v61, %v92_v53  ;;  %v110_v55 = vld [vmem:[#allocation8 + $0x1c0] sm:$0xff]  ;;  %v113_v42 = vld [vmem:[#allocation8 + $0x1d8] sm:$0xff]  ;;  %v5693_v53 = vpack.c.bf16 %v118_v18, %v115_v6  ;;  %v139_v18 = vld [vmem:[#allocation8 + $0x2a8] sm:$0xff] }
 0x758   :  { %v3995_v29 = vmul.f32 -1.442695, %v6330_v25  ;;  %v100_v25 = vld [vmem:[#allocation8 + $0x170] sm:$0xff] }
 0x759   :  { %6476 = vpow2.f32 %v3994_v20  ;;  %v97_v20 = vld [vmem:[#allocation8 + $0x158] sm:$0xff] }
 0x75a   :  { %6478 = vpow2.f32 %v3995_v29  ;;  %v98_v29 = vld [vmem:[#allocation8 + $0x160] sm:$0xff] }
 0x763   :  { %v6477_v31 = vpop.eup %6476 }
 0x764   :  { %v1748_v37 = vadd.f32 1.0, %v6477_v31  ;;  %v6479_v40 = vpop.eup %6478  ;;  %v101_v31 = vld [vmem:[#allocation8 + $0x178] sm:$0xff] }
 0x765   :  { %v1755_v43 = vadd.f32 1.0, %v6479_v40  ;;  %v5713_v40 = vpack.c.bf16 %v101_v31, %v98_v29 }
 0x766   :  { %6480 = vrcp.f32 %v1748_v37  ;;  %v5681_v37 = vpack.c.bf16 %v100_v25, %v97_v20  ;;  %v125_v20 = vld [vmem:[#allocation8 + $0x238] sm:$0xff] }
 0x767   :  { %6482 = vrcp.f32 %v1755_v43  ;;  %v96_v43 = vld [vmem:[#allocation8 + $0x150] sm:$0xff] }
 0x770   :  { %v6481_v50 = vpop.eup %6480 }
 0x771   :  { %v1759_v51 = vmul.f32 %v6481_v50, %v1758_v47  ;;  %v6483_v59 = vpop.eup %6482  ;;  %v99_v47 = vld [vmem:[#allocation8 + $0x168] sm:$0xff] }
 0x772   :  { %v1762_v22 = vsub.f32 1.0, %v6483_v59  ;;  %v1764_v46 = vmul.f32 %v6483_v59, %v7227_v17  ;;  %v103_v50 = vld [vmem:[#allocation8 + $0x188] sm:$0xff] }
 0x773   :  { %v1760_v56 = vadd.f32 %v1759_v51, %v6923_v26  ;;  %v86_v26 = vld [vmem:[#allocation8 + $0x100] sm:$0xff]  ;;  %v107_v59 = vld [vmem:[#allocation8 + $0x1a8] sm:$0xff] }
 0x774   :  { %v5705_v44 = vpack.c.bf16 %v89_v36, %v86_v26  ;;  %v106_v51 = vld [vmem:[#allocation8 + $0x1a0] sm:$0xff]  ;;  %v5687_v26 = vpack.c.bf16 %v105_v32, %v102_v38  ;;  %v137_v38 = vld [vmem:[#allocation8 + $0x298] sm:$0xff] }
 0x775   :  { %6484 = vtanh.f32 %v1760_v56  ;;  %v104_v56 = vld [vmem:[#allocation8 + $0x190] sm:$0xff]  ;;  %v5685_v33 = vpack.c.bf16 %v106_v51, %v103_v50  ;;  %v127_v51 = vld [vmem:[#allocation8 + $0x248] sm:$0xff] }
 0x77f   :  { %v6485_v35 = vpop.eup %6484 }
 0x780   :  { %v1763_v45 = vmul.f32 %v6485_v35, %v1762_v22  ;;  %v5683_v22 = vpack.c.bf16 %v99_v47, %v96_v43  ;;  %v5717_v35 = vpack.c.bf16 %v107_v59, %v104_v56  ;;  %v128_v43 = vld [vmem:[#allocation8 + $0x250] sm:$0xff]  ;;  %v131_v47 = vld [vmem:[#allocation8 + $0x268] sm:$0xff]  ;;  %v130_v56 = vld [vmem:[#allocation8 + $0x260] sm:$0xff] }
 0x781   :  { %v5765_v50 = vpack.c.bf16 %v131_v47, %v128_v43  ;;  %v134_v59 = vld [vmem:[#allocation8 + $0x280] sm:$0xff]  ;;  %v151_v43 = vld [vmem:[#allocation8 + $0x308] sm:$0xff] }
 0x782   :  { %v1765_v48 = vadd.f32 %v1764_v46, %v1763_v45  ;;  %v109_v45 = vld [vmem:[#allocation8 + $0x1b8] sm:$0xff]  ;;  %v112_v46 = vld [vmem:[#allocation8 + $0x1d0] sm:$0xff]  ;;  %v154_v47 = vld [vmem:[#allocation8 + $0x320] sm:$0xff] }
 0x783   :  { %v5689_v36 = vpack.c.bf16 %v112_v46, %v109_v45  ;;  %v5769_v45 = vpack.c.bf16 %v137_v38, %v134_v59  ;;  %v133_v46 = vld [vmem:[#allocation8 + $0x278] sm:$0xff] }
 0x784   :  { %v7279_v41 = vsel %vm343_vm9, %v1765_v48, %v7227_v17  ;;  %v5721_v48 = vpack.c.bf16 %v113_v42, %v110_v55  ;;  %v136_v55 = vld [vmem:[#allocation8 + $0x290] sm:$0xff]  ;;  %v153_v59 = vld [vmem:[#allocation8 + $0x318] sm:$0xff] }
 0x785   :  { %1833 = vmatmul.mubr.f32.vlgmr.msra.gmra.mrb[14].mxu0 %v7279_v41  ;;  %4714 = vmatmul.mubr.f32.vlgmr.msra.gmra.mrb[22].mxu1 %v7279_v41  ;;  %v140_v42 = vld [vmem:[#allocation8 + $0x2b0] sm:$0xff]  ;;  %v157_v38 = vld [vmem:[#allocation8 + $0x338] sm:$0xff] }
 0x786   :  { %5672 = vmatpush1.bf16.msra.mxu0 %v5671_v58  ;;  %5704 = vmatpush3.bf16.msra.mxu1 %v5701_v62  ;;  %v5679_v62 = vpack.c.bf16 %v93_v19, %v90_v15  ;;  %v108_v58 = vld [vmem:[#allocation8 + $0x1b0] sm:$0xff]  ;;  %v122_v19 = vld [vmem:[#allocation8 + $0x220] sm:$0xff] }
 0x787   :  { %4748 = vmatprep.mubr.msk.f32.mxu1 %vm6948_vm3, %v6952_v60  ;;  %5674 = vmatprep.subr.bf16.mxu0 %v5673_v54  ;;  %v111_v54 = vld [vmem:[#allocation8 + $0x1c8] sm:$0xff]  ;;  %v124_v15 = vld [vmem:[#allocation8 + $0x230] sm:$0xff]  ;;  %v5729_v31 = vpack.c.bf16 %v125_v20, %v122_v19 }
 0x788   :  { %5706 = vmatprep.subr.bf16.mxu1 %v5705_v44  ;;  %2021 = vmatprep.mubr.f32.mxu0 %v6685_v0  ;;  %v5691_v52 = vpack.c.bf16 %v111_v54, %v108_v58  ;;  %v143_v58 = vld [vmem:[#allocation8 + $0x2c8] sm:$0xff]  ;;  %v148_v19 = vld [vmem:[#allocation8 + $0x2f0] sm:$0xff] }
 0x789   :  { %v5773_v6 = vpack.c.bf16 %v143_v58, %v140_v42  ;;  %v152_v20 = vld [vmem:[#allocation8 + $0x310] sm:$0xff]  ;;  %v163_v58 = vld [vmem:[#allocation8 + $0x368] sm:$0xff] }
 0x78a   :  { %5676 = vmatpush1.bf16.msra.mxu0 %v5675_v4  ;;  %5708 = vmatpush3.bf16.msra.mxu1 %v5705_v44  ;;  %v119_v44 = vld [vmem:[#allocation8 + $0x208] sm:$0xff]  ;;  %v114_v4 = vld [vmem:[#allocation8 + $0x1e0] sm:$0xff]  ;;  %v164_v42 = vld [vmem:[#allocation8 + $0x370] sm:$0xff] }
 0x78b   :  { %5678 = vmatprep.subr.bf16.mxu0 %v5677_v9  ;;  %5710 = vmatprep.subr.bf16.mxu1 %v5709_v10  ;;  %v5725_v61 = vpack.c.bf16 %v119_v44, %v116_v57  ;;  %v117_v9 = vld [vmem:[#allocation8 + $0x1f8] sm:$0xff]  ;;  %v142_v57 = vld [vmem:[#allocation8 + $0x2c0] sm:$0xff] }
 0x78c   :  { %v5695_v25 = vpack.c.bf16 %v117_v9, %v114_v4  ;;  %v146_v44 = vld [vmem:[#allocation8 + $0x2e0] sm:$0xff]  ;;  %v149_v4 = vld [vmem:[#allocation8 + $0x2f8] sm:$0xff] }
 0x78e   :  { %5680 = vmatpush1.bf16.msra.mxu0 %v5679_v62  ;;  %5712 = vmatpush3.bf16.msra.mxu1 %v5709_v10  ;;  %v121_v10 = vld [vmem:[#allocation8 + $0x218] sm:$0xff]  ;;  %v120_v62 = vld [vmem:[#allocation8 + $0x210] sm:$0xff] }
 0x78f   :  { %5682 = vmatprep.subr.bf16.mxu0 %v5681_v37  ;;  %5714 = vmatprep.subr.bf16.mxu1 %v5713_v40  ;;  %v5697_v29 = vpack.c.bf16 %v124_v15, %v121_v10  ;;  %v123_v37 = vld [vmem:[#allocation8 + $0x228] sm:$0xff]  ;;  %v5777_v10 = vpack.c.bf16 %v149_v4, %v146_v44  ;;  %v145_v15 = vld [vmem:[#allocation8 + $0x2d8] sm:$0xff]  ;;  %v162_v44 = vld [vmem:[#allocation8 + $0x360] sm:$0xff] }
 0x790   :  { %v169_v4 = vld [vmem:[#allocation8 + $0x398] sm:$0xff] }
 0x792   :  { %5684 = vmatpush1.bf16.msra.mxu0 %v5683_v22  ;;  %5716 = vmatpush3.bf16.msra.mxu1 %v5713_v40  ;;  %v5699_v40 = vpack.c.bf16 %v123_v37, %v120_v62  ;;  %v5733_v22 = vpack.c.bf16 %v130_v56, %v127_v51  ;;  %v155_v62 = vld [vmem:[#allocation8 + $0x328] sm:$0xff]  ;;  %v5749_v51 = vpack.c.bf16 %v154_v47, %v151_v43  ;;  %v150_v56 = vld [vmem:[#allocation8 + $0x300] sm:$0xff] }
 0x793   :  { %5686 = vmatprep.subr.bf16.mxu0 %v5685_v33  ;;  %5718 = vmatprep.subr.bf16.mxu1 %v5717_v35  ;;  %v126_v33 = vld [vmem:[#allocation8 + $0x240] sm:$0xff] }
 0x796   :  { %5688 = vmatpush1.bf16.msra.mxu0 %v5687_v26  ;;  %5720 = vmatpush3.bf16.msra.mxu1 %v5717_v35  ;;  %v129_v35 = vld [vmem:[#allocation8 + $0x258] sm:$0xff]  ;;  %v5737_v26 = vpack.c.bf16 %v136_v55, %v133_v46  ;;  %v159_v55 = vld [vmem:[#allocation8 + $0x348] sm:$0xff] }
 0x797   :  { %5690 = vmatprep.subr.bf16.mxu0 %v5689_v36  ;;  %5722 = vmatprep.subr.bf16.mxu1 %v5721_v48  ;;  %v5735_v32 = vpack.c.bf16 %v129_v35, %v126_v33  ;;  %v132_v36 = vld [vmem:[#allocation8 + $0x270] sm:$0xff]  ;;  %v5751_v33 = vpack.c.bf16 %v153_v59, %v150_v56 }
 0x79a   :  { %5692 = vmatpush1.bf16.msra.mxu0 %v5691_v52  ;;  %5724 = vmatpush3.bf16.msra.mxu1 %v5721_v48  ;;  %v135_v48 = vld [vmem:[#allocation8 + $0x288] sm:$0xff]  ;;  %v5741_v52 = vpack.c.bf16 %v142_v57, %v139_v18  ;;  %v170_v18 = vld [vmem:[#allocation8 + $0x3a0] sm:$0xff]  ;;  %v173_v57 = vld [vmem:[#allocation8 + $0x3b8] sm:$0xff] }
 0x79b   :  { %5694 = vmatprep.subr.bf16.mxu0 %v5693_v53  ;;  %5726 = vmatprep.subr.bf16.mxu1 %v5725_v61  ;;  %v5739_v54 = vpack.c.bf16 %v135_v48, %v132_v36  ;;  %v138_v53 = vld [vmem:[#allocation8 + $0x2a0] sm:$0xff] }
 0x79e   :  { %5696 = vmatpush1.bf16.msra.mxu0 %v5695_v25  ;;  %5728 = vmatpush3.bf16.msra.mxu1 %v5725_v61  ;;  %v141_v61 = vld [vmem:[#allocation8 + $0x2b8] sm:$0xff]  ;;  %v5745_v25 = vpack.c.bf16 %v148_v19, %v145_v15  ;;  %v168_v15 = vld [vmem:[#allocation8 + $0x390] sm:$0xff]  ;;  %v171_v19 = vld [vmem:[#allocation8 + $0x3a8] sm:$0xff] }
 0x79f   :  { %5698 = vmatprep.subr.bf16.mxu0 %v5697_v29  ;;  %5730 = vmatprep.subr.bf16.mxu1 %v5729_v31  ;;  %v5743_v9 = vpack.c.bf16 %v141_v61, %v138_v53  ;;  %v144_v29 = vld [vmem:[#allocation8 + $0x2d0] sm:$0xff]  ;;  %v5793_v53 = vpack.c.bf16 %v173_v57, %v170_v18 }
 0x7a2   :  { %5700 = vmatpush1.bf16.msra.mxu0 %v5699_v40  ;;  %5732 = vmatpush3.bf16.msra.mxu1 %v5729_v31  ;;  %v147_v31 = vld [vmem:[#allocation8 + $0x2e8] sm:$0xff]  ;;  %v5781_v40 = vpack.c.bf16 %v155_v62, %v152_v20  ;;  %v5763_v20 = vpack.c.bf16 %v171_v19, %v168_v15  ;;  %v225_v15 = vld [vmem:[#allocation8 + $0x558] sm:$0xff] }
 0x7a3   :  { %5766 = vmatprep.subr.bf16.mxu1 %v5765_v50  ;;  %5734 = vmatprep.subr.bf16.mxu0 %v5733_v22  ;;  %v5747_v37 = vpack.c.bf16 %v147_v31, %v144_v29  ;;  %v161_v22 = vld [vmem:[#allocation8 + $0x358] sm:$0xff]  ;;  %v226_v29 = vld [vmem:[#allocation8 + $0x560] sm:$0xff] }
 0x7a4   :  { %v229_v19 = vld [vmem:[#allocation8 + $0x578] sm:$0xff] }
 0x7a5   :  { %4017 = vmatmul.mubr.msk.f32.vlgmr.msra.gmra.mrb[16].mxu0 %vm6948_vm3, %v6952_v60  ;;  %4749 = vmatmul.mubr.f32.vlgmr.msra.gmra.mrb[24].mxu1 %v7011_v7 }
 0x7a6   :  { %4751 = vmatprep.mubr.f32.mxu1 %v7065_v14  ;;  %2027 = vmatprep.mubr.f32.mxu0 %v6685_v0 }
 0x7a7   :  { %5768 = vmatpush3.bf16.msra.mxu1 %v5765_v50  ;;  %5736 = vmatpush1.bf16.msra.mxu0 %v5735_v32  ;;  %v158_v50 = vld [vmem:[#allocation8 + $0x340] sm:$0xff]  ;;  %v160_v32 = vld [vmem:[#allocation8 + $0x350] sm:$0xff] }
 0x7a8   :  { %5770 = vmatprep.subr.bf16.mxu1 %v5769_v45  ;;  %5738 = vmatprep.subr.bf16.mxu0 %v5737_v26  ;;  %v5785_v35 = vpack.c.bf16 %v161_v22, %v158_v50  ;;  %v5753_v46 = vpack.c.bf16 %v160_v32, %v157_v38  ;;  %v167_v26 = vld [vmem:[#allocation8 + $0x388] sm:$0xff]  ;;  %v6582_v38 = vld [vmem:[#allocation8 + $0xb70] ss:$0 sm:$0xff] }
 0x7a9   :  { %2028 = vmatmul.mubr.f32.gmra.mrb[18].mxu0 %v7011_v7  ;;  %4752 = vmatmul.mubr.f32.gmra.mrb[26].mxu1 %v7119_v12  ;;  %v5789_v48 = vpack.c.bf16 %v167_v26, %v164_v42 }
 0x7aa   :  { %4754 = vmatprep.mubr.f32.mxu1 %v7173_v21  ;;  %2033 = vmatprep.mubr.f32.mxu0 %v6685_v0 }
 0x7ab   :  { %5772 = vmatpush3.bf16.msra.mxu1 %v5769_v45  ;;  %5740 = vmatpush1.bf16.msra.mxu0 %v5739_v54  ;;  %v156_v45 = vld [vmem:[#allocation8 + $0x330] sm:$0xff]  ;;  %v166_v54 = vld [vmem:[#allocation8 + $0x380] sm:$0xff] }
 0x7ac   :  { %5774 = vmatprep.subr.bf16.mxu1 %v5773_v6  ;;  %5742 = vmatprep.subr.bf16.mxu0 %v5741_v52  ;;  %v5755_v36 = vpack.c.bf16 %v159_v55, %v156_v45  ;;  %v165_v52 = vld [vmem:[#allocation8 + $0x378] sm:$0xff] }
 0x7ad   :  { %2034 = vmatmul.mubr.f32.gmra.mrb[20].mxu0 %v7065_v14  ;;  %4755 = vmatmul.mubr.f32.gmra.mrb[28].mxu1 %v7227_v17  ;;  %v5759_v61 = vpack.c.bf16 %v165_v52, %v162_v44  ;;  %v7333_v52 = vld [vmem:[#allocation6] sm:$0xff] }
 0x7ae   :  { %4757 = vmatprep.mubr.f32.mxu1 %v7279_v41  ;;  %2039 = vmatprep.mubr.f32.mxu0 %v6685_v0 }
 0x7af   :  { %5776 = vmatpush3.bf16.msra.mxu1 %v5773_v6  ;;  %5744 = vmatpush1.bf16.msra.mxu0 %v5743_v9  ;;  %v5757_v6 = vpack.c.bf16 %v166_v54, %v163_v58  ;;  %v172_v9 = vld [vmem:[#allocation8 + $0x3b0] sm:$0xff]  ;;  %v6695_v54 = vmov 0  }
 0x7b0   :  { %5778 = vmatprep.subr.bf16.mxu1 %v5777_v10  ;;  %5746 = vmatprep.subr.bf16.mxu0 %v5745_v25  ;;  %v223_v25 = vld [vmem:[#allocation8 + $0x548] sm:$0xff] }
 0x7b1   :  { %2040 = vmatmul.mubr.f32.gmra.mrb[22].mxu0 %v7119_v12  ;;  %v7310_v31 = vpack.c.bf16 %v226_v29, %v223_v25  ;;  %v230_v25 = vld [vmem:[#allocation8 + $0x580] sm:$0xff]  ;;  %v233_v29 = vld [vmem:[#allocation8 + $0x598] sm:$0xff] }
 0x7b2   :  { %2045 = vmatprep.mubr.f32.mxu0 %v6685_v0 }
 0x7b3   :  { %5780 = vmatpush3.bf16.msra.mxu1 %v5777_v10  ;;  %5748 = vmatpush1.bf16.msra.mxu0 %v5747_v37  ;;  %v5761_v10 = vpack.c.bf16 %v172_v9, %v169_v4  ;;  %v227_v4 = vld [vmem:[#allocation8 + $0x568] sm:$0xff] }
 0x7b4   :  { %5782 = vmatprep.subr.bf16.mxu1 %v5781_v40  ;;  %5750 = vmatprep.subr.bf16.mxu0 %v5749_v51 }
 0x7b5   :  { %2046 = vmatmul.mubr.f32.gmra.mrb[24].mxu0 %v7173_v21 }
 0x7b6   :  { %2051 = vmatprep.mubr.f32.mxu0 %v6685_v0 }
 0x7b7   :  { %5784 = vmatpush3.bf16.msra.mxu1 %v5781_v40  ;;  %5752 = vmatpush1.bf16.msra.mxu0 %v5751_v33 }
 0x7b8   :  { %5786 = vmatprep.subr.bf16.mxu1 %v5785_v35  ;;  %5754 = vmatprep.subr.bf16.mxu0 %v5753_v46 }
 0x7b9   :  { %2052 = vmatmul.mubr.f32.gmra.mrb[26].mxu0 %v7227_v17 }
 0x7ba   :  { %2057 = vmatprep.mubr.f32.mxu0 %v6685_v0 }
 0x7bb   :  { %5788 = vmatpush3.bf16.msra.mxu1 %v5785_v35  ;;  %5756 = vmatpush1.bf16.msra.mxu0 %v5755_v36 }
 0x7bc   :  { %5790 = vmatprep.subr.bf16.mxu1 %v5789_v48  ;;  %5758 = vmatprep.subr.bf16.mxu0 %v5757_v6  ;;  %v7330_v6 = vsel %vm329_vm2, 7, %v6695_v54  ;;  %v247_v54 = vld [vmem:[#allocation8 + $0x608] sm:$0xff] }
 0x7bd   :  { %2058 = vmatmul.mubr.f32.gmra.mrb[28].mxu0 %v7279_v41  ;;  %vm345_vm10 = vcmp.lt.s32.totalorder %v7330_v6, %v7333_v52  ;;  %v310_v6 = vld [vmem:[#allocation8 + $0xa80] sm:$0xff]  ;;  %v311_v52 = vld [vmem:[#allocation8 + $0xa98] sm:$0xff] }
 0x7be   :  { %2063 = vmatprep.mubr.f32.mxu0 %v6685_v0 }
 0x7bf   :  { %5792 = vmatpush3.bf16.msra.mxu1 %v5789_v48  ;;  %5760 = vmatpush1.bf16.msra.mxu0 %v5759_v61  ;;  %v224_v61 = vld [vmem:[#allocation8 + $0x550] sm:$0xff] }
 0x7c0   :  { %5794 = vmatprep.subr.bf16.mxu1 %v5793_v53  ;;  %5762 = vmatprep.subr.bf16.mxu0 %v5761_v10  ;;  %v7349_v9 = vpack.c.bf16 %v227_v4, %v224_v61  ;;  %v222_v10 = vld [vmem:[#allocation8 + $0x540] sm:$0xff]  ;;  %v249_v4 = vld [vmem:[#allocation8 + $0x618] sm:$0xff] }
 0x7c1   :  { %v246_v61 = vld [vmem:[#allocation8 + $0x600] sm:$0xff] }
 0x7c3   :  { %5796 = vmatpush3.bf16.msra.mxu1 %v5793_v53  ;;  %5764 = vmatpush1.bf16.msra.mxu0 %v5763_v20  ;;  %v232_v20 = vld [vmem:[#allocation8 + $0x590] sm:$0xff] }
 0x7c4   :  { %5829 = vmatprep.subr.bf16.mxu1 %v6686_v5  ;;  %5798 = vmatprep.subr.bf16.mxu0 %v7310_v31 }
 0x858   :  { %v1834_v62 = vpop.f32.mrb[14].mxu0  ;;  %v1905_v37 = vpop.f32.mrb[22].mxu1 }
 0x859   :  { %v6331_v40 = vadd.f32 %v1834_v62, %v6929_v30  ;;  %v1836_v43 = vpop.f32.mrb[15].mxu0  ;;  %v4715_v47 = vpop.f32.mrb[23].mxu1  ;;  %v1923_v32 = vadd.f32 %v6582_v38, %v1905_v37  ;;  %v7353_v62 = vpack.c.bf16 %v225_v15, %v222_v10  ;;  %v7356_v37 = vpack.c.bf16 %v232_v20, %v229_v19  ;;  %v244_v38 = vld [vmem:[#allocation8 + $0x5f0] sm:$0xff]  ;;  %v253_v10 = vld [vmem:[#allocation8 + $0x638] sm:$0xff]  ;;  %v251_v20 = vld [vmem:[#allocation8 + $0x628] sm:$0xff] }
 0x85a   :  { %v6332_v51 = vadd.f32 %v1836_v43, %v6933_v34  ;;  %v231_v43 = vld [vmem:[#allocation8 + $0x588] sm:$0xff]  ;;  %v248_v19 = vld [vmem:[#allocation8 + $0x610] sm:$0xff] }
 0x85b   :  { %v3996_v50 = vmul.f32 -1.442695, %v6331_v40  ;;  %v228_v40 = vld [vmem:[#allocation8 + $0x570] sm:$0xff]  ;;  %v235_v47 = vld [vmem:[#allocation8 + $0x5a8] sm:$0xff] }
 0x85c   :  { %v3997_v56 = vmul.f32 -1.442695, %v6332_v51  ;;  %v7359_v51 = vpack.c.bf16 %v233_v29, %v230_v25  ;;  %v7405_v25 = vpack.c.bf16 %v249_v4, %v246_v61  ;;  %v264_v61 = vld [vmem:[#allocation8 + $0x690] sm:$0xff]  ;;  %v267_v4 = vld [vmem:[#allocation8 + $0x6a8] sm:$0xff] }
 0x85d   :  { %6486 = vpow2.f32 %v3996_v50  ;;  %v238_v50 = vld [vmem:[#allocation8 + $0x5c0] sm:$0xff] }
 0x85e   :  { %6488 = vpow2.f32 %v3997_v56  ;;  %v7367_v56 = vpack.c.bf16 %v231_v43, %v228_v40  ;;  %v252_v40 = vld [vmem:[#allocation8 + $0x630] sm:$0xff]  ;;  %v255_v43 = vld [vmem:[#allocation8 + $0x648] sm:$0xff] }
 0x867   :  { %v6487_v59 = vpop.eup %6486 }
 0x868   :  { %v1913_v22 = vadd.f32 1.0, %v6487_v59  ;;  %v6489_v33 = vpop.eup %6488  ;;  %v7371_v59 = vpack.c.bf16 %v238_v50, %v235_v47  ;;  %v259_v47 = vld [vmem:[#allocation8 + $0x668] sm:$0xff]  ;;  %v7411_v50 = vpack.c.bf16 %v251_v20, %v248_v19  ;;  %v7441_v19 = vpack.c.bf16 %v267_v4, %v264_v61 }
 0x869   :  { %v1920_v35 = vadd.f32 1.0, %v6489_v33  ;;  %v237_v33 = vld [vmem:[#allocation8 + $0x5b8] sm:$0xff] }
 0x86a   :  { %6490 = vrcp.f32 %v1913_v22  ;;  %v234_v22 = vld [vmem:[#allocation8 + $0x5a0] sm:$0xff] }
 0x86b   :  { %6492 = vrcp.f32 %v1920_v35  ;;  %v241_v35 = vld [vmem:[#allocation8 + $0x5d8] sm:$0xff] }
 0x874   :  { %v6491_v45 = vpop.eup %6490 }
 0x875   :  { %v1924_v46 = vmul.f32 %v6491_v45, %v1923_v32  ;;  %v6493_v36 = vpop.eup %6492  ;;  %v239_v32 = vld [vmem:[#allocation8 + $0x5c8] sm:$0xff]  ;;  %v7378_v45 = vpack.c.bf16 %v237_v33, %v234_v22  ;;  %v262_v22 = vld [vmem:[#allocation8 + $0x680] sm:$0xff]  ;;  %v257_v33 = vld [vmem:[#allocation8 + $0x658] sm:$0xff] }
 0x876   :  { %v1929_v44 = vmul.f32 %v6493_v36, %v7279_v41 }
 0x877   :  { %v1925_v30 = vadd.f32 %v1924_v46, %v6921_v23  ;;  %v1927_v23 = vsub.f32 1.0, %v6493_v36  ;;  %v7382_v46 = vpack.c.bf16 %v244_v38, %v241_v35  ;;  %v243_v36 = vld [vmem:[#allocation8 + $0x5e8] sm:$0xff]  ;;  %v7417_v35 = vpack.c.bf16 %v255_v43, %v252_v40 }
 0x878   :  { %v7316_v55 = vpop.f32.mrb[24].mxu1  ;;  %v7420_v38 = vpack.c.bf16 %v262_v22, %v259_v47 }
 0x879   :  { %6494 = vtanh.f32 %v1925_v30  ;;  %v7318_v42 = vpop.f32.mrb[25].mxu1  ;;  %v240_v30 = vld [vmem:[#allocation8 + $0x5d0] sm:$0xff] }
 0x87c   :  { %v7320_v34 = vpop.f32.mrb[26].mxu1 }
 0x87d   :  { %v7322_v26 = vpop.f32.mrb[27].mxu1 }
 0x880   :  { %v7324_v48 = vpop.f32.mrb[28].mxu1 }
 0x881   :  { %v7326_v58 = vpop.f32.mrb[29].mxu1 }
 0x883   :  { %v6495_v18 = vpop.eup %6494 }
 0x884   :  { %v1928_v57 = vmul.f32 %v6495_v18, %v1927_v23  ;;  %v242_v18 = vld [vmem:[#allocation8 + $0x5e0] sm:$0xff] }
 0x886   :  { %v1930_v53 = vadd.f32 %v1929_v44, %v1928_v57  ;;  %v245_v57 = vld [vmem:[#allocation8 + $0x5f8] sm:$0xff]  ;;  %v7391_v44 = vpack.c.bf16 %v243_v36, %v240_v30 }
 0x887   :  { %v7397_v15 = vpack.c.bf16 %v245_v57, %v242_v18  ;;  %v265_v30 = vld [vmem:[#allocation8 + $0x698] sm:$0xff] }
 0x888   :  { %v7341_v16 = vsel %vm345_vm10, %v1930_v53, %v7279_v41 }
 0x889   :  { %2064 = vmatmul.mubr.f32.gmra.mrb[30].mxu0 %v7341_v16  ;;  %4758 = vmatmul.mubr.f32.gmra.mrb[30].mxu1 %v7341_v16 }
 0x88a   :  { %4792 = vmatprep.mubr.msk.f32.mxu1 %vm6948_vm3, %v6952_v60  ;;  %2239 = vmatprep.mubr.f32.mxu0 %v6685_v0 }
 0x88d   :  { %4793 = vmatmul.mubr.f32.vlgmr.msra.gmra.mrb[32].mxu1 %v7011_v7 }
 0x88e   :  { %4795 = vmatprep.mubr.f32.mxu1 %v7065_v14  ;;  %5831 = vmatpush3.bf16.msra.mxu1 %v7349_v9 }
 0x88f   :  { %5832 = vmatprep.subr.bf16.mxu1 %v6686_v5 }
 0x891   :  { %4019 = vmatmul.mubr.msk.f32.vlgmr.msra.gmra.mrb[30].mxu0 %vm6948_vm3, %v6952_v60  ;;  %4796 = vmatmul.mubr.f32.gmra.mrb[34].mxu1 %v7119_v12  ;;  %v236_v60 = vld [vmem:[#allocation8 + $0x5b0] sm:$0xff] }
 0x892   :  { %4798 = vmatprep.mubr.f32.mxu1 %v7173_v21  ;;  %5800 = vmatpush1.bf16.msra.mxu0 %v7353_v62  ;;  %v7384_v23 = vpack.c.bf16 %v239_v32, %v236_v60  ;;  %v258_v60 = vld [vmem:[#allocation8 + $0x660] sm:$0xff]  ;;  %v261_v32 = vld [vmem:[#allocation8 + $0x678] sm:$0xff] }
 0x893   :  { %2245 = vmatprep.mubr.f32.mxu0 %v6685_v0  ;;  %5802 = vmatprep.subr.bf16.mxu0 %v7356_v37  ;;  %v7429_v18 = vpack.c.bf16 %v261_v32, %v258_v60 }
 0x894   :  { %5834 = vmatpush3.bf16.msra.mxu1 %v7359_v51 }
 0x895   :  { %2246 = vmatmul.mubr.f32.gmra.mrb[28].mxu0 %v7011_v7  ;;  %4799 = vmatmul.mubr.f32.gmra.mrb[36].mxu1 %v7227_v17  ;;  %v250_v7 = vld [vmem:[#allocation8 + $0x620] sm:$0xff] }
 0x896   :  { %4801 = vmatprep.mubr.f32.mxu1 %v7279_v41  ;;  %5804 = vmatpush1.bf16.msra.mxu0 %v7367_v56  ;;  %v7394_v53 = vpack.c.bf16 %v250_v7, %v247_v54  ;;  %v268_v54 = vld [vmem:[#allocation8 + $0x6b0] sm:$0xff]  ;;  %v263_v7 = vld [vmem:[#allocation8 + $0x688] sm:$0xff] }
 0x897   :  { %2251 = vmatprep.mubr.f32.mxu0 %v6685_v0  ;;  %5806 = vmatprep.subr.bf16.mxu0 %v7371_v59  ;;  %v7432_v57 = vpack.c.bf16 %v268_v54, %v265_v30 }
 0x898   :  { %5835 = vmatprep.subr.bf16.mxu1 %v6686_v5 }
 0x899   :  { %2252 = vmatmul.mubr.f32.gmra.mrb[26].mxu0 %v7065_v14  ;;  %4802 = vmatmul.mubr.f32.gmra.mrb[38].mxu1 %v7341_v16  ;;  %v256_v14 = vld [vmem:[#allocation8 + $0x650] sm:$0xff] }
 0x89a   :  { %5808 = vmatpush1.bf16.msra.mxu0 %v7378_v45  ;;  %2257 = vmatprep.mubr.f32.mxu0 %v6685_v0  ;;  %v7408_v29 = vpack.c.bf16 %v256_v14, %v253_v10  ;;  %v266_v14 = vld [vmem:[#allocation8 + $0x6a0] sm:$0xff] }
 0x89b   :  { %5810 = vmatprep.subr.bf16.mxu0 %v7382_v46  ;;  %5837 = vmatpush3.bf16.msra.mxu1 %v7384_v23 }
 0x89c   :  { %5838 = vmatprep.subr.bf16.mxu1 %v6686_v5  ;;  %4836 = vmatprep.mubr.msk.f32.mxu1 %vm6687_vm1, %v6685_v0 }
 0x89d   :  { %2258 = vmatmul.mubr.f32.gmra.mrb[24].mxu0 %v7119_v12  ;;  %v254_v12 = vld [vmem:[#allocation8 + $0x640] sm:$0xff] }
 0x89e   :  { %2263 = vmatprep.mubr.f32.mxu0 %v6685_v0  ;;  %5812 = vmatpush1.bf16.msra.mxu0 %v7391_v44  ;;  %v7423_v36 = vpack.c.bf16 %v257_v33, %v254_v12 }
 0x89f   :  { %5814 = vmatprep.subr.bf16.mxu0 %v7394_v53  ;;  %5840 = vmatpush3.bf16.msra.mxu1 %v7397_v15 }
 0x8a0   :  { %5841 = vmatprep.subr.bf16.mxu1 %v6686_v5 }
 0x8a1   :  { %2264 = vmatmul.mubr.f32.gmra.mrb[22].mxu0 %v7173_v21  ;;  %v260_v21 = vld [vmem:[#allocation8 + $0x670] sm:$0xff] }
 0x8a2   :  { %2269 = vmatprep.mubr.f32.mxu0 %v6685_v0  ;;  %5816 = vmatpush1.bf16.msra.mxu0 %v7405_v25  ;;  %v7435_v10 = vpack.c.bf16 %v263_v7, %v260_v21 }
 0x8a3   :  { %5818 = vmatprep.subr.bf16.mxu0 %v7408_v29  ;;  %5843 = vmatpush3.bf16.msra.mxu1 %v7411_v50 }
 0x8a4   :  { %5844 = vmatprep.subr.bf16.mxu1 %v6686_v5 }
 0x8a5   :  { %2270 = vmatmul.mubr.f32.gmra.mrb[20].mxu0 %v7227_v17  ;;  %v269_v17 = vld [vmem:[#allocation8 + $0x6b8] sm:$0xff] }
 0x8a6   :  { %2275 = vmatprep.mubr.f32.mxu0 %v6685_v0  ;;  %5820 = vmatpush1.bf16.msra.mxu0 %v7417_v35  ;;  %v7445_v20 = vpack.c.bf16 %v269_v17, %v266_v14 }
 0x8a7   :  { %5822 = vmatprep.subr.bf16.mxu0 %v7420_v38  ;;  %5846 = vmatpush3.bf16.msra.mxu1 %v7423_v36 }
 0x8a8   :  { %5847 = vmatprep.subr.bf16.mxu1 %v6686_v5 }
 0x8a9   :  { %2276 = vmatmul.mubr.f32.gmra.mrb[18].mxu0 %v7279_v41  ;;  %v321_v41 = vld [vmem:[#allocation8 + $0xb58] ss:$8 sm:$0x7] }
 0x8aa   :  { %2281 = vmatprep.mubr.f32.mxu0 %v6685_v0  ;;  %5824 = vmatpush1.bf16.msra.mxu0 %v7429_v18  ;;  %v1953_v40 = vrot.slane %v321_v41, %v365_v1 }
 0x8ab   :  { %5826 = vmatprep.subr.bf16.mxu0 %v7432_v57  ;;  %5849 = vmatpush3.bf16.msra.mxu1 %v7435_v10 }
 0x8ac   :  { %5850 = vmatprep.subr.bf16.mxu1 %v6686_v5  ;;  %v2157_v54 = vadd.f32 %v7326_v58, %v1953_v40  ;;  %v2162_v21 = vadd.f32 %v7324_v48, %v1953_v40  ;;  %v2147_v1 = vadd.f32 %v7322_v26, %v1953_v40  ;;  %v2152_v17 = vadd.f32 %v7320_v34, %v1953_v40 }
 0x8ad   :  { %2282 = vmatmul.mubr.f32.gmra.mrb[16].mxu0 %v7341_v16  ;;  %v2137_v58 = vadd.f32 %v7318_v42, %v1953_v40  ;;  %v2142_v48 = vadd.f32 %v7316_v55, %v1953_v40  ;;  %v7515_v26 = vrot.slane %v321_v41, %v357_v27 }
 0x8ae   :  { %5828 = vmatpush1.bf16.msra.mxu0 %v7441_v19  ;;  %2457 = vmatprep.mubr.f32.mxu0 %v6685_v0 }
 0x8af   :  { %5852 = vmatpush3.bf16.msra.mxu1 %v7445_v20  ;;  %5854 = vmatprep.subr.bf16.mxu0 %v7310_v31 }
 0x8b0   :  { %5885 = vmatprep.subr.bf16.mxu1 %v6686_v5 }
 0x8b2   :  { %4837 = vmatmul.mubr.f32.vlgmr.msra.gmra.mrb[40].mxu1 %v6685_v0 }
 0x8b3   :  { %5887 = vmatpush3.bf16.msra.mxu1 %v7349_v9  ;;  %4871 = vmatprep.mubr.msk.f32.mxu1 %vm6687_vm1, %v6685_v0 }
 0x8b4   :  { %5888 = vmatprep.subr.bf16.mxu1 %v6686_v5 }
 0x8b5   :  { %2458 = vmatmul.mubr.f32.vlgmr.msra.gmra.mrb[16].mxu0 %v6685_v0 }
 0x8b6   :  { %5856 = vmatpush1.bf16.msra.mxu0 %v7353_v62  ;;  %2624 = vmatprep.mubr.f32.mxu0 %v6685_v0 }
 0x8b7   :  { %5858 = vmatprep.subr.bf16.mxu0 %v7356_v37  ;;  %5890 = vmatpush3.bf16.msra.mxu1 %v7359_v51 }
 0x8b8   :  { %5891 = vmatprep.subr.bf16.mxu1 %v6686_v5 }
 0x8ba   :  { %5860 = vmatpush1.bf16.msra.mxu0 %v7367_v56 }
 0x8bb   :  { %5862 = vmatprep.subr.bf16.mxu0 %v7371_v59  ;;  %5893 = vmatpush3.bf16.msra.mxu1 %v7384_v23 }
 0x8bc   :  { %5894 = vmatprep.subr.bf16.mxu1 %v6686_v5 }
 0x8be   :  { %5864 = vmatpush1.bf16.msra.mxu0 %v7378_v45 }
 0x8bf   :  { %5866 = vmatprep.subr.bf16.mxu0 %v7382_v46  ;;  %5896 = vmatpush3.bf16.msra.mxu1 %v7397_v15 }
 0x8c0   :  { %5897 = vmatprep.subr.bf16.mxu1 %v6686_v5 }
 0x8c2   :  { %5868 = vmatpush1.bf16.msra.mxu0 %v7391_v44 }
 0x8c3   :  { %5870 = vmatprep.subr.bf16.mxu0 %v7394_v53  ;;  %5899 = vmatpush3.bf16.msra.mxu1 %v7411_v50 }
 0x8c4   :  { %5900 = vmatprep.subr.bf16.mxu1 %v6686_v5 }
 0x8c6   :  { %5872 = vmatpush1.bf16.msra.mxu0 %v7405_v25 }
 0x8c7   :  { %5874 = vmatprep.subr.bf16.mxu0 %v7408_v29  ;;  %5902 = vmatpush3.bf16.msra.mxu1 %v7423_v36 }
 0x8c8   :  { %5903 = vmatprep.subr.bf16.mxu1 %v6686_v5 }
 0x8ca   :  { %5876 = vmatpush1.bf16.msra.mxu0 %v7417_v35 }
 0x8cb   :  { %5878 = vmatprep.subr.bf16.mxu0 %v7420_v38  ;;  %5905 = vmatpush3.bf16.msra.mxu1 %v7435_v10 }
 0x8cc   :  { %5906 = vmatprep.subr.bf16.mxu1 %v6686_v5 }
 0x8ce   :  { %5880 = vmatpush1.bf16.msra.mxu0 %v7429_v18 }
 0x8cf   :  { %5882 = vmatprep.subr.bf16.mxu0 %v7432_v57  ;;  %5908 = vmatpush3.bf16.msra.mxu1 %v7445_v20 }
 0x8d0   :  { %5941 = vmatprep.subr.bf16.mxu1 %v6686_v5 }
 0x8d2   :  { %5884 = vmatpush1.bf16.msra.mxu0 %v7441_v19 }
 0x8d3   :  { %5910 = vmatprep.subr.bf16.mxu0 %v7310_v31 }
 0x95c   :  { %v4759_v43 = vpop.f32.mrb[30].mxu1 }
 0x95d   :  { %v2166_v47 = vpop.f32.mrb[31].mxu1  ;;  %v2172_v12 = vadd.f32 %v4759_v43, %v1953_v40 }
 0x95e   :  { %v2167_v22 = vadd.f32 %v2166_v47, %v1953_v40 }
 0x960   :  { %v4794_v33 = vpop.f32.mrb[32].mxu1 }
 0x961   :  { %v7493_v60 = vadd.f32 %v4794_v33, %v2167_v22  ;;  %v2354_v32 = vpop.f32.mrb[33].mxu1 }
 0x962   :  { %v7495_v30 = vadd.f32 %v2354_v32, %v2172_v12 }
 0x964   :  { %v4797_v7 = vpop.f32.mrb[34].mxu1 }
 0x965   :  { %v7499_v61 = vadd.f32 %v4797_v7, %v2157_v54  ;;  %v2364_v4 = vpop.f32.mrb[35].mxu1 }
 0x966   :  { %v7501_v14 = vadd.f32 %v2364_v4, %v2162_v21 }
 0x968   :  { %v4800_v43 = vpop.f32.mrb[36].mxu1 }
 0x969   :  { %v7505_v47 = vadd.f32 %v4800_v43, %v2147_v1  ;;  %v2374_v22 = vpop.f32.mrb[37].mxu1  ;;  %v7519_v1 = vrot.slane %v321_v41, %v361_v28 }
 0x96a   :  { %v7507_v12 = vadd.f32 %v2374_v22, %v2152_v17 }
 0x96c   :  { %v4803_v33 = vpop.f32.mrb[38].mxu1 }
 0x96d   :  { %v2536_v32 = vadd.f32 %v4803_v33, %v2137_v58  ;;  %v2384_v54 = vpop.f32.mrb[39].mxu1 }
 0x96e   :  { %v7511_v7 = vadd.f32 %v2384_v54, %v2142_v48  ;;  %v7523_v48 = vld [vmem:[#allocation8 + $0xb88] ss:$0 sm:$0xff] }
 0x985   :  { %v2530_v34 = vpop.f32.mrb[40].mxu1 }
 0x986   :  { %v4838_v21 = vpop.f32.mrb[41].mxu1  ;;  %v2551_v63 = vadd.f32 %v2530_v34, %v7523_v48 }
 0x988   :  { %v2459_v4 = vpop.f32.mrb[16].mxu0 }
 0x989   :  { %v6333_v42 = vadd.f32 %v2459_v4, %v7515_v26  ;;  %v2461_v17 = vpop.f32.mrb[17].mxu0 }
 0x98a   :  { %v6334_v40 = vadd.f32 %v2461_v17, %v7519_v1 }
 0x98b   :  { %v3998_v55 = vmul.f32 -1.442695, %v6333_v42 }
 0x98c   :  { %v3999_v43 = vmul.f32 -1.442695, %v6334_v40 }
 0x98d   :  { %6496 = vpow2.f32 %v3998_v55 }
 0x98e   :  { %6498 = vpow2.f32 %v3999_v43 }
 0x997   :  { %v6497_v22 = vpop.eup %6496 }
 0x998   :  { %v2541_v58 = vadd.f32 1.0, %v6497_v22  ;;  %v6499_v27 = vpop.eup %6498 }
 0x999   :  { %v2548_v33 = vadd.f32 1.0, %v6499_v27 }
 0x99a   :  { %6500 = vrcp.f32 %v2541_v58 }
 0x99b   :  { %6502 = vrcp.f32 %v2548_v33 }
 0x9a4   :  { %v6501_v28 = vpop.eup %6500 }
 0x9a5   :  { %v2552_v41 = vmul.f32 %v6501_v28, %v2551_v63  ;;  %v6503_v21 = vpop.eup %6502 }
 0x9a6   :  { %v2555_v4 = vsub.f32 1.0, %v6503_v21  ;;  %v2557_v55 = vmul.f32 0.0, %v6503_v21 }
 0x9a7   :  { %v2553_v54 = vadd.f32 %v2552_v41, %v2536_v32 }
 0x9a9   :  { %6504 = vtanh.f32 %v2553_v54 }
 0x9b3   :  { %v6505_v42 = vpop.eup %6504 }
 0x9b4   :  { %v2556_v17 = vmul.f32 %v6505_v42, %v2555_v4 }
 0x9b6   :  { %v2558_v40 = vadd.f32 %v2557_v55, %v2556_v17 }
 0x9b8   :  { %4000 = vmatmul.mubr.msk.f32.vlgmr.msra.gmra.mrb[18].mxu0 %vm6948_vm3, %v2558_v40  ;;  %4872 = vmatmul.mubr.msk.f32.vlgmr.msra.gmra.mrb[42].mxu1 %vm6948_vm3, %v2558_v40 }
 0x9b9   :  { %5912 = vmatpush1.bf16.msra.mxu0 %v7353_v62  ;;  %5943 = vmatpush3.bf16.msra.mxu1 %v7349_v9 }
 0x9ba   :  { %5914 = vmatprep.subr.bf16.mxu0 %v7356_v37  ;;  %5944 = vmatprep.subr.bf16.mxu1 %v6686_v5 }
 0x9bb   :  { %2791 = vmatprep.mubr.f32.mxu0 %v6685_v0  ;;  %4906 = vmatprep.mubr.msk.f32.mxu1 %vm6687_vm1, %v6685_v0 }
 0x9bd   :  { %5916 = vmatpush1.bf16.msra.mxu0 %v7367_v56  ;;  %5946 = vmatpush3.bf16.msra.mxu1 %v7359_v51 }
 0x9be   :  { %5918 = vmatprep.subr.bf16.mxu0 %v7371_v59  ;;  %5947 = vmatprep.subr.bf16.mxu1 %v6686_v5 }
 0x9c1   :  { %5920 = vmatpush1.bf16.msra.mxu0 %v7378_v45  ;;  %5949 = vmatpush3.bf16.msra.mxu1 %v7384_v23 }
 0x9c2   :  { %5922 = vmatprep.subr.bf16.mxu0 %v7382_v46  ;;  %5950 = vmatprep.subr.bf16.mxu1 %v6686_v5 }
 0x9c5   :  { %5924 = vmatpush1.bf16.msra.mxu0 %v7391_v44  ;;  %5952 = vmatpush3.bf16.msra.mxu1 %v7397_v15 }
 0x9c6   :  { %5926 = vmatprep.subr.bf16.mxu0 %v7394_v53  ;;  %5953 = vmatprep.subr.bf16.mxu1 %v6686_v5 }
 0x9c9   :  { %5928 = vmatpush1.bf16.msra.mxu0 %v7405_v25  ;;  %5955 = vmatpush3.bf16.msra.mxu1 %v7411_v50 }
 0x9ca   :  { %5930 = vmatprep.subr.bf16.mxu0 %v7408_v29  ;;  %5956 = vmatprep.subr.bf16.mxu1 %v6686_v5 }
 0x9cd   :  { %5932 = vmatpush1.bf16.msra.mxu0 %v7417_v35  ;;  %5958 = vmatpush3.bf16.msra.mxu1 %v7423_v36 }
 0x9ce   :  { %5934 = vmatprep.subr.bf16.mxu0 %v7420_v38  ;;  %5959 = vmatprep.subr.bf16.mxu1 %v6686_v5 }
 0x9d1   :  { %5936 = vmatpush1.bf16.msra.mxu0 %v7429_v18  ;;  %5961 = vmatpush3.bf16.msra.mxu1 %v7435_v10 }
 0x9d2   :  { %5938 = vmatprep.subr.bf16.mxu0 %v7432_v57  ;;  %5962 = vmatprep.subr.bf16.mxu1 %v6686_v5 }
 0x9d5   :  { %5940 = vmatpush1.bf16.msra.mxu0 %v7441_v19  ;;  %5964 = vmatpush3.bf16.msra.mxu1 %v7445_v20 }
 0x9d6   :  { %5966 = vmatprep.subr.bf16.mxu0 %v7310_v31  ;;  %5997 = vmatprep.subr.bf16.mxu1 %v6686_v5 }
 0xa8b   :  { %v2626_v32 = vpop.f32.mrb[18].mxu0  ;;  %v2697_v34 = vpop.f32.mrb[42].mxu1 }
 0xa8c   :  { %v6335_v43 = vadd.f32 %v2626_v32, %v7515_v26  ;;  %v2628_v22 = vpop.f32.mrb[19].mxu0  ;;  %v4873_v58 = vpop.f32.mrb[43].mxu1  ;;  %v2718_v4 = vadd.f32 %v2697_v34, %v7523_v48  ;;  %v2559_v32 = vsel %vm6948_vm3, %v2558_v40, 0.0 }
 0xa8d   :  { %v6336_v27 = vadd.f32 %v2628_v22, %v7519_v1 }
 0xa8e   :  { %v4002_v33 = vmul.f32 -1.442695, %v6335_v43 }
 0xa8f   :  { %v4003_v63 = vmul.f32 -1.442695, %v6336_v27 }
 0xa90   :  { %6506 = vpow2.f32 %v4002_v33 }
 0xa91   :  { %6508 = vpow2.f32 %v4003_v63 }
 0xa9a   :  { %v6507_v28 = vpop.eup %6506 }
 0xa9b   :  { %v6509_v41 = vpop.eup %6508  ;;  %v2708_v54 = vadd.f32 1.0, %v6507_v28 }
 0xa9c   :  { %v2715_v21 = vadd.f32 1.0, %v6509_v41 }
 0xa9d   :  { %6510 = vrcp.f32 %v2708_v54 }
 0xa9e   :  { %6512 = vrcp.f32 %v2715_v21 }
 0xaa7   :  { %v6511_v42 = vpop.eup %6510 }
 0xaa8   :  { %v6513_v17 = vpop.eup %6512  ;;  %v2719_v55 = vmul.f32 %v6511_v42, %v2718_v4 }
 0xaa9   :  { %v2724_v58 = vmul.f32 %v6513_v17, %v2559_v32  ;;  %v2722_v22 = vsub.f32 1.0, %v6513_v17 }
 0xaaa   :  { %v2720_v43 = vadd.f32 %v2719_v55, %v7511_v7 }
 0xaac   :  { %6514 = vtanh.f32 %v2720_v43 }
 0xab6   :  { %v6515_v27 = vpop.eup %6514 }
 0xab7   :  { %v2723_v33 = vmul.f32 %v6515_v27, %v2722_v22 }
 0xab9   :  { %v2725_v63 = vadd.f32 %v2724_v58, %v2723_v33 }
 0xabb   :  { %v7574_v28 = vsel %vm333_vm4, %v2725_v63, %v2559_v32 }
 0xabc   :  { %2792 = vmatmul.mubr.f32.vlgmr.msra.gmra.mrb[20].mxu0 %v7574_v28  ;;  %4907 = vmatmul.mubr.f32.vlgmr.msra.gmra.mrb[44].mxu1 %v7574_v28 }
 0xabd   :  { %5968 = vmatpush1.bf16.msra.mxu0 %v7353_v62  ;;  %5999 = vmatpush3.bf16.msra.mxu1 %v7349_v9 }
 0xabe   :  { %5970 = vmatprep.subr.bf16.mxu0 %v7356_v37  ;;  %6000 = vmatprep.subr.bf16.mxu1 %v6686_v5 }
 0xabf   :  { %2958 = vmatprep.mubr.f32.mxu0 %v6685_v0  ;;  %4941 = vmatprep.mubr.msk.f32.mxu1 %vm6687_vm1, %v6685_v0 }
 0xac1   :  { %5972 = vmatpush1.bf16.msra.mxu0 %v7367_v56  ;;  %6002 = vmatpush3.bf16.msra.mxu1 %v7359_v51 }
 0xac2   :  { %5974 = vmatprep.subr.bf16.mxu0 %v7371_v59  ;;  %6003 = vmatprep.subr.bf16.mxu1 %v6686_v5 }
 0xac5   :  { %5976 = vmatpush1.bf16.msra.mxu0 %v7378_v45  ;;  %6005 = vmatpush3.bf16.msra.mxu1 %v7384_v23 }
 0xac6   :  { %5978 = vmatprep.subr.bf16.mxu0 %v7382_v46  ;;  %6006 = vmatprep.subr.bf16.mxu1 %v6686_v5 }
 0xac9   :  { %5980 = vmatpush1.bf16.msra.mxu0 %v7391_v44  ;;  %6008 = vmatpush3.bf16.msra.mxu1 %v7397_v15 }
 0xaca   :  { %5982 = vmatprep.subr.bf16.mxu0 %v7394_v53  ;;  %6009 = vmatprep.subr.bf16.mxu1 %v6686_v5 }
 0xacd   :  { %5984 = vmatpush1.bf16.msra.mxu0 %v7405_v25  ;;  %6011 = vmatpush3.bf16.msra.mxu1 %v7411_v50 }
 0xace   :  { %5986 = vmatprep.subr.bf16.mxu0 %v7408_v29  ;;  %6012 = vmatprep.subr.bf16.mxu1 %v6686_v5 }
 0xad1   :  { %5988 = vmatpush1.bf16.msra.mxu0 %v7417_v35  ;;  %6014 = vmatpush3.bf16.msra.mxu1 %v7423_v36 }
 0xad2   :  { %5990 = vmatprep.subr.bf16.mxu0 %v7420_v38  ;;  %6015 = vmatprep.subr.bf16.mxu1 %v6686_v5 }
 0xad5   :  { %5992 = vmatpush1.bf16.msra.mxu0 %v7429_v18  ;;  %6017 = vmatpush3.bf16.msra.mxu1 %v7435_v10 }
 0xad6   :  { %5994 = vmatprep.subr.bf16.mxu0 %v7432_v57  ;;  %6018 = vmatprep.subr.bf16.mxu1 %v6686_v5 }
 0xad9   :  { %5996 = vmatpush1.bf16.msra.mxu0 %v7441_v19  ;;  %6020 = vmatpush3.bf16.msra.mxu1 %v7445_v20 }
 0xada   :  { %6022 = vmatprep.subr.bf16.mxu0 %v7310_v31  ;;  %6053 = vmatprep.subr.bf16.mxu1 %v6686_v5 }
 0xb8f   :  { %v2793_v3 = vpop.f32.mrb[20].mxu0  ;;  %v2864_v39 = vpop.f32.mrb[44].mxu1 }
 0xb90   :  { %v6337_v7 = vadd.f32 %v2793_v3, %v7515_v26  ;;  %v2795_v40 = vpop.f32.mrb[21].mxu0  ;;  %v4908_v34 = vpop.f32.mrb[45].mxu1  ;;  %v2885_v32 = vadd.f32 %v2864_v39, %v7523_v48 }
 0xb91   :  { %v6338_v54 = vadd.f32 %v2795_v40, %v7519_v1 }
 0xb92   :  { %v4004_v41 = vmul.f32 -1.442695, %v6337_v7 }
 0xb93   :  { %v4005_v21 = vmul.f32 -1.442695, %v6338_v54 }
 0xb94   :  { %6516 = vpow2.f32 %v4004_v41 }
 0xb95   :  { %6518 = vpow2.f32 %v4005_v21 }
 0xb9e   :  { %v6517_v4 = vpop.eup %6516 }
 0xb9f   :  { %v2875_v42 = vadd.f32 1.0, %v6517_v4  ;;  %v6519_v17 = vpop.eup %6518 }
 0xba0   :  { %v2882_v55 = vadd.f32 1.0, %v6519_v17 }
 0xba1   :  { %6520 = vrcp.f32 %v2875_v42 }
 0xba2   :  { %6522 = vrcp.f32 %v2882_v55 }
 0xbab   :  { %v6521_v58 = vpop.eup %6520 }
 0xbac   :  { %v2886_v43 = vmul.f32 %v6521_v58, %v2885_v32  ;;  %v6523_v27 = vpop.eup %6522 }
 0xbad   :  { %v2889_v33 = vsub.f32 1.0, %v6523_v27  ;;  %v2891_v7 = vmul.f32 %v6523_v27, %v7574_v28 }
 0xbae   :  { %v2887_v22 = vadd.f32 %v2886_v43, %v7505_v47 }
 0xbb0   :  { %6524 = vtanh.f32 %v2887_v22 }
 0xbba   :  { %v6525_v63 = vpop.eup %6524 }
 0xbbb   :  { %v2890_v3 = vmul.f32 %v6525_v63, %v2889_v33 }
 0xbbd   :  { %v2892_v40 = vadd.f32 %v2891_v7, %v2890_v3 }
 0xbbf   :  { %v7622_v34 = vsel %vm335_vm5, %v2892_v40, %v7574_v28 }
 0xbc0   :  { %2959 = vmatmul.mubr.f32.vlgmr.msra.gmra.mrb[22].mxu0 %v7622_v34  ;;  %4942 = vmatmul.mubr.f32.vlgmr.msra.gmra.mrb[46].mxu1 %v7622_v34 }
 0xbc1   :  { %6024 = vmatpush1.bf16.msra.mxu0 %v7353_v62  ;;  %6055 = vmatpush3.bf16.msra.mxu1 %v7349_v9 }
 0xbc2   :  { %6026 = vmatprep.subr.bf16.mxu0 %v7356_v37  ;;  %6056 = vmatprep.subr.bf16.mxu1 %v6686_v5 }
 0xbc3   :  { %3125 = vmatprep.mubr.f32.mxu0 %v6685_v0  ;;  %4976 = vmatprep.mubr.msk.f32.mxu1 %vm6687_vm1, %v6685_v0 }
 0xbc5   :  { %6028 = vmatpush1.bf16.msra.mxu0 %v7367_v56  ;;  %6058 = vmatpush3.bf16.msra.mxu1 %v7359_v51 }
 0xbc6   :  { %6030 = vmatprep.subr.bf16.mxu0 %v7371_v59  ;;  %6059 = vmatprep.subr.bf16.mxu1 %v6686_v5 }
 0xbc9   :  { %6032 = vmatpush1.bf16.msra.mxu0 %v7378_v45  ;;  %6061 = vmatpush3.bf16.msra.mxu1 %v7384_v23 }
 0xbca   :  { %6034 = vmatprep.subr.bf16.mxu0 %v7382_v46  ;;  %6062 = vmatprep.subr.bf16.mxu1 %v6686_v5 }
 0xbcd   :  { %6036 = vmatpush1.bf16.msra.mxu0 %v7391_v44  ;;  %6064 = vmatpush3.bf16.msra.mxu1 %v7397_v15 }
 0xbce   :  { %6038 = vmatprep.subr.bf16.mxu0 %v7394_v53  ;;  %6065 = vmatprep.subr.bf16.mxu1 %v6686_v5 }
 0xbd1   :  { %6040 = vmatpush1.bf16.msra.mxu0 %v7405_v25  ;;  %6067 = vmatpush3.bf16.msra.mxu1 %v7411_v50 }
 0xbd2   :  { %6042 = vmatprep.subr.bf16.mxu0 %v7408_v29  ;;  %6068 = vmatprep.subr.bf16.mxu1 %v6686_v5 }
 0xbd5   :  { %6044 = vmatpush1.bf16.msra.mxu0 %v7417_v35  ;;  %6070 = vmatpush3.bf16.msra.mxu1 %v7423_v36 }
 0xbd6   :  { %6046 = vmatprep.subr.bf16.mxu0 %v7420_v38  ;;  %6071 = vmatprep.subr.bf16.mxu1 %v6686_v5 }
 0xbd9   :  { %6048 = vmatpush1.bf16.msra.mxu0 %v7429_v18  ;;  %6073 = vmatpush3.bf16.msra.mxu1 %v7435_v10 }
 0xbda   :  { %6050 = vmatprep.subr.bf16.mxu0 %v7432_v57  ;;  %6074 = vmatprep.subr.bf16.mxu1 %v6686_v5 }
 0xbdd   :  { %6052 = vmatpush1.bf16.msra.mxu0 %v7441_v19  ;;  %6076 = vmatpush3.bf16.msra.mxu1 %v7445_v20 }
 0xbde   :  { %6078 = vmatprep.subr.bf16.mxu0 %v7310_v31  ;;  %6109 = vmatprep.subr.bf16.mxu1 %v6686_v5 }
 0xc93   :  { %v2960_v49 = vpop.f32.mrb[22].mxu0  ;;  %v3031_v47 = vpop.f32.mrb[46].mxu1 }
 0xc94   :  { %v6339_v28 = vadd.f32 %v2960_v49, %v7515_v26  ;;  %v2962_v39 = vpop.f32.mrb[23].mxu0  ;;  %v4943_v41 = vpop.f32.mrb[47].mxu1  ;;  %v3052_v58 = vadd.f32 %v3031_v47, %v7523_v48 }
 0xc95   :  { %v6340_v21 = vadd.f32 %v2962_v39, %v7519_v1 }
 0xc96   :  { %v4006_v54 = vmul.f32 -1.442695, %v6339_v28 }
 0xc97   :  { %v4007_v4 = vmul.f32 -1.442695, %v6340_v21 }
 0xc98   :  { %6526 = vpow2.f32 %v4006_v54 }
 0xc99   :  { %6528 = vpow2.f32 %v4007_v4 }
 0xca2   :  { %v6527_v42 = vpop.eup %6526 }
 0xca3   :  { %v3042_v17 = vadd.f32 1.0, %v6527_v42  ;;  %v6529_v55 = vpop.eup %6528 }
 0xca4   :  { %v3049_v32 = vadd.f32 1.0, %v6529_v55 }
 0xca5   :  { %6530 = vrcp.f32 %v3042_v17 }
 0xca6   :  { %6532 = vrcp.f32 %v3049_v32 }
 0xcaf   :  { %v6531_v43 = vpop.eup %6530 }
 0xcb0   :  { %v3053_v22 = vmul.f32 %v6531_v43, %v3052_v58  ;;  %v6533_v33 = vpop.eup %6532 }
 0xcb1   :  { %v3056_v63 = vsub.f32 1.0, %v6533_v33  ;;  %v3058_v40 = vmul.f32 %v6533_v33, %v7622_v34 }
 0xcb2   :  { %v3054_v27 = vadd.f32 %v3053_v22, %v7507_v12 }
 0xcb4   :  { %6534 = vtanh.f32 %v3054_v27 }
 0xcbe   :  { %v6535_v3 = vpop.eup %6534 }
 0xcbf   :  { %v3057_v7 = vmul.f32 %v6535_v3, %v3056_v63 }
 0xcc1   :  { %v3059_v49 = vadd.f32 %v3058_v40, %v3057_v7 }
 0xcc3   :  { %v7670_v28 = vsel %vm337_vm6, %v3059_v49, %v7622_v34 }
 0xcc4   :  { %3126 = vmatmul.mubr.f32.vlgmr.msra.gmra.mrb[24].mxu0 %v7670_v28  ;;  %4977 = vmatmul.mubr.f32.vlgmr.msra.gmra.mrb[48].mxu1 %v7670_v28 }
 0xcc5   :  { %6080 = vmatpush1.bf16.msra.mxu0 %v7353_v62  ;;  %6111 = vmatpush3.bf16.msra.mxu1 %v7349_v9 }
 0xcc6   :  { %6082 = vmatprep.subr.bf16.mxu0 %v7356_v37  ;;  %6112 = vmatprep.subr.bf16.mxu1 %v6686_v5 }
 0xcc7   :  { %3292 = vmatprep.mubr.f32.mxu0 %v6685_v0  ;;  %5011 = vmatprep.mubr.msk.f32.mxu1 %vm6687_vm1, %v6685_v0 }
 0xcc9   :  { %6084 = vmatpush1.bf16.msra.mxu0 %v7367_v56  ;;  %6114 = vmatpush3.bf16.msra.mxu1 %v7359_v51 }
 0xcca   :  { %6086 = vmatprep.subr.bf16.mxu0 %v7371_v59  ;;  %6115 = vmatprep.subr.bf16.mxu1 %v6686_v5 }
 0xccd   :  { %6088 = vmatpush1.bf16.msra.mxu0 %v7378_v45  ;;  %6117 = vmatpush3.bf16.msra.mxu1 %v7384_v23 }
 0xcce   :  { %6090 = vmatprep.subr.bf16.mxu0 %v7382_v46  ;;  %6118 = vmatprep.subr.bf16.mxu1 %v6686_v5 }
 0xcd1   :  { %6092 = vmatpush1.bf16.msra.mxu0 %v7391_v44  ;;  %6120 = vmatpush3.bf16.msra.mxu1 %v7397_v15 }
 0xcd2   :  { %6094 = vmatprep.subr.bf16.mxu0 %v7394_v53  ;;  %6121 = vmatprep.subr.bf16.mxu1 %v6686_v5 }
 0xcd5   :  { %6096 = vmatpush1.bf16.msra.mxu0 %v7405_v25  ;;  %6123 = vmatpush3.bf16.msra.mxu1 %v7411_v50 }
 0xcd6   :  { %6098 = vmatprep.subr.bf16.mxu0 %v7408_v29  ;;  %6124 = vmatprep.subr.bf16.mxu1 %v6686_v5 }
 0xcd9   :  { %6100 = vmatpush1.bf16.msra.mxu0 %v7417_v35  ;;  %6126 = vmatpush3.bf16.msra.mxu1 %v7423_v36 }
 0xcda   :  { %6102 = vmatprep.subr.bf16.mxu0 %v7420_v38  ;;  %6127 = vmatprep.subr.bf16.mxu1 %v6686_v5 }
 0xcdd   :  { %6104 = vmatpush1.bf16.msra.mxu0 %v7429_v18  ;;  %6129 = vmatpush3.bf16.msra.mxu1 %v7435_v10 }
 0xcde   :  { %6106 = vmatprep.subr.bf16.mxu0 %v7432_v57  ;;  %6130 = vmatprep.subr.bf16.mxu1 %v6686_v5 }
 0xce1   :  { %6108 = vmatpush1.bf16.msra.mxu0 %v7441_v19  ;;  %6132 = vmatpush3.bf16.msra.mxu1 %v7445_v20 }
 0xce2   :  { %6134 = vmatprep.subr.bf16.mxu0 %v7310_v31  ;;  %6165 = vmatprep.subr.bf16.mxu1 %v6686_v5 }
 0xd97   :  { %v3127_v13 = vpop.f32.mrb[24].mxu0  ;;  %v3198_v12 = vpop.f32.mrb[48].mxu1 }
 0xd98   :  { %v6341_v34 = vadd.f32 %v3127_v13, %v7515_v26  ;;  %v3129_v47 = vpop.f32.mrb[25].mxu0  ;;  %v4978_v39 = vpop.f32.mrb[49].mxu1  ;;  %v3219_v32 = vadd.f32 %v3198_v12, %v7523_v48 }
 0xd99   :  { %v6342_v54 = vadd.f32 %v3129_v47, %v7519_v1 }
 0xd9a   :  { %v4008_v41 = vmul.f32 -1.442695, %v6341_v34 }
 0xd9b   :  { %v4009_v21 = vmul.f32 -1.442695, %v6342_v54 }
 0xd9c   :  { %6536 = vpow2.f32 %v4008_v41 }
 0xd9d   :  { %6538 = vpow2.f32 %v4009_v21 }
 0xda6   :  { %v6537_v4 = vpop.eup %6536 }
 0xda7   :  { %v3209_v42 = vadd.f32 1.0, %v6537_v4  ;;  %v6539_v17 = vpop.eup %6538 }
 0xda8   :  { %v3216_v55 = vadd.f32 1.0, %v6539_v17 }
 0xda9   :  { %6540 = vrcp.f32 %v3209_v42 }
 0xdaa   :  { %6542 = vrcp.f32 %v3216_v55 }
 0xdb3   :  { %v6541_v58 = vpop.eup %6540 }
 0xdb4   :  { %v3220_v43 = vmul.f32 %v6541_v58, %v3219_v32  ;;  %v6543_v27 = vpop.eup %6542 }
 0xdb5   :  { %v3223_v33 = vsub.f32 1.0, %v6543_v27  ;;  %v3225_v7 = vmul.f32 %v6543_v27, %v7670_v28 }
 0xdb6   :  { %v3221_v22 = vadd.f32 %v3220_v43, %v7499_v61 }
 0xdb8   :  { %6544 = vtanh.f32 %v3221_v22 }
 0xdc2   :  { %v6545_v63 = vpop.eup %6544 }
 0xdc3   :  { %v3224_v3 = vmul.f32 %v6545_v63, %v3223_v33 }
 0xdc5   :  { %v3226_v40 = vadd.f32 %v3225_v7, %v3224_v3  ;;  %v272_v3 = vld [vmem:[#allocation8 + $0x6f0] sm:$0xff]  ;;  %v273_v7 = vld [vmem:[#allocation8 + $0x708] sm:$0xff] }
 0xdc7   :  { %v7718_v49 = vsel %vm339_vm7, %v3226_v40, %v7670_v28 }
 0xdc8   :  { %3293 = vmatmul.mubr.f32.vlgmr.msra.gmra.mrb[26].mxu0 %v7718_v49  ;;  %5012 = vmatmul.mubr.f32.vlgmr.msra.gmra.mrb[50].mxu1 %v7718_v49 }
 0xdc9   :  { %6136 = vmatpush1.bf16.msra.mxu0 %v7353_v62  ;;  %6167 = vmatpush3.bf16.msra.mxu1 %v7349_v9 }
 0xdca   :  { %6138 = vmatprep.subr.bf16.mxu0 %v7356_v37  ;;  %6168 = vmatprep.subr.bf16.mxu1 %v6686_v5 }
 0xdcb   :  { %3459 = vmatprep.mubr.f32.mxu0 %v6685_v0  ;;  %5046 = vmatprep.mubr.msk.f32.mxu1 %vm6687_vm1, %v6685_v0 }
 0xdcd   :  { %6140 = vmatpush1.bf16.msra.mxu0 %v7367_v56  ;;  %6170 = vmatpush3.bf16.msra.mxu1 %v7359_v51 }
 0xdce   :  { %6142 = vmatprep.subr.bf16.mxu0 %v7371_v59  ;;  %6171 = vmatprep.subr.bf16.mxu1 %v6686_v5 }
 0xdd1   :  { %6144 = vmatpush1.bf16.msra.mxu0 %v7378_v45  ;;  %6173 = vmatpush3.bf16.msra.mxu1 %v7384_v23 }
 0xdd2   :  { %6146 = vmatprep.subr.bf16.mxu0 %v7382_v46  ;;  %6174 = vmatprep.subr.bf16.mxu1 %v6686_v5 }
 0xdd5   :  { %6148 = vmatpush1.bf16.msra.mxu0 %v7391_v44  ;;  %6176 = vmatpush3.bf16.msra.mxu1 %v7397_v15 }
 0xdd6   :  { %6150 = vmatprep.subr.bf16.mxu0 %v7394_v53  ;;  %6177 = vmatprep.subr.bf16.mxu1 %v6686_v5 }
 0xdd9   :  { %6152 = vmatpush1.bf16.msra.mxu0 %v7405_v25  ;;  %6179 = vmatpush3.bf16.msra.mxu1 %v7411_v50 }
 0xdda   :  { %6154 = vmatprep.subr.bf16.mxu0 %v7408_v29  ;;  %6180 = vmatprep.subr.bf16.mxu1 %v6686_v5 }
 0xddd   :  { %6156 = vmatpush1.bf16.msra.mxu0 %v7417_v35  ;;  %6182 = vmatpush3.bf16.msra.mxu1 %v7423_v36 }
 0xdde   :  { %6158 = vmatprep.subr.bf16.mxu0 %v7420_v38  ;;  %6183 = vmatprep.subr.bf16.mxu1 %v6686_v5 }
 0xde1   :  { %6160 = vmatpush1.bf16.msra.mxu0 %v7429_v18  ;;  %6185 = vmatpush3.bf16.msra.mxu1 %v7435_v10 }
 0xde2   :  { %6162 = vmatprep.subr.bf16.mxu0 %v7432_v57  ;;  %6186 = vmatprep.subr.bf16.mxu1 %v6686_v5 }
 0xde5   :  { %6164 = vmatpush1.bf16.msra.mxu0 %v7441_v19  ;;  %6188 = vmatpush3.bf16.msra.mxu1 %v7445_v20 }
 0xde6   :  { %6221 = vmatprep.subr.bf16.mxu1 %v6686_v5  ;;  %6190 = vmatprep.subr.bf16.mxu0 %v7310_v31 }
 0xe9b   :  { %v3294_v8 = vpop.f32.mrb[26].mxu0  ;;  %v3365_v61 = vpop.f32.mrb[50].mxu1 }
 0xe9c   :  { %v6343_v28 = vadd.f32 %v3294_v8, %v7515_v26  ;;  %v3296_v13 = vpop.f32.mrb[27].mxu0  ;;  %v5013_v12 = vpop.f32.mrb[51].mxu1  ;;  %v3386_v42 = vadd.f32 %v3365_v61, %v7523_v48  ;;  %v275_v8 = vld [vmem:[#allocation8 + $0x738] sm:$0xff]  ;;  %v277_v61 = vld [vmem:[#allocation8 + $0x768] sm:$0xff] }
 0xe9d   :  { %v6344_v47 = vadd.f32 %v3296_v13, %v7519_v1  ;;  %v278_v13 = vld [vmem:[#allocation8 + $0x780] sm:$0xff]  ;;  %v279_v12 = vld [vmem:[#allocation8 + $0x798] sm:$0xff] }
 0xe9e   :  { %v4010_v34 = vmul.f32 -1.442695, %v6343_v28  ;;  %v6279_v28 = vpack.c.bf16 %v277_v61, %v276_v11 }
 0xe9f   :  { %v4011_v39 = vmul.f32 -1.442695, %v6344_v47  ;;  %v280_v47 = vld [vmem:[#allocation8 + $0x7b0] sm:$0xff] }
 0xea0   :  { %6546 = vpow2.f32 %v4010_v34  ;;  %v6282_v34 = vpack.c.bf16 %v279_v12, %v278_v13  ;;  %v302_v13 = vld [vmem:[#allocation8 + $0x9c0] sm:$0xff]  ;;  %v303_v12 = vld [vmem:[#allocation8 + $0x9d8] sm:$0xff] }
 0xea1   :  { %6548 = vpow2.f32 %v4011_v39  ;;  %v281_v39 = vld [vmem:[#allocation8 + $0x7c8] sm:$0xff] }
 0xeaa   :  { %v6547_v41 = vpop.eup %6546 }
 0xeab   :  { %v3376_v54 = vadd.f32 1.0, %v6547_v41  ;;  %v6549_v21 = vpop.eup %6548  ;;  %v6285_v41 = vpack.c.bf16 %v281_v39, %v280_v47 }
 0xeac   :  { %v3383_v4 = vadd.f32 1.0, %v6549_v21  ;;  %v283_v21 = vld [vmem:[#allocation8 + $0x7f8] sm:$0xff] }
 0xead   :  { %6550 = vrcp.f32 %v3376_v54  ;;  %v282_v54 = vld [vmem:[#allocation8 + $0x7e0] sm:$0xff] }
 0xeae   :  { %6552 = vrcp.f32 %v3383_v4  ;;  %v6288_v4 = vpack.c.bf16 %v283_v21, %v282_v54  ;;  %v304_v54 = vld [vmem:[#allocation8 + $0x9f0] sm:$0xff] }
 0xeb7   :  { %v6551_v31 = vpop.eup %6550 }
 0xeb8   :  { %v3387_v17 = vmul.f32 %v6551_v31, %v3386_v42  ;;  %v6553_v32 = vpop.eup %6552  ;;  %v284_v42 = vld [vmem:[#allocation8 + $0x810] sm:$0xff]  ;;  %v285_v31 = vld [vmem:[#allocation8 + $0x828] sm:$0xff] }
 0xeb9   :  { %v3390_v58 = vsub.f32 1.0, %v6553_v32  ;;  %v3392_v27 = vmul.f32 %v6553_v32, %v7718_v49  ;;  %v287_v32 = vld [vmem:[#allocation8 + $0x858] sm:$0xff] }
 0xeba   :  { %v3388_v55 = vadd.f32 %v3387_v17, %v7501_v14  ;;  %v6291_v17 = vpack.c.bf16 %v285_v31, %v284_v42  ;;  %v307_v42 = vld [vmem:[#allocation8 + $0xa38] sm:$0xff] }
 0xebc   :  { %6554 = vtanh.f32 %v3388_v55  ;;  %v286_v55 = vld [vmem:[#allocation8 + $0x840] sm:$0xff] }
 0xec6   :  { %v6555_v43 = vpop.eup %6554 }
 0xec7   :  { %v3391_v22 = vmul.f32 %v6555_v43, %v3390_v58  ;;  %v6246_v58 = vpack.c.bf16 %v287_v32, %v286_v55  ;;  %v288_v43 = vld [vmem:[#allocation8 + $0x870] sm:$0xff]  ;;  %v309_v55 = vld [vmem:[#allocation8 + $0xa68] sm:$0xff] }
 0xec9   :  { %v3393_v33 = vadd.f32 %v3392_v27, %v3391_v22  ;;  %v289_v22 = vld [vmem:[#allocation8 + $0x888] sm:$0xff] }
 0xeca   :  { %v6249_v27 = vpack.c.bf16 %v289_v22, %v288_v43  ;;  %v314_v22 = vld [vmem:[#allocation8 + $0xae0] sm:$0xff] }
 0xecb   :  { %v7766_v63 = vsel %vm341_vm8, %v3393_v33, %v7718_v49  ;;  %v274_v49 = vld [vmem:[#allocation8 + $0x720] sm:$0xff] }
 0xecc   :  { %3460 = vmatmul.mubr.f32.vlgmr.msra.gmra.mrb[28].mxu0 %v7766_v63  ;;  %5047 = vmatmul.mubr.f32.vlgmr.msra.gmra.mrb[52].mxu1 %v7766_v63  ;;  %v6276_v24 = vpack.c.bf16 %v275_v8, %v274_v49  ;;  %v290_v33 = vld [vmem:[#allocation8 + $0x8a0] sm:$0xff] }
 0xecd   :  { %6223 = vmatpush3.bf16.msra.mxu1 %v7349_v9  ;;  %6192 = vmatpush1.bf16.msra.mxu0 %v7353_v62 }
 0xece   :  { %6224 = vmatprep.subr.bf16.mxu1 %v6686_v5  ;;  %6194 = vmatprep.subr.bf16.mxu0 %v7356_v37 }
 0xecf   :  { %3626 = vmatprep.mubr.f32.mxu0 %v6685_v0  ;;  %5081 = vmatprep.mubr.msk.f32.mxu1 %vm6687_vm1, %v6685_v0 }
 0xed1   :  { %6226 = vmatpush3.bf16.msra.mxu1 %v7359_v51  ;;  %6196 = vmatpush1.bf16.msra.mxu0 %v7367_v56 }
 0xed2   :  { %6227 = vmatprep.subr.bf16.mxu1 %v6686_v5  ;;  %6198 = vmatprep.subr.bf16.mxu0 %v7371_v59 }
 0xed5   :  { %6229 = vmatpush3.bf16.msra.mxu1 %v7384_v23  ;;  %6200 = vmatpush1.bf16.msra.mxu0 %v7378_v45 }
 0xed6   :  { %6230 = vmatprep.subr.bf16.mxu1 %v6686_v5  ;;  %6202 = vmatprep.subr.bf16.mxu0 %v7382_v46 }
 0xed9   :  { %6232 = vmatpush3.bf16.msra.mxu1 %v7397_v15  ;;  %6204 = vmatpush1.bf16.msra.mxu0 %v7391_v44 }
 0xeda   :  { %6233 = vmatprep.subr.bf16.mxu1 %v6686_v5  ;;  %6206 = vmatprep.subr.bf16.mxu0 %v7394_v53 }
 0xedd   :  { %6235 = vmatpush3.bf16.msra.mxu1 %v7411_v50  ;;  %6208 = vmatpush1.bf16.msra.mxu0 %v7405_v25 }
 0xede   :  { %6236 = vmatprep.subr.bf16.mxu1 %v6686_v5  ;;  %6210 = vmatprep.subr.bf16.mxu0 %v7408_v29 }
 0xee1   :  { %6238 = vmatpush3.bf16.msra.mxu1 %v7423_v36  ;;  %6212 = vmatpush1.bf16.msra.mxu0 %v7417_v35 }
 0xee2   :  { %6239 = vmatprep.subr.bf16.mxu1 %v6686_v5  ;;  %6214 = vmatprep.subr.bf16.mxu0 %v7420_v38 }
 0xee5   :  { %6241 = vmatpush3.bf16.msra.mxu1 %v7435_v10  ;;  %6216 = vmatpush1.bf16.msra.mxu0 %v7429_v18  ;;  %v270_v18 = vld [vmem:[#allocation8 + $0x6c0] sm:$0xff] }
 0xee6   :  { %6242 = vmatprep.subr.bf16.mxu1 %v6686_v5  ;;  %6218 = vmatprep.subr.bf16.mxu0 %v7432_v57  ;;  %v271_v57 = vld [vmem:[#allocation8 + $0x6d8] sm:$0xff] }
 0xee7   :  { %v6270_v14 = vpack.c.bf16 %v271_v57, %v270_v18 }
 0xee9   :  { %6244 = vmatpush3.bf16.msra.mxu1 %v7445_v20  ;;  %6220 = vmatpush1.bf16.msra.mxu0 %v7441_v19 }
 0xeea   :  { %6269 = vmatprep.subr.bf16.mxu1 %v6686_v5  ;;  %6245 = vmatprep.subr.bf16.mxu0 %v6686_v5 }
 0xf9f   :  { %v3461_v2 = vpop.f32.mrb[28].mxu0  ;;  %v3532_v9 = vpop.f32.mrb[52].mxu1 }
 0xfa0   :  { %v6345_v62 = vadd.f32 %v3461_v2, %v7515_v26  ;;  %v3463_v37 = vpop.f32.mrb[29].mxu0  ;;  %v5048_v51 = vpop.f32.mrb[53].mxu1  ;;  %v3553_v15 = vadd.f32 %v3532_v9, %v7523_v48  ;;  %v292_v9 = vld [vmem:[#allocation8 + $0x8d0] sm:$0xff] }
 0xfa1   :  { %v6346_v59 = vadd.f32 %v3463_v37, %v7519_v1  ;;  %v294_v37 = vld [vmem:[#allocation8 + $0x900] sm:$0xff]  ;;  %v295_v51 = vld [vmem:[#allocation8 + $0x918] sm:$0xff] }
 0xfa2   :  { %v4012_v56 = vmul.f32 -1.442695, %v6345_v62 }
 0xfa3   :  { %v4013_v45 = vmul.f32 -1.442695, %v6346_v59  ;;  %v296_v59 = vld [vmem:[#allocation8 + $0x930] sm:$0xff] }
 0xfa4   :  { %6556 = vpow2.f32 %v4012_v56  ;;  %v6258_v56 = vpack.c.bf16 %v295_v51, %v294_v37 }
 0xfa5   :  { %6558 = vpow2.f32 %v4013_v45  ;;  %v297_v45 = vld [vmem:[#allocation8 + $0x948] sm:$0xff] }
 0xfae   :  { %v6557_v46 = vpop.eup %6556 }
 0xfaf   :  { %v3543_v23 = vadd.f32 1.0, %v6557_v46  ;;  %v6559_v44 = vpop.eup %6558  ;;  %v6261_v46 = vpack.c.bf16 %v297_v45, %v296_v59  ;;  %v323_v45 = vld [vmem:[#allocation8 + $0xbb8] ss:$0 sm:$0xff] }
 0xfb0   :  { %v3550_v53 = vadd.f32 1.0, %v6559_v44  ;;  %v299_v44 = vld [vmem:[#allocation8 + $0x978] sm:$0xff] }
 0xfb1   :  { %6560 = vrcp.f32 %v3543_v23  ;;  %v298_v23 = vld [vmem:[#allocation8 + $0x960] sm:$0xff] }
 0xfb2   :  { %6562 = vrcp.f32 %v3550_v53  ;;  %v6264_v53 = vpack.c.bf16 %v299_v44, %v298_v23 }
 0xfbb   :  { %v6561_v25 = vpop.eup %6560 }
 0xfbc   :  { %v3554_v29 = vmul.f32 %v6561_v25, %v3553_v15  ;;  %v6563_v35 = vpop.eup %6562  ;;  %v300_v15 = vld [vmem:[#allocation8 + $0x990] sm:$0xff]  ;;  %v301_v25 = vld [vmem:[#allocation8 + $0x9a8] sm:$0xff] }
 0xfbd   :  { %v3557_v38 = vsub.f32 1.0, %v6563_v35  ;;  %v3559_v19 = vmul.f32 %v6563_v35, %v7766_v63 }
 0xfbe   :  { %v3555_v50 = vadd.f32 %v3554_v29, %v7493_v60  ;;  %v6273_v60 = vpack.c.bf16 %v273_v7, %v272_v3  ;;  %v6267_v29 = vpack.c.bf16 %v301_v25, %v300_v15 }
 0xfc0   :  { %6564 = vtanh.f32 %v3555_v50 }
 0xfca   :  { %v6565_v36 = vpop.eup %6564 }
 0xfcb   :  { %v3558_v10 = vmul.f32 %v6565_v36, %v3557_v38 }
 0xfcd   :  { %v3560_v20 = vadd.f32 %v3559_v19, %v3558_v10 }
 0xfcf   :  { %v7814_v40 = vsel %vm343_vm9, %v3560_v20, %v7766_v63  ;;  %v291_v63 = vld [vmem:[#allocation8 + $0x8b8] sm:$0xff] }
 0xfd0   :  { %3627 = vmatmul.mubr.f32.vlgmr.msra.gmra.mrb[30].mxu0 %v7814_v40  ;;  %5082 = vmatmul.mubr.f32.vlgmr.msra.gmra.mrb[54].mxu1 %v7814_v40  ;;  %v6252_v2 = vpack.c.bf16 %v291_v63, %v290_v33  ;;  %v316_v63 = vld [vmem:[#allocation8 + $0xb10] sm:$0xff] }
 0xfd1   :  { %6271 = vmatpush3.bf16.msra.mxu1 %v6270_v14  ;;  %5151 = vmatprep.mubr.msk.f32.mxu1 %vm6687_vm1, %v6685_v0 }
 0xfd2   :  { %6272 = vmatprep.subr.bf16.mxu1 %v6686_v5  ;;  %5116 = vmatprep.mubr.msk.f32.mxu0 %vm6687_vm1, %v6685_v0 }
 0xfd3   :  { %6247 = vmatpush3.bf16.msra.mxu0 %v6246_v58  ;;  %v313_v58 = vld [vmem:[#allocation8 + $0xac8] sm:$0xff] }
 0xfd4   :  { %6248 = vmatprep.subr.bf16.mxu0 %v6686_v5 }
 0xfd5   :  { %6274 = vmatpush3.bf16.msra.mxu1 %v6273_v60 }
 0xfd6   :  { %6275 = vmatprep.subr.bf16.mxu1 %v6686_v5 }
 0xfd7   :  { %6250 = vmatpush3.bf16.msra.mxu0 %v6249_v27  ;;  %v315_v27 = vld [vmem:[#allocation8 + $0xaf8] sm:$0xff] }
 0xfd8   :  { %6251 = vmatprep.subr.bf16.mxu0 %v6686_v5  ;;  %v6312_v33 = vpack.c.bf16 %v315_v27, %v314_v22 }
 0xfd9   :  { %6277 = vmatpush3.bf16.msra.mxu1 %v6276_v24 }
 0xfda   :  { %6278 = vmatprep.subr.bf16.mxu1 %v6686_v5 }
 0xfdb   :  { %6253 = vmatpush3.bf16.msra.mxu0 %v6252_v2  ;;  %v317_v2 = vld [vmem:[#allocation8 + $0xb28] sm:$0xff] }
 0xfdc   :  { %6254 = vmatprep.subr.bf16.mxu0 %v6686_v5 }
 0xfdd   :  { %6280 = vmatpush3.bf16.msra.mxu1 %v6279_v28 }
 0xfde   :  { %6281 = vmatprep.subr.bf16.mxu1 %v6686_v5 }
 0xfe1   :  { %6283 = vmatpush3.bf16.msra.mxu1 %v6282_v34 }
 0xfe2   :  { %6284 = vmatprep.subr.bf16.mxu1 %v6686_v5 }
 0xfe5   :  { %6286 = vmatpush3.bf16.msra.mxu1 %v6285_v41  ;;  %v6294_v41 = vpack.c.bf16 %v303_v12, %v302_v13 }
 0xfe6   :  { %6287 = vmatprep.subr.bf16.mxu1 %v6686_v5 }
 0xfe9   :  { %6289 = vmatpush3.bf16.msra.mxu1 %v6288_v4  ;;  %v306_v4 = vld [vmem:[#allocation8 + $0xa20] sm:$0xff] }
 0xfea   :  { %6290 = vmatprep.subr.bf16.mxu1 %v6686_v5  ;;  %v6300_v31 = vpack.c.bf16 %v307_v42, %v306_v4 }
 0xfed   :  { %6292 = vmatpush3.bf16.msra.mxu1 %v6291_v17  ;;  %v308_v17 = vld [vmem:[#allocation8 + $0xa50] sm:$0xff] }
 0xfee   :  { %v6303_v32 = vpack.c.bf16 %v309_v55, %v308_v17 }
 0xff0   :  { %5152 = vmatmul.mubr.f32.vlgmr.msra.gmra.mrb[56].mxu1 %v7341_v16  ;;  %v293_v16 = vld [vmem:[#allocation8 + $0x8e8] sm:$0xff] }
 0xff1   :  { %v6255_v62 = vpack.c.bf16 %v293_v16, %v292_v9  ;;  %v6315_v9 = vpack.c.bf16 %v317_v2, %v316_v63  ;;  %v322_v16 = vld [vmem:[#allocation8 + $0xba0] ss:$0 sm:$0xff] }
 0xff3   :  { %6256 = vmatpush3.bf16.msra.mxu0 %v6255_v62 }
 0xff4   :  { %6257 = vmatprep.subr.bf16.mxu0 %v6686_v5 }
 0xff7   :  { %6259 = vmatpush3.bf16.msra.mxu0 %v6258_v56 }
 0xff8   :  { %6260 = vmatprep.subr.bf16.mxu0 %v6686_v5 }
 0xffb   :  { %6262 = vmatpush3.bf16.msra.mxu0 %v6261_v46 }
 0xffc   :  { %6263 = vmatprep.subr.bf16.mxu0 %v6686_v5 }
 0xfff   :  { %6265 = vmatpush3.bf16.msra.mxu0 %v6264_v53 }
0x1000   :  { %6266 = vmatprep.subr.bf16.mxu0 %v6686_v5 }
0x1003   :  { %6268 = vmatpush3.bf16.msra.mxu0 %v6267_v29 }
0x1004   :  { %6293 = vmatprep.subr.bf16.mxu0 %v6686_v5 }
0x10a3   :  { %v3628_v50 = vpop.f32.mrb[30].mxu0  ;;  %v3699_v35 = vpop.f32.mrb[54].mxu1 }
0x10a4   :  { %v6347_v38 = vadd.f32 %v3628_v50, %v7515_v26  ;;  %v3630_v36 = vpop.f32.mrb[31].mxu0  ;;  %v5083_v18 = vpop.f32.mrb[55].mxu1  ;;  %v3720_v60 = vadd.f32 %v3699_v35, %v7523_v48  ;;  %v305_v48 = vld [vmem:[#allocation8 + $0xa08] sm:$0xff] }
0x10a5   :  { %v6348_v10 = vadd.f32 %v3630_v36, %v7519_v1  ;;  %v6297_v21 = vpack.c.bf16 %v305_v48, %v304_v54 }
0x10a6   :  { %v4014_v57 = vmul.f32 -1.442695, %v6347_v38 }
0x10a7   :  { %v4015_v19 = vmul.f32 -1.442695, %v6348_v10 }
0x10a8   :  { %6566 = vpow2.f32 %v4014_v57 }
0x10a9   :  { %6568 = vpow2.f32 %v4015_v19 }
0x10b2   :  { %v6567_v20 = vpop.eup %6566 }
0x10b3   :  { %v3710_v14 = vadd.f32 1.0, %v6567_v20  ;;  %v6569_v3 = vpop.eup %6568 }
0x10b4   :  { %v3717_v7 = vadd.f32 1.0, %v6569_v3 }
0x10b5   :  { %6570 = vrcp.f32 %v3710_v14 }
0x10b6   :  { %6572 = vrcp.f32 %v3717_v7 }
0x10bf   :  { %v6571_v49 = vpop.eup %6570 }
0x10c0   :  { %v3721_v8 = vmul.f32 %v6571_v49, %v3720_v60  ;;  %v6573_v61 = vpop.eup %6572 }
0x10c1   :  { %v3724_v1 = vsub.f32 1.0, %v6573_v61  ;;  %v3726_v47 = vmul.f32 %v6573_v61, %v7814_v40 }
0x10c2   :  { %v3722_v26 = vadd.f32 %v3721_v8, %v7495_v30 }
0x10c3   :  { %v3865_v24 = vpop.f32.mrb[56].mxu1 }
0x10c4   :  { %6574 = vtanh.f32 %v3722_v26  ;;  %v5153_v11 = vpop.f32.mrb[57].mxu1 }
0x10ce   :  { %v6575_v28 = vpop.eup %6574 }
0x10cf   :  { %v3725_v34 = vmul.f32 %v6575_v28, %v3724_v1 }
0x10d1   :  { %v3727_v39 = vadd.f32 %v3726_v47, %v3725_v34 }
0x10d3   :  { %v3728_v30 = vsel %vm345_vm10, %v3727_v39, %v7814_v40  ;;  %v312_v40 = vld [vmem:[#allocation8 + $0xab0] sm:$0xff] }
0x10d4   :  { %5117 = vmatmul.mubr.f32.vlgmr.msra.gmra.mrb[32].mxu0 %v3728_v30  ;;  %v6309_v43 = vpack.c.bf16 %v313_v58, %v312_v40 }
0x10d5   :  { %6295 = vmatpush3.bf16.msra.mxu0 %v6294_v41  ;;  %5186 = vmatprep.mubr.msk.f32.mxu0 %vm6687_vm1, %v6685_v0  ;;  %v6306_v0 = vpack.c.bf16 %v311_v52, %v310_v6 }
0x10d6   :  { %6296 = vmatprep.subr.bf16.mxu0 %v6686_v5 }
0x10d9   :  { %6298 = vmatpush3.bf16.msra.mxu0 %v6297_v21 }
0x10da   :  { %6299 = vmatprep.subr.bf16.mxu0 %v6686_v5 }
0x10dd   :  { %6301 = vmatpush3.bf16.msra.mxu0 %v6300_v31 }
0x10de   :  { %6302 = vmatprep.subr.bf16.mxu0 %v6686_v5 }
0x10e1   :  { %6304 = vmatpush3.bf16.msra.mxu0 %v6303_v32 }
0x10e2   :  { %6305 = vmatprep.subr.bf16.mxu0 %v6686_v5 }
0x10e5   :  { %6307 = vmatpush3.bf16.msra.mxu0 %v6306_v0 }
0x10e6   :  { %6308 = vmatprep.subr.bf16.mxu0 %v6686_v5 }
0x10e9   :  { %6310 = vmatpush3.bf16.msra.mxu0 %v6309_v43 }
0x10ea   :  { %6311 = vmatprep.subr.bf16.mxu0 %v6686_v5 }
0x10ed   :  { %6313 = vmatpush3.bf16.msra.mxu0 %v6312_v33 }
0x10ee   :  { %6314 = vmatprep.subr.bf16.mxu0 %v6686_v5 }
0x10f1   :  { %6316 = vmatpush3.bf16.msra.mxu0 %v6315_v9 }
0x11a7   :  { %v3795_v62 = vpop.f32.mrb[32].mxu0 }
0x11a8   :  { %v3866_v37 = vadd.f32 %v3865_v24, %v3795_v62  ;;  %v5118_v51 = vpop.f32.mrb[33].mxu0 }
0x11aa   :  { %v3869_v56 = vadd.f32 %v3866_v37, %v322_v16 }
0x11ac   :  { %6576 = vtanh.f32 %v3869_v56 }
0x11b6   :  { %v6577_v59 = vpop.eup %6576 }
0x11b7   :  { %5187 = vmatmul.mubr.f32.vlgmr.msra.gmra.mrb[34].mxu0 %v6577_v59 }
0x128a   :  { %v3937_v46 = vpop.f32.mrb[34].mxu0 }
0x128b   :  { %v3938_v23 = vadd.f32 %v3937_v46, %v323_v45  ;;  %v5188_v44 = vpop.f32.mrb[35].mxu0 }
0x128d   :  { %v4016_v53 = vmul.f32 -1.442695, %v3938_v23 }
0x128f   :  { %6578 = vpow2.f32 %v4016_v53 }
0x1299   :  { %v6579_v15 = vpop.eup %6578 }
0x129a   :  { %v3944_v25 = vadd.f32 1.0, %v6579_v15 }
0x129c   :  { %6580 = vrcp.f32 %v3944_v25 }
0x12a6   :  { %v6581_v5 = vpop.eup %6580 }
0x12a7   :  { %3947 = vst [vmem:[#allocation9] sm:$0xff] %v6581_v5 }
0x12a8   :  { %6661 = shalt.err (!%p6658_p0)
}
0x12a9   :  { %s6662_s27 = scalar_lea.hbm %s7871_s3, 128 }
0x12aa   :  { %p6663_p1 = scmp.ne.s32.totalorder %s7871_s3, %s6662_s27  ;;  %p6666_p2 = scmp.lt.u32.totalorder %s6662_s27, %s7871_s3 }
0x12ac   :  { %p6668_p3 = pnand %p6666_p2, %p6663_p1 }
0x12ae   :  { %6671 = shalt.err (!%p6668_p3)
}
0x12af   :  { %3957 = dma.vmem_to_hbm [thread:$0]  %s3955_s23, 128, %s7871_s3, [#allocation5]  }
0x12b0   :  { %6676 = dma.done.wait [#allocation5], 128  }
0x12b1   :  { %6677 = vsyncadd [#allocation5], 4294967168 }
0x12b2   :  { %3961 = vsyncpa [#allocation4], 1 }
0x12b3   :  { %3962 = vsyncpa [#allocation7], 1 }
0x12b4   :  { %3963 = vsyncpa [#allocation5], 1 }

</bundles_post_ra>
